<compile_context>
chip_gen: v5e
topology: v5e:2x2
jax: 0.10.0
libtpu: 0.0.40
codegen_flags: <defaults>
</compile_context>

<pallas_src>
import jax
import jax.numpy as jnp
import numpy as np
from jax.experimental import pallas as pl
from jax.experimental.pallas import tpu as pltpu

EPS = 1e-5                  # torch BatchNorm1d default eps
C1, C2, C3 = 16, 32, 64     # conv channels: conv_filters=[16, 32], final_conv = 64
D1, D2 = 64, 32             # dense_units, dense_units // 2
LANES = 128                 # TPU lane width; all channel/feature axes padded to this


# ----------------------------------- the kernel --------------------------------------

def conv_regressor_kernel(x_ref, w1_ref, wc_ref, wd_ref, b_ref, out_ref):
    TB, L = x_ref.shape
    L4 = L // 4
    bf16, f32 = jnp.bfloat16, jnp.float32

    def shifted(h):
        """h[l-1] and h[l+1] with zero padding (taps of a same-padded K=3 conv)."""
        z = jnp.zeros((h.shape[0], 1, h.shape[2]), h.dtype)
        hm = jnp.concatenate([z, h[:, :-1, :]], axis=1)
        hp = jnp.concatenate([h[:, 1:, :], z], axis=1)
        return hm, hp

    def maxpool2(h):
        b, lc, c = h.shape
        return jnp.max(h.reshape(b, lc // 2, 2, c), axis=2)

    def conv_bn_relu(h, row0, bias_row):
        """Same-padded K=3 conv as ONE fused (M, 3*128) @ (3*128, 128) MXU dot.

        The three taps are concatenated along the lane axis (free XLU slot) into an
        im2col block and pushed through the MXU once, instead of three small-K dots.
        Channels are zero-padded to 128 lanes so the bias/ReLU/pool stay lane-dense.
        """
        b, lc, c = h.shape                              # c == 128 (lane-padded)
        hm, hp = shifted(h)
        cols = jnp.concatenate([hm, h, hp], axis=-1).astype(bf16)     # (b, lc, 384)
        y = jnp.dot(cols.reshape(b * lc, 3 * c), wc_ref[row0:row0 + 3 * c, :],
                    preferred_element_type=f32)
        y = y.reshape(b, lc, LANES) + bias_row
        return jnp.maximum(y, 0.0)

    # ---- conv1 (Cin=1 -> 16, lane-padded to 128): f32 VPU tap FMAs, BN+bias folded ----
    x3 = x_ref[...].reshape(TB, L, 1)
    xm, xp = shifted(x3)
    h = (xm * w1_ref[0:1, :] + x3 * w1_ref[1:2, :] + xp * w1_ref[2:3, :]
         + w1_ref[3:4, :])
    h = jnp.maximum(h, 0.0)                             # (TB, L,   128)
    h = maxpool2(h)                                     # (TB, L/2, 128)

    # ---- conv2 / final_conv: fused im2col MXU dots (bf16 operands, f32 accumulation) ----
    h = conv_bn_relu(h, 0, b_ref[0:1, :])               # (TB, L/2, 128)
    h = maxpool2(h)                                     # (TB, L/4, 128)
    h = conv_bn_relu(h, 3 * LANES, b_ref[1:2, :])       # (TB, L/4, 128)

    # ---- dense1 as L4 accumulated (TB,128)@(128,128) dots: no flatten relayout ----
    acc = jnp.zeros((TB, LANES), f32)
    for l in range(L4):                                 # small static loop (L4 == L//4)
        acc = acc + jnp.dot(h[:, l, :].astype(bf16),
                            wd_ref[l * LANES:(l + 1) * LANES, :],
                            preferred_element_type=f32)
    d1 = jnp.maximum(acc + b_ref[2:3, :], 0.0)          # (TB, 128), lanes >= 64 are 0

    nd = L4 * LANES
    d2 = jnp.dot(d1.astype(bf16), wd_ref[nd:nd + LANES, :], preferred_element_type=f32)
    d2 = jnp.maximum(d2 + b_ref[3:4, :], 0.0)           # (TB, 128), lanes >= 32 are 0
    out = jnp.dot(d2.astype(bf16), wd_ref[nd + LANES:nd + 2 * LANES, :],
                  preferred_element_type=f32) + b_ref[4:5, :]
    out_ref[...] = out                                  # column 0 = prediction


# ------------------------------------ wrapper ----------------------------------------

def _round_up(n, m):
    return (n + m - 1) // m * m


def conv_regressor_forward(x, kp, batch_tile=None):
    """x: (B, L) f32 concatenated [embeddings | numeric] features -> (B, 1) prediction.

    The batch is padded to a sublane multiple and split into batch tiles.  With more
    than one tile, a 1-D "parallel" grid is used so v7x can spread tiles across both
    TensorCores; a single tile uses the gridless form (no pipeline scaffolding), which
    is what v5e / v6e (single TensorCore) want.  Stack requests before calling to raise
    the effective MXU row fill (throughput scales ~linearly with B at these sizes).
    """
    B, L = x.shape
    assert L % 4 == 0, "input_size must be divisible by 4 (two stride-2 max pools)"
    L4 = L // 4

    if batch_tile is None:
        TB = min(128, _round_up(B, 8))
    else:
        TB = _round_up(batch_tile, 8)
    Bp = _round_up(B, TB)
    if Bp != B:
        x = jnp.pad(x, ((0, Bp - B), (0, 0)))
    num_tiles = Bp // TB

    args = (x, kp['w1'], kp['wc'], kp['wd'], kp['bias'])
    flops = int(2 * Bp * L * 3 * LANES                       # conv1 (VPU, lane-padded)
                + 2 * Bp * (L // 2) * 3 * LANES * LANES      # conv2 (fused K=384 dot)
                + 2 * Bp * (L // 4) * 3 * LANES * LANES      # final conv
                + 2 * Bp * L4 * LANES * LANES                # dense1 (per-position dots)
                + 2 * Bp * LANES * LANES * 2)                # dense2 + output
    bytes_accessed = int(sum(int(a.size) * a.dtype.itemsize for a in args)
                         + Bp * LANES * 4)
    cost = pl.CostEstimate(flops=flops, transcendentals=0, bytes_accessed=bytes_accessed)
    out_shape = jax.ShapeDtypeStruct((Bp, LANES), jnp.float32)

    if num_tiles == 1:
        # gridless: single invocation, no pipeline scaffolding (v5e / v6e sweet spot)
        vmem = pl.BlockSpec(memory_space=pltpu.MemorySpace.VMEM)
        out = pl.pallas_call(
            conv_regressor_kernel, out_shape=out_shape,
            in_specs=[vmem] * len(args), out_specs=vmem,
            cost_estimate=cost,
        )(*args)
    else:
        # batch-tile grid, "parallel" so v7x shards tiles across its 2 TensorCores
        out = pl.pallas_call(
            conv_regressor_kernel, out_shape=out_shape,
            grid=(num_tiles,),
            in_specs=[pl.BlockSpec((TB, L), lambda i: (i, 0)),
                      pl.BlockSpec(kp['w1'].shape, lambda i: (0, 0)),
                      pl.BlockSpec(kp['wc'].shape, lambda i: (0, 0)),
                      pl.BlockSpec(kp['wd'].shape, lambda i: (0, 0)),
                      pl.BlockSpec(kp['bias'].shape, lambda i: (0, 0))],
            out_specs=pl.BlockSpec((TB, LANES), lambda i: (i, 0)),
            compiler_params=pltpu.CompilerParams(
                dimension_semantics=("parallel",)),
            cost_estimate=cost,
        )(*args)
    return out[:B, 0:1]


# ----------------------------- parameter init & packing -----------------------------

def init_params(key, cat_dims, num_features, embedding_dim=4,
                conv_filters=(C1, C2), dense_units=D1):
    keys = jax.random.split(key, 32)
    ki = iter(keys)
    p = {}
    p['emb'] = [0.1 * jax.random.normal(next(ki), (v + 1, embedding_dim), jnp.float32)
                for v in cat_dims]
    L = len(cat_dims) * embedding_dim + num_features
    chans = [1] + list(conv_filters) + [C3]              # conv1, conv2, final_conv
    convs = []
    for cin, cout in zip(chans[:-1], chans[1:]):
        convs.append(dict(
            w=0.3 * jax.random.normal(next(ki), (cout, cin, 3), jnp.float32),
            b=0.1 * jax.random.normal(next(ki), (cout,), jnp.float32),
            gamma=1.0 + 0.1 * jax.random.normal(next(ki), (cout,), jnp.float32),
            beta=0.1 * jax.random.normal(next(ki), (cout,), jnp.float32),
            mean=0.1 * jax.random.normal(next(ki), (cout,), jnp.float32),
            var=jax.random.uniform(next(ki), (cout,), jnp.float32, 0.5, 1.5)))
    p['convs'] = convs
    L4 = L // (2 ** len(conv_filters))
    flat = C3 * L4
    p['d1_w'] = 0.1 * jax.random.normal(next(ki), (dense_units, flat), jnp.float32)
    p['d1_b'] = 0.1 * jax.random.normal(next(ki), (dense_units,), jnp.float32)
    p['d2_w'] = 0.1 * jax.random.normal(next(ki), (dense_units // 2, dense_units), jnp.float32)
    p['d2_b'] = 0.1 * jax.random.normal(next(ki), (dense_units // 2,), jnp.float32)
    p['o_w'] = 0.1 * jax.random.normal(next(ki), (1, dense_units // 2), jnp.float32)
    p['o_b'] = 0.1 * jax.random.normal(next(ki), (1,), jnp.float32)
    return p, L


def _fold_bn(c):
    scale = c['gamma'] / jnp.sqrt(c['var'] + EPS)
    shift = c['beta'] - c['mean'] * scale
    return c['w'] * scale[:, None, None], c['b'] * scale + shift


def make_kernel_params(p, L):
    """Fold BN into the convs, pad everything to 128 lanes, pack into 4 buffers."""
    L4 = L // 4
    (w1f, b1f), (w2f, b2f), (w3f, b3f) = (_fold_bn(c) for c in p['convs'])

    # conv1 (VPU path, stays f32): rows 0..2 = taps, row 3 = folded bias; 128 lanes.
    w1 = jnp.zeros((4, LANES), jnp.float32)
    w1 = w1.at[0:3, 0:C1].set(jnp.transpose(w1f[:, 0, :]))
    w1 = w1.at[3, 0:C1].set(b1f)

    # conv2 / final_conv fused im2col weights: per conv, 3 tap blocks of 128 rows
    # (zero-padded Cin) x 128 columns (zero-padded Cout), stacked into one bf16 buffer.
    wc = jnp.zeros((2 * 3 * LANES, LANES), jnp.float32)
    for k in range(3):
        wc = wc.at[k * LANES: k * LANES + C1, 0:C2].set(w2f[:, :, k].T)
        wc = wc.at[3 * LANES + k * LANES: 3 * LANES + k * LANES + C2,
                   0:C3].set(w3f[:, :, k].T)
    wc = wc.astype(jnp.bfloat16)

    # dense weights, 128-lane padded, stacked row-wise: [dense1 per-l blocks | wd2 | wo].
    # torch flattens (B, C, L4) channel-major (idx = c*L4 + l); the kernel contracts one
    # length position l at a time, so block l holds d1_w[:, c*L4 + l] over channels c.
    nd = L4 * LANES
    wd = jnp.zeros((nd + 2 * LANES, LANES), jnp.float32)
    d1w = p['d1_w'].reshape(D1, C3, L4)                               # [d, c, l]
    blocks = jnp.zeros((L4, LANES, LANES), jnp.float32)
    blocks = blocks.at[:, 0:C3, 0:D1].set(jnp.transpose(d1w, (2, 1, 0)))
    wd = wd.at[0:nd, :].set(blocks.reshape(nd, LANES))
    wd = wd.at[nd:nd + D1, 0:D2].set(p['d2_w'].T)
    wd = wd.at[nd + LANES:nd + LANES + D2, 0:1].set(p['o_w'].T)
    wd = wd.astype(jnp.bfloat16)

    # all remaining biases packed into one (5, 128) f32 buffer (zero beyond valid lanes).
    bias = jnp.zeros((5, LANES), jnp.float32)
    bias = bias.at[0, 0:C2].set(b2f)
    bias = bias.at[1, 0:C3].set(b3f)
    bias = bias.at[2, 0:D1].set(p['d1_b'])
    bias = bias.at[3, 0:D2].set(p['d2_b'])
    bias = bias.at[4, 0:1].set(p['o_b'])
    return dict(w1=w1, wc=wc, wd=wd, bias=bias)


# ------------------------------- pure-JAX references ---------------------------------

def ref_forward(cat, num, p, quant=False):
    """PyTorch eval-mode forward (channel-major flatten).  quant=True mirrors the kernel's
    numerics: BN-folded conv weights, bf16-rounded matmul operands, f32 accumulation."""
    prec = jax.lax.Precision.HIGHEST
    q = (lambda t: t.astype(jnp.bfloat16).astype(jnp.float32)) if quant else (lambda t: t)

    embs = [p['emb'][i][cat[:, i]] for i in range(cat.shape[1])]
    x = jnp.concatenate(embs + [num], axis=1)
    h = x[:, :, None]                                    # (B, L, 1) channels-last
    for idx, c in enumerate(p['convs']):
        B_, Lc, Cin = h.shape
        scale = c['gamma'] / jnp.sqrt(c['var'] + EPS)
        shift = c['beta'] - c['mean'] * scale
        z = jnp.zeros((B_, 1, Cin), h.dtype)
        cols = jnp.concatenate([jnp.concatenate([z, h[:, :-1]], 1), h,
                                jnp.concatenate([h[:, 1:], z], 1)], axis=2)
        if quant:
            wm = jnp.transpose(c['w'] * scale[:, None, None], (2, 1, 0)).reshape(3 * Cin, -1)
            bb = c['b'] * scale + shift
            lhs, rhs = (cols, wm) if idx == 0 else (q(cols), q(wm))   # conv1 stays f32
            y = jnp.matmul(lhs, rhs, precision=prec) + bb
        else:
            wm = jnp.transpose(c['w'], (2, 1, 0)).reshape(3 * Cin, -1)
            y = (jnp.matmul(cols, wm, precision=prec) + c['b']) * scale + shift
        y = jnp.maximum(y, 0.0)
        if idx < 2:                                       # pool only after conv1 / conv2
            B_, Lc, C = y.shape
            y = jnp.max(y.reshape(B_, Lc // 2, 2, C), axis=2)
        h = y
    flat = jnp.transpose(h, (0, 2, 1)).reshape(h.shape[0], -1)      # torch flatten (B, C*L)
    d1 = jnp.maximum(jnp.matmul(q(flat), q(p['d1_w'].T), precision=prec) + p['d1_b'], 0.0)
    d2 = jnp.maximum(jnp.matmul(q(d1), q(p['d2_w'].T), precision=prec) + p['d2_b'], 0.0)
    return jnp.matmul(q(d2), q(p['o_w'].T), precision=prec) + p['o_b']


# ------------------------------------- main -------------------------------------------

if __name__ == "__main__":
    cat_dims = [10, 20, 30]        # 3 categorical features
    num_features = 20              # input_size = 3*4 + 20 = 32
    B = 16

    key = jax.random.PRNGKey(0)
    kp_key, kc, kn = jax.random.split(key, 3)
    params, L = init_params(kp_key, cat_dims, num_features)

    cat_inputs = jnp.stack(
        [jax.random.randint(jax.random.fold_in(kc, i), (B,), 0, v + 1)
         for i, v in enumerate(cat_dims)], axis=1).astype(jnp.int32)          # (B, 3)
    num_inputs = jax.random.normal(kn, (B, num_features), jnp.float32)         # (B, 20)

    # glue: embedding lookups + feature concat (outside the kernel)
    embs = [params['emb'][i][cat_inputs[:, i]] for i in range(len(cat_dims))]
    x = jnp.concatenate(embs + [num_inputs], axis=1).astype(jnp.float32)       # (B, 32)

    kp = make_kernel_params(params, L)

    # batch-tiled grid path (2 tiles -> exercises the "parallel" grid used on v7x)
    out_grid = jax.block_until_ready(conv_regressor_forward(x, kp, batch_tile=8))
    # single-tile gridless path (what v5e / v6e use for one stacked request batch)
    out_one = jax.block_until_ready(conv_regressor_forward(x, kp))
    assert out_grid.shape == (B, 1) and out_one.shape == (B, 1)
    np.testing.assert_allclose(np.asarray(out_grid), np.asarray(out_one),
                               rtol=0.0, atol=1e-6)

    # bf16-matched reference (same numerics as the kernel) -> tight check
    ref_q = ref_forward(cat_inputs, num_inputs, params, quant=True)
    np.testing.assert_allclose(np.asarray(out_grid), np.asarray(ref_q),
                               rtol=5e-3, atol=5e-3)
    # full-f32 PyTorch-equivalent reference -> loose sanity bound on the bf16 error
    ref_f = ref_forward(cat_inputs, num_inputs, params, quant=False)
    assert float(jnp.max(jnp.abs(out_grid - ref_f))) < 0.5
    print("KERNEL_OK")
</pallas_src>

<mosaic_0001>
module attributes {stable_mosaic.version = 11 : i64} {
  func.func @conv_regressor_kernel(%arg0: i32, %arg1: memref<8x32xf32, #tpu.memory_space<vmem>>, %arg2: memref<4x128xf32, #tpu.memory_space<vmem>>, %arg3: memref<768x128xbf16, #tpu.memory_space<vmem>>, %arg4: memref<1280x128xbf16, #tpu.memory_space<vmem>>, %arg5: memref<5x128xf32, #tpu.memory_space<vmem>>, %arg6: memref<8x128xf32, #tpu.memory_space<vmem>>) attributes {dimension_semantics = [#tpu.dimension_semantics<parallel>], iteration_bounds = array<i64: 2>, scalar_prefetch = 0 : i64, scratch_operands = 0 : i64, tpu.core_type = #tpu.core_type<tc>, window_params = [{transform_indices = @transform_0, window_bounds = array<i64: 8, 32>}, {pipeline_mode = #tpu.pipeline_mode<synchronous>, transform_indices = @transform_1, window_bounds = array<i64: 4, 128>}, {pipeline_mode = #tpu.pipeline_mode<synchronous>, transform_indices = @transform_2, window_bounds = array<i64: 768, 128>}, {pipeline_mode = #tpu.pipeline_mode<synchronous>, transform_indices = @transform_3, window_bounds = array<i64: 1280, 128>}, {pipeline_mode = #tpu.pipeline_mode<synchronous>, transform_indices = @transform_4, window_bounds = array<i64: 5, 128>}, {transform_indices = @transform_5, window_bounds = array<i64: 8, 128>}]} {
    %c0 = arith.constant 0 : index
    %c0_0 = arith.constant 0 : index
    %0 = vector.load %arg1[%c0, %c0_0] : memref<8x32xf32, #tpu.memory_space<vmem>>, vector<8x32xf32>
    %1 = vector.shape_cast %0 : vector<8x32xf32> to vector<8x32x1xf32>
    %cst = arith.constant 0.000000e+00 : f32
    %2 = vector.broadcast %cst : f32 to vector<8x1x1xf32>
    %3 = vector.extract_strided_slice %1 {offsets = [0, 0, 0], sizes = [8, 31, 1], strides = [1, 1, 1]} : vector<8x32x1xf32> to vector<8x31x1xf32>
    %4 = tpu.concatenate %2, %3 in 1 : vector<8x1x1xf32>, vector<8x31x1xf32> -> vector<8x32x1xf32>
    %5 = vector.extract_strided_slice %1 {offsets = [0, 1, 0], sizes = [8, 31, 1], strides = [1, 1, 1]} : vector<8x32x1xf32> to vector<8x31x1xf32>
    %6 = tpu.concatenate %5, %2 in 1 : vector<8x31x1xf32>, vector<8x1x1xf32> -> vector<8x32x1xf32>
    %c0_1 = arith.constant 0 : index
    %c0_2 = arith.constant 0 : index
    %7 = vector.load %arg2[%c0_1, %c0_2] : memref<4x128xf32, #tpu.memory_space<vmem>>, vector<1x128xf32>
    %8 = vector.shape_cast %7 : vector<1x128xf32> to vector<1x1x128xf32>
    %9 = vector.broadcast %4 : vector<8x32x1xf32> to vector<8x32x128xf32>
    %10 = vector.broadcast %8 : vector<1x1x128xf32> to vector<8x32x128xf32>
    %11 = arith.mulf %9, %10 : vector<8x32x128xf32>
    %c1 = arith.constant 1 : index
    %c0_3 = arith.constant 0 : index
    %12 = vector.load %arg2[%c1, %c0_3] : memref<4x128xf32, #tpu.memory_space<vmem>>, vector<1x128xf32>
    %13 = vector.shape_cast %12 : vector<1x128xf32> to vector<1x1x128xf32>
    %14 = vector.broadcast %1 : vector<8x32x1xf32> to vector<8x32x128xf32>
    %15 = vector.broadcast %13 : vector<1x1x128xf32> to vector<8x32x128xf32>
    %16 = arith.mulf %14, %15 : vector<8x32x128xf32>
    %17 = arith.addf %11, %16 : vector<8x32x128xf32>
    %c2 = arith.constant 2 : index
    %c0_4 = arith.constant 0 : index
    %18 = vector.load %arg2[%c2, %c0_4] : memref<4x128xf32, #tpu.memory_space<vmem>>, vector<1x128xf32>
    %19 = vector.shape_cast %18 : vector<1x128xf32> to vector<1x1x128xf32>
    %20 = vector.broadcast %6 : vector<8x32x1xf32> to vector<8x32x128xf32>
    %21 = vector.broadcast %19 : vector<1x1x128xf32> to vector<8x32x128xf32>
    %22 = arith.mulf %20, %21 : vector<8x32x128xf32>
    %23 = arith.addf %17, %22 : vector<8x32x128xf32>
    %c3 = arith.constant 3 : index
    %c0_5 = arith.constant 0 : index
    %24 = vector.load %arg2[%c3, %c0_5] : memref<4x128xf32, #tpu.memory_space<vmem>>, vector<1x128xf32>
    %25 = vector.shape_cast %24 : vector<1x128xf32> to vector<1x1x128xf32>
    %26 = vector.broadcast %25 : vector<1x1x128xf32> to vector<8x32x128xf32>
    %27 = arith.addf %23, %26 : vector<8x32x128xf32>
    %cst_6 = arith.constant 0.000000e+00 : f32
    %28 = vector.broadcast %cst_6 : f32 to vector<8x32x128xf32>
    %29 = arith.maximumf %27, %28 : vector<8x32x128xf32>
    %30 = vector.shape_cast %29 : vector<8x32x128xf32> to vector<8x16x2x128xf32>
    %cst_7 = arith.constant dense<0xFF800000> : vector<8x16x128xf32>
    %31 = vector.multi_reduction <maximumf>, %30, %cst_7 [2] : vector<8x16x2x128xf32> to vector<8x16x128xf32>
    %c0_8 = arith.constant 0 : index
    %c0_9 = arith.constant 0 : index
    %32 = vector.load %arg5[%c0_8, %c0_9] : memref<5x128xf32, #tpu.memory_space<vmem>>, vector<1x128xf32>
    %cst_10 = arith.constant 0.000000e+00 : f32
    %33 = vector.broadcast %cst_10 : f32 to vector<8x1x128xf32>
    %34 = vector.extract_strided_slice %31 {offsets = [0, 0, 0], sizes = [8, 15, 128], strides = [1, 1, 1]} : vector<8x16x128xf32> to vector<8x15x128xf32>
    %35 = tpu.concatenate %33, %34 in 1 : vector<8x1x128xf32>, vector<8x15x128xf32> -> vector<8x16x128xf32>
    %36 = vector.extract_strided_slice %31 {offsets = [0, 1, 0], sizes = [8, 15, 128], strides = [1, 1, 1]} : vector<8x16x128xf32> to vector<8x15x128xf32>
    %37 = tpu.concatenate %36, %33 in 1 : vector<8x15x128xf32>, vector<8x1x128xf32> -> vector<8x16x128xf32>
    %38 = tpu.concatenate %35, %31, %37 in 2 : vector<8x16x128xf32>, vector<8x16x128xf32>, vector<8x16x128xf32> -> vector<8x16x384xf32>
    %39 = arith.truncf %38 : vector<8x16x384xf32> to vector<8x16x384xbf16>
    %40 = vector.shape_cast %39 : vector<8x16x384xbf16> to vector<128x384xbf16>
    %c0_11 = arith.constant 0 : index
    %c0_12 = arith.constant 0 : index
    %41 = vector.load %arg3[%c0_11, %c0_12] : memref<768x128xbf16, #tpu.memory_space<vmem>>, vector<384x128xbf16>
    %cst_13 = arith.constant dense<0.000000e+00> : vector<128x128xf32>
    %42 = tpu.matmul %40, %41, %cst_13 {dimension_numbers = #tpu.dot_dimension_numbers<[1], [0], [0], [1], [0, 0, 1, 1], [], []>} : vector<128x384xbf16>, vector<384x128xbf16>, vector<128x128xf32> -> vector<128x128xf32>
    %43 = vector.shape_cast %42 : vector<128x128xf32> to vector<8x16x128xf32>
    %44 = vector.shape_cast %32 : vector<1x128xf32> to vector<1x1x128xf32>
    %45 = vector.broadcast %44 : vector<1x1x128xf32> to vector<8x16x128xf32>
    %46 = arith.addf %43, %45 : vector<8x16x128xf32>
    %cst_14 = arith.constant 0.000000e+00 : f32
    %47 = vector.broadcast %cst_14 : f32 to vector<8x16x128xf32>
    %48 = arith.maximumf %46, %47 : vector<8x16x128xf32>
    %49 = vector.shape_cast %48 : vector<8x16x128xf32> to vector<8x8x2x128xf32>
    %cst_15 = arith.constant dense<0xFF800000> : vector<8x8x128xf32>
    %50 = vector.multi_reduction <maximumf>, %49, %cst_15 [2] : vector<8x8x2x128xf32> to vector<8x8x128xf32>
    %c1_16 = arith.constant 1 : index
    %c0_17 = arith.constant 0 : index
    %51 = vector.load %arg5[%c1_16, %c0_17] : memref<5x128xf32, #tpu.memory_space<vmem>>, vector<1x128xf32>
    %cst_18 = arith.constant 0.000000e+00 : f32
    %52 = vector.broadcast %cst_18 : f32 to vector<8x1x128xf32>
    %53 = vector.extract_strided_slice %50 {offsets = [0, 0, 0], sizes = [8, 7, 128], strides = [1, 1, 1]} : vector<8x8x128xf32> to vector<8x7x128xf32>
    %54 = tpu.concatenate %52, %53 in 1 : vector<8x1x128xf32>, vector<8x7x128xf32> -> vector<8x8x128xf32>
    %55 = vector.extract_strided_slice %50 {offsets = [0, 1, 0], sizes = [8, 7, 128], strides = [1, 1, 1]} : vector<8x8x128xf32> to vector<8x7x128xf32>
    %56 = tpu.concatenate %55, %52 in 1 : vector<8x7x128xf32>, vector<8x1x128xf32> -> vector<8x8x128xf32>
    %57 = tpu.concatenate %54, %50, %56 in 2 : vector<8x8x128xf32>, vector<8x8x128xf32>, vector<8x8x128xf32> -> vector<8x8x384xf32>
    %58 = arith.truncf %57 : vector<8x8x384xf32> to vector<8x8x384xbf16>
    %59 = vector.shape_cast %58 : vector<8x8x384xbf16> to vector<64x384xbf16>
    %c384 = arith.constant 384 : index
    %c0_19 = arith.constant 0 : index
    %60 = vector.load %arg3[%c384, %c0_19] : memref<768x128xbf16, #tpu.memory_space<vmem>>, vector<384x128xbf16>
    %cst_20 = arith.constant dense<0.000000e+00> : vector<64x128xf32>
    %61 = tpu.matmul %59, %60, %cst_20 {dimension_numbers = #tpu.dot_dimension_numbers<[1], [0], [0], [1], [0, 0, 1, 1], [], []>} : vector<64x384xbf16>, vector<384x128xbf16>, vector<64x128xf32> -> vector<64x128xf32>
    %62 = vector.shape_cast %61 : vector<64x128xf32> to vector<8x8x128xf32>
    %63 = vector.shape_cast %51 : vector<1x128xf32> to vector<1x1x128xf32>
    %64 = vector.broadcast %63 : vector<1x1x128xf32> to vector<8x8x128xf32>
    %65 = arith.addf %62, %64 : vector<8x8x128xf32>
    %cst_21 = arith.constant 0.000000e+00 : f32
    %66 = vector.broadcast %cst_21 : f32 to vector<8x8x128xf32>
    %67 = arith.maximumf %65, %66 : vector<8x8x128xf32>
    %cst_22 = arith.constant 0.000000e+00 : f32
    %68 = vector.broadcast %cst_22 : f32 to vector<8x128xf32>
    %69 = vector.extract_strided_slice %67 {offsets = [0, 0, 0], sizes = [8, 1, 128], strides = [1, 1, 1]} : vector<8x8x128xf32> to vector<8x1x128xf32>
    %70 = vector.shape_cast %69 : vector<8x1x128xf32> to vector<8x128xf32>
    %71 = arith.truncf %70 : vector<8x128xf32> to vector<8x128xbf16>
    %c0_23 = arith.constant 0 : index
    %c0_24 = arith.constant 0 : index
    %72 = vector.load %arg4[%c0_23, %c0_24] : memref<1280x128xbf16, #tpu.memory_space<vmem>>, vector<128x128xbf16>
    %cst_25 = arith.constant dense<0.000000e+00> : vector<8x128xf32>
    %73 = tpu.matmul %71, %72, %cst_25 {dimension_numbers = #tpu.dot_dimension_numbers<[1], [0], [0], [1], [0, 0, 1, 1], [], []>} : vector<8x128xbf16>, vector<128x128xbf16>, vector<8x128xf32> -> vector<8x128xf32>
    %74 = arith.addf %68, %73 : vector<8x128xf32>
    %75 = vector.extract_strided_slice %67 {offsets = [0, 1, 0], sizes = [8, 1, 128], strides = [1, 1, 1]} : vector<8x8x128xf32> to vector<8x1x128xf32>
    %76 = vector.shape_cast %75 : vector<8x1x128xf32> to vector<8x128xf32>
    %77 = arith.truncf %76 : vector<8x128xf32> to vector<8x128xbf16>
    %c128 = arith.constant 128 : index
    %c0_26 = arith.constant 0 : index
    %78 = vector.load %arg4[%c128, %c0_26] : memref<1280x128xbf16, #tpu.memory_space<vmem>>, vector<128x128xbf16>
    %cst_27 = arith.constant dense<0.000000e+00> : vector<8x128xf32>
    %79 = tpu.matmul %77, %78, %cst_27 {dimension_numbers = #tpu.dot_dimension_numbers<[1], [0], [0], [1], [0, 0, 1, 1], [], []>} : vector<8x128xbf16>, vector<128x128xbf16>, vector<8x128xf32> -> vector<8x128xf32>
    %80 = arith.addf %74, %79 : vector<8x128xf32>
    %81 = vector.extract_strided_slice %67 {offsets = [0, 2, 0], sizes = [8, 1, 128], strides = [1, 1, 1]} : vector<8x8x128xf32> to vector<8x1x128xf32>
    %82 = vector.shape_cast %81 : vector<8x1x128xf32> to vector<8x128xf32>
    %83 = arith.truncf %82 : vector<8x128xf32> to vector<8x128xbf16>
    %c256 = arith.constant 256 : index
    %c0_28 = arith.constant 0 : index
    %84 = vector.load %arg4[%c256, %c0_28] : memref<1280x128xbf16, #tpu.memory_space<vmem>>, vector<128x128xbf16>
    %cst_29 = arith.constant dense<0.000000e+00> : vector<8x128xf32>
    %85 = tpu.matmul %83, %84, %cst_29 {dimension_numbers = #tpu.dot_dimension_numbers<[1], [0], [0], [1], [0, 0, 1, 1], [], []>} : vector<8x128xbf16>, vector<128x128xbf16>, vector<8x128xf32> -> vector<8x128xf32>
    %86 = arith.addf %80, %85 : vector<8x128xf32>
    %87 = vector.extract_strided_slice %67 {offsets = [0, 3, 0], sizes = [8, 1, 128], strides = [1, 1, 1]} : vector<8x8x128xf32> to vector<8x1x128xf32>
    %88 = vector.shape_cast %87 : vector<8x1x128xf32> to vector<8x128xf32>
    %89 = arith.truncf %88 : vector<8x128xf32> to vector<8x128xbf16>
    %c384_30 = arith.constant 384 : index
    %c0_31 = arith.constant 0 : index
    %90 = vector.load %arg4[%c384_30, %c0_31] : memref<1280x128xbf16, #tpu.memory_space<vmem>>, vector<128x128xbf16>
    %cst_32 = arith.constant dense<0.000000e+00> : vector<8x128xf32>
    %91 = tpu.matmul %89, %90, %cst_32 {dimension_numbers = #tpu.dot_dimension_numbers<[1], [0], [0], [1], [0, 0, 1, 1], [], []>} : vector<8x128xbf16>, vector<128x128xbf16>, vector<8x128xf32> -> vector<8x128xf32>
    %92 = arith.addf %86, %91 : vector<8x128xf32>
    %93 = vector.extract_strided_slice %67 {offsets = [0, 4, 0], sizes = [8, 1, 128], strides = [1, 1, 1]} : vector<8x8x128xf32> to vector<8x1x128xf32>
    %94 = vector.shape_cast %93 : vector<8x1x128xf32> to vector<8x128xf32>
    %95 = arith.truncf %94 : vector<8x128xf32> to vector<8x128xbf16>
    %c512 = arith.constant 512 : index
    %c0_33 = arith.constant 0 : index
    %96 = vector.load %arg4[%c512, %c0_33] : memref<1280x128xbf16, #tpu.memory_space<vmem>>, vector<128x128xbf16>
    %cst_34 = arith.constant dense<0.000000e+00> : vector<8x128xf32>
    %97 = tpu.matmul %95, %96, %cst_34 {dimension_numbers = #tpu.dot_dimension_numbers<[1], [0], [0], [1], [0, 0, 1, 1], [], []>} : vector<8x128xbf16>, vector<128x128xbf16>, vector<8x128xf32> -> vector<8x128xf32>
    %98 = arith.addf %92, %97 : vector<8x128xf32>
    %99 = vector.extract_strided_slice %67 {offsets = [0, 5, 0], sizes = [8, 1, 128], strides = [1, 1, 1]} : vector<8x8x128xf32> to vector<8x1x128xf32>
    %100 = vector.shape_cast %99 : vector<8x1x128xf32> to vector<8x128xf32>
    %101 = arith.truncf %100 : vector<8x128xf32> to vector<8x128xbf16>
    %c640 = arith.constant 640 : index
    %c0_35 = arith.constant 0 : index
    %102 = vector.load %arg4[%c640, %c0_35] : memref<1280x128xbf16, #tpu.memory_space<vmem>>, vector<128x128xbf16>
    %cst_36 = arith.constant dense<0.000000e+00> : vector<8x128xf32>
    %103 = tpu.matmul %101, %102, %cst_36 {dimension_numbers = #tpu.dot_dimension_numbers<[1], [0], [0], [1], [0, 0, 1, 1], [], []>} : vector<8x128xbf16>, vector<128x128xbf16>, vector<8x128xf32> -> vector<8x128xf32>
    %104 = arith.addf %98, %103 : vector<8x128xf32>
    %105 = vector.extract_strided_slice %67 {offsets = [0, 6, 0], sizes = [8, 1, 128], strides = [1, 1, 1]} : vector<8x8x128xf32> to vector<8x1x128xf32>
    %106 = vector.shape_cast %105 : vector<8x1x128xf32> to vector<8x128xf32>
    %107 = arith.truncf %106 : vector<8x128xf32> to vector<8x128xbf16>
    %c768 = arith.constant 768 : index
    %c0_37 = arith.constant 0 : index
    %108 = vector.load %arg4[%c768, %c0_37] : memref<1280x128xbf16, #tpu.memory_space<vmem>>, vector<128x128xbf16>
    %cst_38 = arith.constant dense<0.000000e+00> : vector<8x128xf32>
    %109 = tpu.matmul %107, %108, %cst_38 {dimension_numbers = #tpu.dot_dimension_numbers<[1], [0], [0], [1], [0, 0, 1, 1], [], []>} : vector<8x128xbf16>, vector<128x128xbf16>, vector<8x128xf32> -> vector<8x128xf32>
    %110 = arith.addf %104, %109 : vector<8x128xf32>
    %111 = vector.extract_strided_slice %67 {offsets = [0, 7, 0], sizes = [8, 1, 128], strides = [1, 1, 1]} : vector<8x8x128xf32> to vector<8x1x128xf32>
    %112 = vector.shape_cast %111 : vector<8x1x128xf32> to vector<8x128xf32>
    %113 = arith.truncf %112 : vector<8x128xf32> to vector<8x128xbf16>
    %c896 = arith.constant 896 : index
    %c0_39 = arith.constant 0 : index
    %114 = vector.load %arg4[%c896, %c0_39] : memref<1280x128xbf16, #tpu.memory_space<vmem>>, vector<128x128xbf16>
    %cst_40 = arith.constant dense<0.000000e+00> : vector<8x128xf32>
    %115 = tpu.matmul %113, %114, %cst_40 {dimension_numbers = #tpu.dot_dimension_numbers<[1], [0], [0], [1], [0, 0, 1, 1], [], []>} : vector<8x128xbf16>, vector<128x128xbf16>, vector<8x128xf32> -> vector<8x128xf32>
    %116 = arith.addf %110, %115 : vector<8x128xf32>
    %c2_41 = arith.constant 2 : index
    %c0_42 = arith.constant 0 : index
    %117 = vector.load %arg5[%c2_41, %c0_42] : memref<5x128xf32, #tpu.memory_space<vmem>>, vector<1x128xf32>
    %118 = vector.broadcast %117 : vector<1x128xf32> to vector<8x128xf32>
    %119 = arith.addf %116, %118 : vector<8x128xf32>
    %cst_43 = arith.constant 0.000000e+00 : f32
    %120 = vector.broadcast %cst_43 : f32 to vector<8x128xf32>
    %121 = arith.maximumf %119, %120 : vector<8x128xf32>
    %122 = arith.truncf %121 : vector<8x128xf32> to vector<8x128xbf16>
    %c1024 = arith.constant 1024 : index
    %c0_44 = arith.constant 0 : index
    %123 = vector.load %arg4[%c1024, %c0_44] : memref<1280x128xbf16, #tpu.memory_space<vmem>>, vector<128x128xbf16>
    %cst_45 = arith.constant dense<0.000000e+00> : vector<8x128xf32>
    %124 = tpu.matmul %122, %123, %cst_45 {dimension_numbers = #tpu.dot_dimension_numbers<[1], [0], [0], [1], [0, 0, 1, 1], [], []>} : vector<8x128xbf16>, vector<128x128xbf16>, vector<8x128xf32> -> vector<8x128xf32>
    %c3_46 = arith.constant 3 : index
    %c0_47 = arith.constant 0 : index
    %125 = vector.load %arg5[%c3_46, %c0_47] : memref<5x128xf32, #tpu.memory_space<vmem>>, vector<1x128xf32>
    %126 = vector.broadcast %125 : vector<1x128xf32> to vector<8x128xf32>
    %127 = arith.addf %124, %126 : vector<8x128xf32>
    %cst_48 = arith.constant 0.000000e+00 : f32
    %128 = vector.broadcast %cst_48 : f32 to vector<8x128xf32>
    %129 = arith.maximumf %127, %128 : vector<8x128xf32>
    %130 = arith.truncf %129 : vector<8x128xf32> to vector<8x128xbf16>
    %c1152 = arith.constant 1152 : index
    %c0_49 = arith.constant 0 : index
    %131 = vector.load %arg4[%c1152, %c0_49] : memref<1280x128xbf16, #tpu.memory_space<vmem>>, vector<128x128xbf16>
    %cst_50 = arith.constant dense<0.000000e+00> : vector<8x128xf32>
    %132 = tpu.matmul %130, %131, %cst_50 {dimension_numbers = #tpu.dot_dimension_numbers<[1], [0], [0], [1], [0, 0, 1, 1], [], []>} : vector<8x128xbf16>, vector<128x128xbf16>, vector<8x128xf32> -> vector<8x128xf32>
    %c4 = arith.constant 4 : index
    %c0_51 = arith.constant 0 : index
    %133 = vector.load %arg5[%c4, %c0_51] : memref<5x128xf32, #tpu.memory_space<vmem>>, vector<1x128xf32>
    %134 = vector.broadcast %133 : vector<1x128xf32> to vector<8x128xf32>
    %135 = arith.addf %132, %134 : vector<8x128xf32>
    %c0_52 = arith.constant 0 : index
    %c0_53 = arith.constant 0 : index
    %136 = vector.load %arg6[%c0_52, %c0_53] : memref<8x128xf32, #tpu.memory_space<vmem>>, vector<8x128xf32>
    tpu.vector_store %arg6[%c0_52, %c0_53], %135 {strides = array<i32>} : memref<8x128xf32, #tpu.memory_space<vmem>>, vector<8x128xf32>,
    return
  }
  func.func @transform_0(%arg0: i32) -> (i32, i32) {
    %c0_i32 = arith.constant 0 : i32
    %c0_i32_0 = arith.constant 0 : i32
    return %arg0, %c0_i32 : i32, i32
  }
  func.func @transform_1(%arg0: i32) -> (i32, i32) {
    %c0_i32 = arith.constant 0 : i32
    %c0_i32_0 = arith.constant 0 : i32
    %c0_i32_1 = arith.constant 0 : i32
    return %c0_i32, %c0_i32_0 : i32, i32
  }
  func.func @transform_2(%arg0: i32) -> (i32, i32) {
    %c0_i32 = arith.constant 0 : i32
    %c0_i32_0 = arith.constant 0 : i32
    %c0_i32_1 = arith.constant 0 : i32
    return %c0_i32, %c0_i32_0 : i32, i32
  }
  func.func @transform_3(%arg0: i32) -> (i32, i32) {
    %c0_i32 = arith.constant 0 : i32
    %c0_i32_0 = arith.constant 0 : i32
    %c0_i32_1 = arith.constant 0 : i32
    return %c0_i32, %c0_i32_0 : i32, i32
  }
  func.func @transform_4(%arg0: i32) -> (i32, i32) {
    %c0_i32 = arith.constant 0 : i32
    %c0_i32_0 = arith.constant 0 : i32
    %c0_i32_1 = arith.constant 0 : i32
    return %c0_i32, %c0_i32_0 : i32, i32
  }
  func.func @transform_5(%arg0: i32) -> (i32, i32) {
    %c0_i32 = arith.constant 0 : i32
    %c0_i32_0 = arith.constant 0 : i32
    return %arg0, %c0_i32 : i32, i32
  }
}

</mosaic_0001>

<bundles_post_ra>
// kernel: tpu_custom_call.1
= control target key start
LH: loop header
LB: loop body
LE: loop exit
PB: predicated region body
PF: predicated region fallthrough
CT: control target
= control target key end

     0   :  { %10 = vsyncpa [#allocation3], 0  ;;  %s9755_s0 = inlined_call_operand.hbm [shape: f32[16,32], index: 0, kind: input, shape index: {}]   ;;  %s9756_s1 = inlined_call_operand.hbm [shape: f32[4,128], index: 1, kind: input, shape index: {}]   ;;  %s9757_s2 = inlined_call_operand.hbm [shape: bf16[768,128], index: 2, kind: input, shape index: {}]   ;;  %s9758_s3 = inlined_call_operand.hbm [shape: bf16[1280,128], index: 3, kind: input, shape index: {}]   ;;  %s9759_s4 = inlined_call_operand.hbm [shape: f32[5,128], index: 4, kind: input, shape index: {}]   ;;  %s9760_s5 = inlined_call_operand.hbm [shape: f32[16,128], index: 5, kind: output, shape index: {}]  }
   0x1   :  { %12 = vsyncpa [#allocation3 + $0x1], 0 }
   0x2   :  { %13 = vsyncpa [#allocation6], 0 }
   0x3   :  { %14 = vsyncpa [#allocation9], 0 }
   0x4   :  { %15 = vsyncpa [#allocation4], 0 }
   0x5   :  { %17 = vsyncpa [#allocation4 + $0x1], 0  ;;  %s6687_s18 = smov 0   ;;  %s6689_s19 = smov 0  }
   0x6   :  { %s6691_s20 = smov 0   ;;  %s6693_s21 = smov 0  }
   0x7 LB: > { %s176_s24 = sshll.u32 %s9756_s1, 4  ;;  %s6711_s25 = sadd.s32 4294967295, %s6648_s21   ;;  %s6648_s21 = sphi %s6693_s21, %s9992_s21   ;;  %s6644_s20 = sphi %s6691_s20, %s9991_s20   ;;  %s6640_s19 = sphi %s6689_s19, %s9990_s19   ;;  %s6636_s18 = sphi %s6687_s18, %s9989_s18   ;;  %s177_s24 = int_to_ptr.hbm [resolvable:$true] %s176_s24 }
   0x8   : > { %p5618_p0 = scmp.ge.s32.totalorder %s6648_s21, 1  ;;  %p44_p1 = scmp.eq.s32.totalorder %s6711_s25, 0 }
   0x9   : > { %p164_p2 = scmp.lt.s32.totalorder %s6648_s21, 3  ;;  %s6650_s27 = smov [#allocation5]  }
   0xa   : > { %s178_s28 = sshll.u32 %s6650_s27, 4  ;;  %s201_s6 = sshll.u32 %s9758_s3, 4  ;;  %s179_s28 = int_to_ptr.vmem [resolvable:$true] %s178_s28  ;;  %s202_s6 = int_to_ptr.hbm [resolvable:$true] %s201_s6 }
   0xb   : > { %p6716_p3 = pnand %p5618_p0, %p164_p2  ;;  %s187_s10 = sshll.u32 %s9757_s2, 4  ;;  %s188_s10 = int_to_ptr.hbm [resolvable:$true] %s187_s10 }
   0xc   : > { %s6651_s11 = smov [#allocation8]   ;;  %s6652_s13 = smov 64  }
   0xd   : > { %p6297_p5 = pneg %p6716_p3  ;;  %s203_s12 = sshll.u32 %s6651_s11, 4  ;;  %s204_s12 = int_to_ptr.vmem [resolvable:$true] %s203_s12 }
   0xe   : > { %s6653_s14 = smov 4   ;;  %s216_s17 = sshll.u32 %s9759_s4, 4  ;;  %s217_s17 = int_to_ptr.hbm [resolvable:$true] %s216_s17 }
   0xf   : > { %p6728_p6 = pnand %p6297_p5, %p44_p1  ;;  %s6654_s22 = smov [#allocation7]  }
  0x10   : > { %s189_s23 = sshll.u32 %s6654_s22, 4  ;;  %s6748_s29 = sadd.s32 1, %s6648_s21   ;;  %s190_s23 = int_to_ptr.vmem [resolvable:$true] %s189_s23 }
  0x11   : > { %6300 = dma.hbm_to_vmem [thread:$0]  (!%p6728_p6), %s177_s24, 64, %s179_s28, [#allocation6]  }
  0x12   : > { %6306 = dma.hbm_to_vmem [thread:$0]  (!%p6728_p6), %s202_s6, 10240, %s204_s12, [#allocation9], %s6652_s13, %s6652_s13, %s6653_s14  }
  0x13   : > { %6303 = dma.hbm_to_vmem [thread:$0]  (!%p6728_p6), %s188_s10, 6144, %s190_s23, [#allocation6], %s6652_s13, %s6652_s13, %s6653_s14  }
  0x14   : > { %s6655_s24 = smov [#allocation10]   ;;  %s5617_s28 = sadd.s32 4294967294, %s6648_s21  }
  0x15   : > { %s218_s27 = sshll.u32 %s6655_s24, 4  ;;  %s27_s30 = ssub.s32 %s6648_s21, %s6748_s29  ;;  %s219_s27 = int_to_ptr.vmem [resolvable:$true] %s218_s27 }
  0x16   : > { %6309 = dma.hbm_to_vmem [thread:$0]  (!%p6728_p6), %s217_s17, 128, %s219_s27, [#allocation9]  }
  0x17   : > { %s30_s6 = sadd.s32 1, %s6644_s20  ;;  %p28_p7 = scmp.eq.s32.totalorder %s27_s30, 0 }
  0x18   : > { %p37_p8 = scmp.ne.s32.totalorder %s6644_s20, %s6640_s19  ;;  %p38_p9 = scmp.eq.s32.totalorder %s6648_s21, 0 }
  0x19   : > { %p43_p10 = scmp.ne.s32.totalorder %s6640_s19, %s6636_s18  ;;  %p151_p13 = scmp.eq.s32.totalorder %s6711_s25, 1 }
  0x1a   : > { %s6759_s8 = scalar_select %p28_p7, %s6644_s20, %s30_s6  }
  0x1b   : > { %p6761_p11 = por %p38_p9, %p37_p8  ;;  %p6767_p12 = por %p44_p1, %p43_p10 }
  0x1c   : > { %p157_p0 = scmp.eq.s32.totalorder %s5617_s28, 1  ;;  %p6322_p2 = scmp.lt.s32.totalorder %s6648_s21, 2 }
  0x1d   : > { %s229_s10 = sand.u32 1, %s6644_s20   ;;  %p6774_p5 = por %p151_p13, %p37_p8 }
  0x1e   : > { %p6778_p6 = por %p157_p0, %p43_p10  ;;  %s5624_s13 = sshll.u32 %s229_s10, 3 }
  0x1f   : > { %s5625_s14 = sshll.u32 %s6648_s21, 3  ;;  %s233_s22 = scalar_lea.vmem [#allocation2], %s5624_s13 }
  0x20   : > { %s237_s17 = scalar_lea.hbm %s9755_s0, %s5625_s14  ;;  %s241_s23 = sshll.u32 %s233_s22, 4  ;;  %s242_s23 = int_to_ptr.vmem [resolvable:$true] %s241_s23 }
  0x21   : > { %s239_s24 = sshll.u32 %s237_s17, 4  ;;  %p6788_p7 = pnand %p6322_p2, %p6761_p11  ;;  %s240_s24 = int_to_ptr.hbm [resolvable:$true] %s239_s24 }
  0x22   : > { %s230_s28 = scalar_lea.sflag [#allocation3], %s229_s10  ;;  %s6544_s30 = sshra.s32 %s240_s24, 4  ;;  %s6545_s30 = int_to_ptr.hbm [resolvable:$true] %s6544_s30 }
  0x23   : > { %s6546_s6 = scalar_lea.hbm %s6545_s30, 8  ;;  %p6548_p9 = pneg %p6788_p7 }
  0x24   : > { %p6547_p8 = scmp.ne.s32.totalorder %s6545_s30, %s6546_s6  ;;  %s6551_s15 = scalar_lea.hbm %s9755_s0, 16 }
  0x25   : > { %p6552_p11 = scmp.lt.s32.totalorder %s6545_s30, %s9755_s0  ;;  %p6553_p0 = scmp.lt.s32.totalorder %s6551_s15, %s6546_s6 }
  0x26   : > { %p6549_p10 = pnand %p6548_p9, %p6547_p8 }
  0x27   : > { %p6554_p2 = por %p6553_p0, %p6552_p11 }
  0x28   : > { %p6550_p13 = pneg %p6549_p10 }
  0x2a   : > { %p6555_p4 = pnand %p6554_p2, %p6550_p13 }
  0x2c   : > { %6558 = shalt.err (!%p6555_p4)
}
  0x2d   : > { %6313 = dma.hbm_to_vmem [thread:$0]  (!%p6788_p7), %s240_s24, 128, %s242_s23, %s230_s28  }
  0x2e   : > { %250 = sbr.rel (%p6716_p3) target bundleno = 1705 (0x6a9), region = 40 }
  0x33   : > { %s6805_s10 = sand.u32 1, %s6640_s19  }
  0x34   : > { %s5627_s17 = sshll.u32 %s6805_s10, 3  ;;  %s253_s22 = scalar_lea.sflag [#allocation3], %s6805_s10 }
  0x35   : > { %s256_s30 = scalar_lea.vmem [#allocation2], %s5627_s17 }
  0x36   : > { %6619 = dma.done.wait (%p6767_p12), %s253_s22, 128  }
  0x37   : > { %6621 = vsyncadd (%p6767_p12), %s253_s22, 4294967168 }
  0x38   : > { %6623 = dma.done.wait (%p44_p1), [#allocation6], 6208  }
  0x39   : > { %6625 = vsyncadd (%p44_p1), [#allocation6], 4294961088 }
  0x3a   : > { %6627 = dma.done.wait (%p44_p1), [#allocation9], 10368  }
  0x3b   : > { %6629 = vsyncadd (%p44_p1), [#allocation9], 4294956928  ;;  %v306_v0 = vlaneseq  ;;  %v304_v3 = vld [vmem:[%s256_s30] sm:$0xff]  ;;  %v9763_v13 = vmov 0   ;;  %vm537_vm0 = vcmask 1040384   ;;  %vm610_vm1 = vcmask 1046528  }
  0x3c   : > { %v330_v4 = vperm.slane %v304_v3, 1  ;;  %v305_v5 = vperm.slane %v304_v3, 0  ;;  %v355_v7 = vperm.slane %v304_v3, 2  ;;  %v6839_v9 = vperm.slane %v304_v3, 5  ;;  %s6146_s26 = sshll.u32 %s6711_s25, 3  ;;  %s303_s27 = scalar_lea.vmem [#allocation11], %s5627_s17 }
  0x3d   : > { %v6823_v1 = vshrl.u32 %v306_v0, 7  ;;  %v380_v10 = vperm.slane %v304_v3, 3  ;;  %v6847_v11 = vperm.slane %v304_v3, 6  ;;  %v405_v12 = vperm.slane %v304_v3, 4  ;;  %s5504_s24 = scalar_lea.hbm %s9760_s5, %s6146_s26  ;;  %s5506_s28 = sshll.u32 %s303_s27, 4  ;;  %s5507_s28 = int_to_ptr.vmem [resolvable:$true] %s5506_s28 }
  0x3e   : > { %v6858_v14 = vperm.slane %v304_v3, 7  ;;  %vm1411_vm2 = vcmask 1041408   ;;  %vm2429_vm3 = vcmask 1042434   ;;  %vm2431_vm4 = vcmask 1043459   ;;  %s5508_s6 = sshll.u32 %s5504_s24, 4  ;;  %s5494_s13 = scalar_lea.sflag [#allocation4], %s6805_s10  ;;  %s5509_s6 = int_to_ptr.hbm [resolvable:$true] %s5508_s6 }
  0x3f   : > { %6368 = vset.pattern.permute.xlu2 %v6823_v1  ;;  %6367 = vset.pattern.permute.xlu0 %v6823_v1  ;;  %v6828_v2 = vadd.s32 16, %v6823_v1  ;;  %v6832_v6 = vadd.s32 8, %v6823_v1  ;;  %v6835_v8 = vadd.s32 24, %v6823_v1  ;;  %vm2433_vm5 = vcmask 1044484   ;;  %s6588_s14 = sshra.s32 %s5509_s6, 4  ;;  %s6594_s9 = scalar_lea.hbm %s9760_s5, 16  ;;  %s6589_s14 = int_to_ptr.hbm [resolvable:$true] %s6588_s14 }
  0x40   : > { %vm2435_vm6 = vcmask 1045509   ;;  %vm2437_vm7 = vcmask 1046534   ;;  %vm2439_vm8 = vcmask 1047559   ;;  %vm2441_vm9 = vcmask 1041409   ;;  %s6590_s15 = scalar_lea.hbm %s6589_s14, 8  ;;  %p6595_p12 = scmp.lt.s32.totalorder %s6589_s14, %s9760_s5 }
  0x41   : > { %6369 = vset.pattern.permute.xlu1 %v6828_v2  ;;  %p6591_p1 = scmp.ne.s32.totalorder %s6589_s14, %s6590_s15  ;;  %p6596_p7 = scmp.lt.s32.totalorder %s6594_s9, %s6590_s15 }
  0x43   : > { %p6592_p3 = pnand %p6591_p1, %p6774_p5  ;;  %p6597_p8 = por %p6596_p7, %p6595_p12 }
  0x45   : > { %p6593_p4 = pneg %p6592_p3 }
  0x47   : > { %335 = vperm.xlu2 %6368, %v330_v4   ;;  %310 = vperm.xlu0 %6367, %v305_v5   ;;  %p6598_p9 = pnand %p6597_p8, %p6593_p4 }
  0x49   : > { %322 = vperm.xlu1 %6369, %v305_v5  }
  0x4f   : > { %6371 = vset.pattern.permute.xlu2 %v6832_v6  ;;  %360 = vperm.xlu0 %6367, %v355_v7  }
  0x51   : > { %6370 = vset.pattern.permute.xlu1 %v6835_v8 }
  0x57   : > { %341 = vperm.xlu2 %6371, %v330_v4   ;;  %435 = vperm.xlu0 %6367, %v6839_v9  }
  0x59   : > { %328 = vperm.xlu1 %6370, %v305_v5  }
  0x5f   : > { %6373 = vset.pattern.permute.xlu2 %v6835_v8  ;;  %6383 = vset.pattern.permute.xlu0 %v6832_v6 }
  0x61   : > { %6372 = vset.pattern.permute.xlu1 %v6828_v2 }
  0x67   : > { %353 = vperm.xlu2 %6373, %v330_v4   ;;  %316 = vperm.xlu0 %6383, %v305_v5  }
  0x69   : > { %347 = vperm.xlu1 %6372, %v330_v4  }
  0x6f   : > { %6375 = vset.pattern.permute.xlu2 %v6828_v2  ;;  %391 = vperm.xlu0 %6383, %v380_v10  }
  0x71   : > { %6374 = vset.pattern.permute.xlu1 %v6832_v6 }
  0x77   : > { %372 = vperm.xlu2 %6375, %v355_v7   ;;  %466 = vperm.xlu0 %6383, %v6847_v11  }
  0x79   : > { %366 = vperm.xlu1 %6374, %v355_v7  }
  0x7f   : > { %6377 = vset.pattern.permute.xlu2 %v6823_v1  ;;  %6392 = vset.pattern.permute.xlu0 %v6828_v2 }
  0x81   : > { %6376 = vset.pattern.permute.xlu1 %v6835_v8 }
  0x87   : > { %385 = vperm.xlu2 %6377, %v380_v10   ;;  %422 = vperm.xlu0 %6392, %v405_v12  }
  0x89   : > { %378 = vperm.xlu1 %6376, %v355_v7  }
  0x8f   : > { %6379 = vset.pattern.permute.xlu2 %v6835_v8  ;;  %497 = vperm.xlu0 %6392, %v6858_v14  }
  0x91   : > { %6378 = vset.pattern.permute.xlu1 %v6828_v2 }
  0x97   : > { %403 = vperm.xlu2 %6379, %v380_v10   ;;  %6399 = vset.pattern.permute.xlu0 %v9763_v13 }
  0x99   : > { %397 = vperm.xlu1 %6378, %v380_v10  }
  0x9f   : > { %6381 = vset.pattern.permute.xlu2 %v6832_v6 }
  0xa1   : > { %6380 = vset.pattern.permute.xlu1 %v6823_v1  ;;  %v6862_v15 = vpop.permute.xlu2 %335 }
  0xa2   : > { %v545_v18 = vrot.slane %v6862_v15, 7  ;;  %v618_v48 = vrot.slane %v6862_v15, 1 }
  0xa4   : > { %v603_v20 = vsel %vm537_vm0, 0.0, %v545_v18 }
  0xa7   : > { %416 = vperm.xlu2 %6381, %v405_v12  }
  0xa9   : > { %410 = vperm.xlu1 %6380, %v405_v12  }
  0xaf   : > { %6384 = vset.pattern.permute.xlu2 %v9763_v13 }
  0xb1   : > { %6382 = vset.pattern.permute.xlu1 %v6835_v8  ;;  %v6895_v37 = vpop.permute.xlu2 %341 }
  0xb2   : > { %v546_v39 = vrot.slane %v6895_v37, 7  ;;  %v619_v49 = vrot.slane %v6895_v37, 1 }
  0xb4   : > { %v547_v46 = vsel %vm537_vm0, %v545_v18, %v546_v39  ;;  %v620_v52 = vsel %vm610_vm1, %v618_v48, %v619_v49 }
  0xb9   : > { %428 = vperm.xlu1 %6382, %v405_v12   ;;  %v6864_v16 = vpop.permute.xlu0 %310 }
  0xba   : > { %v538_v17 = vrot.slane %v6864_v16, 7  ;;  %v611_v34 = vrot.slane %v6864_v16, 1 }
  0xbb   : > { %v6874_v22 = vpop.permute.xlu1 %322 }
  0xbc   : > { %v602_v19 = vsel %vm537_vm0, 0.0, %v538_v17  ;;  %v614_v25 = vrot.slane %v6874_v22, 1  ;;  %v541_v30 = vrot.slane %v6874_v22, 7 }
  0xbd   : > { %686 = vperm.xlu2 %6384, %v602_v19  }
  0xc1   : > { %6385 = vset.pattern.permute.xlu1 %v9763_v13  ;;  %v6872_v21 = vpop.permute.xlu0 %360  ;;  %v6907_v47 = vpop.permute.xlu2 %353 }
  0xc2   : > { %v552_v23 = vrot.slane %v6872_v21, 7  ;;  %703 = vperm.xlu1 %6385, %v603_v20   ;;  %v623_v55 = vrot.slane %v6907_v47, 1  ;;  %v625_v59 = vrot.slane %v6872_v21, 1  ;;  %v550_v62 = vrot.slane %v6907_v47, 7 }
  0xc4   : > { %v604_v24 = vsel %vm537_vm0, 0.0, %v552_v23  ;;  %v676_v58 = vsel %vm610_vm1, %v623_v55, 0.0 }
  0xc5   : > { %720 = vperm.xlu2 %6384, %v604_v24  }
  0xc9   : > { %v6885_v29 = vpop.permute.xlu0 %435 }
  0xca   : > { %9813 = vst [vmem:[#allocation16_spill] sm:$0xff] %v6885_v29 }
  0xcb   : > { %v6881_v26 = vpop.permute.xlu1 %328 }
  0xcc   : > { %v616_v27 = vrot.slane %v6881_v26, 1  ;;  %v543_v31 = vrot.slane %v6881_v26, 7 }
  0xce   : > { %v617_v28 = vsel %vm610_vm1, %v614_v25, %v616_v27  ;;  %v544_v32 = vsel %vm537_vm0, %v541_v30, %v543_v31  ;;  %v675_v51 = vsel %vm610_vm1, %v616_v27, 0.0 }
  0xcf   : > { %929 = vperm.xlu2 %6384, %v617_v28  }
  0xd1   : > { %v6918_v56 = vpop.permute.xlu2 %372 }
  0xd2   : > { %v555_v63 = vrot.slane %v6918_v56, 7  ;;  %v628_v4 = vrot.slane %v6918_v56, 1 }
  0xd7   : > { %698 = vperm.xlu2 %6384, %v544_v32  }
  0xd9   : > { %v6890_v33 = vpop.permute.xlu0 %316 }
  0xda   : > { %v539_v35 = vrot.slane %v6890_v33, 7  ;;  %v612_v36 = vrot.slane %v6890_v33, 1 }
  0xdb   : > { %v6897_v38 = vpop.permute.xlu1 %347 }
  0xdc   : > { %v548_v40 = vrot.slane %v6897_v38, 7  ;;  %v613_v41 = vsel %vm610_vm1, %v611_v34, %v612_v36  ;;  %v542_v42 = vsel %vm537_vm0, %v539_v35, %v541_v30  ;;  %v540_v44 = vsel %vm537_vm0, %v538_v17, %v539_v35 }
  0xdd   : > { %921 = vperm.xlu1 %6385, %v613_v41   ;;  %694 = vperm.xlu0 %6399, %v542_v42   ;;  %v615_v45 = vsel %vm610_vm1, %v612_v36, %v614_v25  ;;  %v621_v50 = vrot.slane %v6897_v38, 1 }
  0xde   : > { %v549_v43 = vsel %vm537_vm0, %v546_v39, %v548_v40  ;;  %v551_v10 = vsel %vm537_vm0, %v548_v40, %v550_v62 }
  0xdf   : > { %711 = vperm.xlu2 %6384, %v549_v43   ;;  %v622_v53 = vsel %vm610_vm1, %v619_v49, %v621_v50  ;;  %v624_v60 = vsel %vm610_vm1, %v621_v50, %v623_v55 }
  0xe1   : > { %v6927_v0 = vpop.permute.xlu2 %385  ;;  %v6942_v25 = vpop.permute.xlu0 %391 }
  0xe2   : > { %v560_v28 = vrot.slane %v6942_v25, 7  ;;  %v633_v36 = vrot.slane %v6942_v25, 1 }
  0xe5   : > { %690 = vperm.xlu1 %6385, %v540_v44   ;;  %925 = vperm.xlu0 %6399, %v615_v45   ;;  %v559_v44 = vrot.slane %v6927_v0, 7  ;;  %v6968_v45 = vld [vmem:[#allocation5 + $0x1] ss:$0 sm:$0xff] }
  0xe7   : > { %707 = vperm.xlu2 %6384, %v547_v46   ;;  %v6970_v46 = vld [vmem:[#allocation5] ss:$0 sm:$0xff]  ;;  %v605_v50 = vsel %vm537_vm0, 0.0, %v559_v44 }
  0xeb   : > { %v6915_v54 = vpop.permute.xlu1 %366 }
  0xec   : > { %v626_v57 = vrot.slane %v6915_v54, 1  ;;  %v553_v18 = vrot.slane %v6915_v54, 7 }
  0xed   : > { %934 = vperm.xlu1 %6385, %v675_v51   ;;  %938 = vperm.xlu0 %6399, %v620_v52   ;;  %v863_v51 = vmul.f32 %v6968_v45, %v6872_v21 }
  0xee   : > { %v627_v61 = vsel %vm610_vm1, %v625_v59, %v626_v57  ;;  %v556_v20 = vsel %vm537_vm0, %v553_v18, %v555_v63  ;;  %v554_v31 = vsel %vm537_vm0, %v552_v23, %v553_v18  ;;  %v629_v39 = vsel %vm610_vm1, %v626_v57, %v628_v4 }
  0xef   : > { %942 = vperm.xlu2 %6384, %v622_v53   ;;  %v855_v18 = vmul.f32 %v6968_v45, %v6864_v16  ;;  %v7030_v16 = vmul.f32 %v6968_v45, %v6907_v47  ;;  %v7053_v47 = vmul.f32 %v6968_v45, %v6897_v38 }
  0xf1   : > { %v6938_v19 = vpop.permute.xlu2 %403 }
  0xf2   : > { %v637_v55 = vrot.slane %v6938_v19, 1  ;;  %v564_v59 = vrot.slane %v6938_v19, 7 }
  0xf5   : > { %946 = vperm.xlu1 %6385, %v624_v60   ;;  %951 = vperm.xlu0 %6399, %v676_v58  }
  0xf7   : > { %955 = vperm.xlu2 %6384, %v627_v61  }
  0xfb   : > { %v6929_v3 = vpop.permute.xlu1 %378 }
  0xfc   : > { %v557_v5 = vrot.slane %v6929_v3, 7  ;;  %v630_v7 = vrot.slane %v6929_v3, 1 }
  0xfd   : > { %715 = vperm.xlu1 %6385, %v551_v10  }
  0xfe   : > { %v558_v12 = vsel %vm537_vm0, %v555_v63, %v557_v5  ;;  %v631_v17 = vsel %vm610_vm1, %v628_v4, %v630_v7  ;;  %v677_v24 = vsel %vm610_vm1, %v630_v7, 0.0  ;;  %v7001_v4 = vpop.permute.xlu0 %466  ;;  %v632_v5 = vrot.slane %v6927_v0, 1 }
  0xff   : > { %732 = vperm.xlu2 %6384, %v558_v12   ;;  %963 = vperm.xlu0 %6399, %v631_v17   ;;  %9814 = vst [vmem:[#allocation17_spill] sm:$0xff] %v7001_v4 }
 0x100   : > { %v634_v10 = vsel %vm610_vm1, %v632_v5, %v633_v36 }
 0x101   : > { %v6951_v32 = vpop.permute.xlu2 %416 }
 0x102   : > { %v9765_v23 = vrot.slane %v6951_v32, 1 }
 0x105   : > { %728 = vperm.xlu1 %6385, %v556_v20   ;;  %v7017_v20 = vmul.f32 %v6968_v45, %v6862_v15 }
 0x106   : > { %v7009_v12 = vpop.permute.xlu0 %422 }
 0x107   : > { %968 = vperm.xlu2 %6384, %v677_v24   ;;  %v860_v24 = vmul.f32 %v6968_v45, %v6895_v37  ;;  %v7034_v37 = vmul.f32 %v6968_v45, %v6885_v29 }
 0x109   : > { %9816 = vst [vmem:[#allocation19_spill] sm:$0xff] %v7034_v37 }
 0x10b   : > { %v6944_v27 = vpop.permute.xlu1 %397 }
 0x10c   : > { %v562_v30 = vrot.slane %v6944_v27, 7  ;;  %v635_v35 = vrot.slane %v6944_v27, 1 }
 0x10d   : > { %724 = vperm.xlu1 %6385, %v554_v31  }
 0x10e   : > { %v563_v34 = vsel %vm537_vm0, %v560_v28, %v562_v30  ;;  %v636_v40 = vsel %vm610_vm1, %v633_v36, %v635_v35  ;;  %v638_v57 = vsel %vm610_vm1, %v635_v35, %v637_v55  ;;  %v565_v62 = vsel %vm537_vm0, %v562_v30, %v564_v59  ;;  %v7022_v31 = vpop.permute.xlu0 %497 }
 0x10f   : > { %6387 = vset.pattern.permute.xlu2 %v6828_v2  ;;  %745 = vperm.xlu0 %6399, %v563_v34   ;;  %9815 = vst [vmem:[#allocation18_spill] sm:$0xff] %v7022_v31  ;;  %v857_v34 = vmul.f32 %v6968_v45, %v6874_v22  ;;  %v7038_v36 = vmul.f32 %v6968_v45, %v6881_v26 }
 0x110   : > { %v7042_v22 = vmul.f32 %v6968_v45, %v6918_v56  ;;  %v7057_v26 = vmul.f32 %v6968_v45, %v6927_v0  ;;  %v7061_v56 = vmul.f32 %v6968_v45, %v6942_v25  ;;  %v7072_v0 = vmul.f32 %v6968_v45, %v7001_v4  ;;  %v6161_v4 = vld [vmem:[#allocation7 + $0x60] sm:$0xff] }
 0x111   : > { %v7076_v25 = vmul.f32 %v6968_v45, %v6915_v54  ;;  %v7095_v54 = vmul.f32 %v6968_v45, %v6944_v27 }
 0x112   : > { %9817 = vst [vmem:[#allocation20_spill] sm:$0xff] %v7061_v56 }
 0x113   : > { %9818 = vst [vmem:[#allocation21_spill] sm:$0xff] %v7072_v0 }
 0x115   : > { %959 = vperm.xlu1 %6385, %v629_v39   ;;  %v7046_v39 = vmul.f32 %v6968_v45, %v6890_v33 }
 0x117   : > { %v6959_v41 = vpop.permute.xlu2 %686  ;;  %447 = vperm.xlu2 %6387, %v6839_v9   ;;  %976 = vperm.xlu0 %6399, %v636_v40   ;;  %v7048_v40 = vld [vmem:[#allocation5 + $0x2] ss:$0 sm:$0xff] }
 0x11b   : > { %v6963_v42 = vpop.permute.xlu1 %410 }
 0x11c   : > { %v639_v43 = vrot.slane %v6963_v42, 1  ;;  %v566_v59 = vrot.slane %v6963_v42, 7 }
 0x11d   : > { %6386 = vset.pattern.permute.xlu1 %v6832_v6 }
 0x11e   : > { %v641_v48 = vsel %vm610_vm1, %v639_v43, %v9765_v23  ;;  %v6164_v23 = vld [vmem:[#allocation7 + $0x78] sm:$0xff] }
 0x11f   : > { %6389 = vset.pattern.permute.xlu2 %v9763_v13  ;;  %v721_v49 = vpop.permute.xlu2 %720  ;;  %989 = vperm.xlu0 %6399, %v641_v48   ;;  %v821_v48 = vmul.f32 %v6970_v46, %v6959_v41 }
 0x120   : > { %v829_v52 = vmul.f32 %v6970_v46, %v721_v49  ;;  %737 = vperm.xlu2 %6389, %v605_v50   ;;  %v7067_v50 = vld [vmem:[#allocation5 + $0x3] ss:$0 sm:$0xff]  ;;  %3229 = vmatpush.bf16.msra.mxu1 %v6164_v23 }
 0x122   : > { %v6980_v53 = vadd.f32 %v863_v51, %v829_v52  ;;  %v7080_v51 = vmul.f32 %v6968_v45, %v6938_v19  ;;  %v7089_v52 = vmul.f32 %v6968_v45, %v6929_v3  ;;  %v678_v3 = vsel %vm610_vm1, %v637_v55, 0.0 }
 0x124   : > { %9819 = vst [vmem:[#allocation22_spill] sm:$0xff] %v7080_v51 }
 0x125   : > { %441 = vperm.xlu1 %6386, %v6839_v9  }
 0x128   : > { %980 = vperm.xlu2 %6389, %v638_v57   ;;  %v567_v57 = vrot.slane %v6951_v32, 7 }
 0x129   : > { %v6987_v58 = vpop.permute.xlu2 %929 }
 0x12b   : > { %v6990_v60 = vpop.permute.xlu1 %428 }
 0x12c   : > { %v9762_v21 = vrot.slane %v6990_v60, 1 }
 0x12d   : > { %6388 = vset.pattern.permute.xlu1 %v6835_v8 }
 0x12e   : > { %v679_v61 = vsel %vm610_vm1, %v9762_v21, 0.0 }
 0x12f   : > { %1002 = vperm.xlu0 %6399, %v679_v61  }
 0x130   : > { %749 = vperm.xlu2 %6389, %v565_v62   ;;  %v7099_v62 = vmul.f32 %v6968_v45, %v6951_v32 }
 0x131   : > { %v6998_v63 = vpop.permute.xlu2 %698 }
 0x132   : > { %9820 = vst [vmem:[#allocation23_spill] sm:$0xff] %v7099_v62 }
 0x134   : > { %v704_v15 = vpop.permute.xlu1 %703 }
 0x135   : > { %453 = vperm.xlu1 %6388, %v6839_v9   ;;  %v561_v9 = vsel %vm537_vm0, %v559_v44, %v560_v28  ;;  %v9761_v28 = vrot.slane %v6885_v29, 7  ;;  %v6166_v29 = vld [vmem:[#allocation7 + $0x88] sm:$0xff] }
 0x137   : > { %v7085_v41 = vsel %vm537_vm0, 0.0, %v9761_v28 }
 0x138   : > { %6391 = vset.pattern.permute.xlu2 %v6823_v1 }
 0x139   : > { %v7005_v7 = vpop.permute.xlu2 %711 }
 0x13d   : > { %6390 = vset.pattern.permute.xlu1 %v9763_v13  ;;  %v571_v13 = vrot.slane %v6990_v60, 7 }
 0x13e   : > { %972 = vperm.xlu1 %6390, %v634_v10   ;;  %v887_v10 = vadd.f32 %v855_v18, %v821_v48  ;;  %v7119_v18 = vmul.f32 %v6968_v45, %v7022_v31  ;;  %v6162_v31 = vld [vmem:[#allocation7 + $0x68] sm:$0xff] }
 0x140   : > { %460 = vperm.xlu2 %6391, %v6847_v11   ;;  %9823 = vst [vmem:[#allocation26_spill] sm:$0xff] %v7119_v18 }
 0x141   : > { %v708_v17 = vpop.permute.xlu2 %707 }
 0x142   : > { %v826_v30 = vmul.f32 %v6970_v46, %v708_v17  ;;  %v642_v17 = vrot.slane %v7009_v12, 1 }
 0x144   : > { %v892_v49 = vadd.f32 %v860_v24, %v826_v30  ;;  %v7113_v24 = vmul.f32 %v6968_v45, %v6963_v42  ;;  %v1059_v42 = vmul.f32 %v7048_v40, %v6987_v58 }
 0x146   : > { %741 = vperm.xlu1 %6390, %v561_v9   ;;  %v7108_v9 = vmul.f32 %v6968_v45, %v7009_v12  ;;  %9822 = vst [vmem:[#allocation25_spill] sm:$0xff] %v7113_v24 }
 0x148   : > { %6394 = vset.pattern.permute.xlu2 %v6835_v8  ;;  %9821 = vst [vmem:[#allocation24_spill] sm:$0xff] %v7108_v9 }
 0x149   : > { %v943_v33 = vpop.permute.xlu2 %942 }
 0x14a   : > { %v1062_v38 = vmul.f32 %v7048_v40, %v943_v33 }
 0x14c   : > { %v1094_v61 = vadd.f32 %v1062_v38, %v892_v49  ;;  %v7124_v38 = vsel %vm537_vm0, %v566_v59, %v567_v57 }
 0x14e   : > { %v1128_v27 = vadd.f32 %v7067_v50, %v1094_v61  ;;  %985 = vperm.xlu1 %6390, %v678_v3   ;;  %v824_v61 = vmul.f32 %v6970_v46, %v6998_v63  ;;  %v825_v3 = vmul.f32 %v6970_v46, %v704_v15  ;;  %v7139_v63 = vmul.f32 %v6968_v45, %v6990_v60 }
 0x14f   : > { %v922_v55 = vpop.permute.xlu1 %921  ;;  %v695_v49 = vpop.permute.xlu0 %694 }
 0x150   : > { %v1160_v33 = vmax.f32 %v1128_v27, 0.0  ;;  %v1057_v48 = vmul.f32 %v7048_v40, %v922_v55  ;;  %478 = vperm.xlu2 %6394, %v6847_v11   ;;  %v823_v19 = vmul.f32 %v6970_v46, %v695_v49  ;;  %v827_v27 = vmul.f32 %v6970_v46, %v7005_v7  ;;  %9824 = vst [vmem:[#allocation27_spill] sm:$0xff] %v7139_v63  ;;  %v6156_v49 = vld [vmem:[#allocation7 + $0x38] sm:$0xff]  ;;  %v6154_v63 = vld [vmem:[#allocation7 + $0x28] sm:$0xff] }
 0x151   : > { %v956_v30 = vpop.permute.xlu2 %955  ;;  %v7143_v7 = vsel %vm537_vm0, 0.0, %v566_v59  ;;  %3180 = vmatpush.bf16.msra.mxu0 %v6156_v49  ;;  %v7157_v59 = vadd.f32 %v7017_v20, %v825_v3  ;;  %v6172_v20 = vld [vmem:[#allocation7 + $0xb8] sm:$0xff] }
 0x152   : > { %v1234_v55 = vrot.slane %v1160_v33, 2  ;;  %v1235_v43 = vrot.slane %v1160_v33, 4  ;;  %v1552_v44 = vsel %vm1411_vm2, %v1160_v33, -inf  ;;  %v1089_v35 = vadd.f32 %v1057_v48, %v887_v10  ;;  %3278 = vmatpush.bf16.msra.mxu2 %v6172_v20 }
 0x153   : > { %v1553_v28 = vrot.slane %v1552_v44, 4  ;;  %v889_v21 = vadd.f32 %v857_v34, %v823_v19  ;;  %v1065_v58 = vmul.f32 %v7048_v40, %v956_v30  ;;  %v1236_v5 = vrot.slane %v1160_v33, 6 }
 0x154   : > { %v1559_v15 = vsel %vm1411_vm2, %v1234_v55, -inf  ;;  %v9825_v34 = vrot.slane %v7009_v12, 7  ;;  %v7149_v30 = vadd.f32 %v7038_v36, %v824_v61  ;;  %v7152_v19 = vsel %vm1411_vm2, %v1235_v43, -inf }
 0x155   : > { %v1554_v18 = vmax.f32 %v1552_v44, %v1553_v28  ;;  %v1560_v0 = vrot.slane %v1559_v15, 4  ;;  %v1123_v48 = vadd.f32 %v7067_v50, %v1089_v35  ;;  %v1091_v55 = vadd.f32 %v1059_v42, %v889_v21 }
 0x156   : > { %v570_v10 = vsel %vm537_vm0, %v567_v57, %v9825_v34  ;;  %6393 = vset.pattern.permute.xlu1 %v6828_v2  ;;  %v7160_v28 = vadd.f32 %v7053_v47, %v827_v27  ;;  %v1097_v44 = vadd.f32 %v1065_v58, %v6980_v53  ;;  %v9826_v36 = vrot.slane %v6951_v32, 1 }
 0x157   : > { %v691_v57 = vpop.permute.xlu1 %690  ;;  %v1555_v35 = vrot.slane %v1554_v18, 2  ;;  %v1155_v21 = vmax.f32 %v1123_v48, 0.0  ;;  %v1125_v2 = vadd.f32 %v7067_v50, %v1091_v55  ;;  %v9827_v33 = vmov 0   ;;  %v6163_v48 = vld [vmem:[#allocation7 + $0x70] sm:$0xff] }
 0x158   : > { %v7166_v43 = vsel %vm610_vm1, %v9826_v36, %v642_v17  ;;  %6396 = vset.pattern.permute.xlu2 %v9827_v33  ;;  %v9828_v42 = vrot.slane %v6990_v60, 1  ;;  %v7175_v53 = vmax.f32 %v1559_v15, %v1560_v0  ;;  %v7179_v32 = vsel %vm1411_vm2, %v1236_v5, -inf  ;;  %v6155_v5 = vld [vmem:[#allocation7 + $0x30] sm:$0xff]  ;;  %3230 = vmatpush.bf16.msra.mxu1 %v6163_v48 }
 0x159   : > { %762 = vperm.xlu2 %6396, %v570_v10   ;;  %v9829_v61 = vmov %v9825_v34  ;;  %v1219_v27 = vrot.slane %v1155_v21, 2  ;;  %v1220_v58 = vrot.slane %v1155_v21, 4  ;;  %v1221_v49 = vrot.slane %v1155_v21, 6  ;;  %v6171_v36 = vld [vmem:[#allocation7 + $0xb0] sm:$0xff]  ;;  %3181 = vmatpush.bf16.msra.mxu0 %v6155_v5 }
 0x15a   : > { %v7173_v47 = vsel %vm610_vm1, %v642_v17, %v9828_v42  ;;  %v7184_v3 = vsel %vm537_vm0, %v9829_v61, %v571_v13  ;;  %v1412_v60 = vsel %vm1411_vm2, %v1155_v21, -inf  ;;  %v1157_v0 = vmax.f32 %v1125_v2, 0.0  ;;  %3279 = vmatpush.bf16.msra.mxu2 %v6171_v36 }
 0x15b   : > { %v1413_v17 = vrot.slane %v1412_v60, 4  ;;  %v1131_v15 = vadd.f32 %v7067_v50, %v1097_v44  ;;  %v822_v34 = vmul.f32 %v6970_v46, %v691_v57  ;;  %v7189_v10 = vmax.f32 %v1554_v18, %v1555_v35 }
 0x15c   : > { %v1419_v12 = vsel %vm1411_vm2, %v1219_v27, -inf  ;;  %v1426_v13 = vsel %vm1411_vm2, %v1220_v58, -inf  ;;  %v1433_v55 = vsel %vm1411_vm2, %v1221_v49, -inf  ;;  %v1225_v44 = vrot.slane %v1157_v0, 2  ;;  %3231 = vmatpush.bf16.msra.mxu1 %v6162_v31 }
 0x15d   : > { %9830 = vst [vmem:[#allocation28_spill] sm:$0xff] %v7189_v10  ;;  %v1414_v42 = vmax.f32 %v1412_v60, %v1413_v17  ;;  %v1420_v21 = vrot.slane %v1419_v12, 4  ;;  %v1427_v20 = vrot.slane %v1426_v13, 4  ;;  %v1434_v61 = vrot.slane %v1433_v55, 4  ;;  %3182 = vmatpush.bf16.msra.mxu0 %v6154_v63 }
 0x15e   : > { %v1226_v2 = vrot.slane %v1157_v0, 4  ;;  %v1227_v57 = vrot.slane %v1157_v0, 6  ;;  %v1468_v23 = vsel %vm1411_vm2, %v1157_v0, -inf  ;;  %472 = vperm.xlu1 %6393, %v6847_v11   ;;  %v1475_v17 = vsel %vm1411_vm2, %v1225_v44, -inf }
 0x15f   : > { %v1415_v18 = vrot.slane %v1414_v42, 2  ;;  %v1421_v35 = vmax.f32 %v1419_v12, %v1420_v21  ;;  %v1428_v27 = vmax.f32 %v1426_v13, %v1427_v20  ;;  %v1435_v58 = vmax.f32 %v1433_v55, %v1434_v61  ;;  %v7196_v49 = vpop.permute.xlu1 %934  ;;  %v6170_v12 = vld [vmem:[#allocation7 + $0xa8] sm:$0xff]  ;;  %v926_v20 = vpop.permute.xlu0 %925 }
 0x160   : > { %v1469_v60 = vrot.slane %v1468_v23, 4  ;;  %v1482_v5 = vsel %vm1411_vm2, %v1226_v2, -inf  ;;  %v1489_v48 = vsel %vm1411_vm2, %v1227_v57, -inf  ;;  %v1476_v55 = vrot.slane %v1475_v17, 4  ;;  %3280 = vmatpush.bf16.msra.mxu2 %v6170_v12  ;;  %3232 = vmatpush.bf16.msra.mxu1 %v6161_v4 }
 0x161   : > { %v1416_v37 = vmax.f32 %v1414_v42, %v1415_v18  ;;  %v1422_v0 = vrot.slane %v1421_v35, 2  ;;  %v1429_v24 = vrot.slane %v1428_v27, 2  ;;  %v1436_v11 = vrot.slane %v1435_v58, 2  ;;  %758 = vperm.xlu2 %6396, %v7124_v38   ;;  %v6153_v38 = vld [vmem:[#allocation7 + $0x20] sm:$0xff] }
 0x162   : > { %v1470_v13 = vmax.f32 %v1468_v23, %v1469_v60  ;;  %v1483_v36 = vrot.slane %v1482_v5, 4  ;;  %v1490_v21 = vrot.slane %v1489_v48, 4  ;;  %v1163_v57 = vmax.f32 %v1131_v15, 0.0  ;;  %3183 = vmatpush.bf16.msra.mxu0 %v6153_v38  ;;  %v6168_v23 = vld [vmem:[#allocation7 + $0x98] sm:$0xff] }
 0x163   : > { %v1417_v61 = vrot.slane %v1416_v37, 1  ;;  %v1423_v44 = vmax.f32 %v1421_v35, %v1422_v0  ;;  %v1430_v2 = vmax.f32 %v1428_v27, %v1429_v24  ;;  %v7202_v9 = vmax.f32 %v1435_v58, %v1436_v11  ;;  %v6169_v35 = vld [vmem:[#allocation7 + $0xa0] sm:$0xff] }
 0x164   : > { %v1471_v42 = vrot.slane %v1470_v13, 2  ;;  %v1477_v18 = vmax.f32 %v1475_v17, %v1476_v55  ;;  %v7204_v62 = vmax.f32 %v1482_v5, %v1483_v36  ;;  %v888_v63 = vadd.f32 %v7046_v39, %v822_v34  ;;  %3281 = vmatpush.bf16.msra.mxu2 %v6169_v35 }
 0x165   : > { %v1058_v31 = vmul.f32 %v7048_v40, %v926_v20  ;;  %v7211_v15 = vmax.f32 %v1416_v37, %v1417_v61  ;;  %v7213_v58 = vmax.f32 %v1489_v48, %v1490_v21  ;;  %v1424_v17 = vrot.slane %v1423_v44, 1  ;;  %v733_v61 = vpop.permute.xlu2 %732 }
 0x166   : > { %v1478_v27 = vrot.slane %v1477_v18, 2  ;;  %6395 = vset.pattern.permute.xlu1 %v9827_v33  ;;  %v1431_v5 = vrot.slane %v1430_v2, 1  ;;  %v1243_v0 = vrot.slane %v1163_v57, 2  ;;  %v1244_v11 = vrot.slane %v1163_v57, 4 }
 0x167   : > { %v7216_v12 = vpop.permute.xlu1 %946  ;;  %754 = vperm.xlu1 %6395, %v7143_v7   ;;  %v7220_v34 = vmax.f32 %v1470_v13, %v1471_v42  ;;  %v1245_v48 = vrot.slane %v1163_v57, 6  ;;  %v1636_v55 = vsel %vm1411_vm2, %v1163_v57, -inf  ;;  %v1090_v20 = vadd.f32 %v1058_v31, %v888_v63  ;;  %v6152_v13 = vld [vmem:[#allocation7 + $0x18] sm:$0xff]  ;;  %v939_v37 = vpop.permute.xlu0 %938 }
 0x168   : > { %v1643_v36 = vsel %vm1411_vm2, %v1243_v0, -inf  ;;  %v1650_v21 = vsel %vm1411_vm2, %v1244_v11, -inf  ;;  %v1479_v7 = vmax.f32 %v1477_v18, %v1478_v27  ;;  %v1637_v4 = vrot.slane %v1636_v55, 4  ;;  %v6160_v42 = vld [vmem:[#allocation7 + $0x58] sm:$0xff]  ;;  %3184 = vmatpush.bf16.msra.mxu0 %v6152_v13  ;;  %3282 = vmatpush.bf16.msra.mxu2 %v6168_v23 }
 0x169   : > { %993 = vperm.xlu2 %6396, %v7166_v43   ;;  %v1644_v38 = vrot.slane %v1643_v36, 4  ;;  %v1651_v24 = vrot.slane %v1650_v21, 4  ;;  %v7227_v60 = vmax.f32 %v1423_v44, %v1424_v17  ;;  %v1657_v57 = vsel %vm1411_vm2, %v1245_v48, -inf  ;;  %3233 = vmatpush.bf16.msra.mxu1 %v6160_v42 }
 0x16a   : > { %v1124_v0 = vadd.f32 %v7067_v50, %v1090_v20  ;;  %v7232_v11 = vmax.f32 %v1430_v2, %v1431_v5  ;;  %v1638_v63 = vmax.f32 %v1636_v55, %v1637_v4  ;;  %v1658_v27 = vrot.slane %v1657_v57, 4  ;;  %v6151_v2 = vld [vmem:[#allocation7 + $0x10] sm:$0xff] }
 0x16b   : > { %v1645_v31 = vmax.f32 %v1643_v36, %v1644_v38  ;;  %v1652_v43 = vmax.f32 %v1650_v21, %v1651_v24  ;;  %v1060_v44 = vmul.f32 %v7048_v40, %v7196_v49  ;;  %v1480_v17 = vrot.slane %v1479_v7, 1  ;;  %v6159_v5 = vld [vmem:[#allocation7 + $0x50] sm:$0xff] }
 0x16c   : > { %v1156_v39 = vmax.f32 %v1124_v0, 0.0  ;;  %v1639_v48 = vrot.slane %v1638_v63, 2  ;;  %v1659_v55 = vmax.f32 %v1657_v57, %v1658_v27  ;;  %v832_v21 = vmul.f32 %v6970_v46, %v733_v61  ;;  %v6167_v38 = vld [vmem:[#allocation7 + $0x90] sm:$0xff]  ;;  %3185 = vmatpush.bf16.msra.mxu0 %v6151_v2 }
 0x16d   : > { %v1646_v35 = vrot.slane %v1645_v31, 2  ;;  %v1653_v20 = vrot.slane %v1652_v43, 2  ;;  %v1092_v57 = vadd.f32 %v1060_v44, %v7149_v30  ;;  %3234 = vmatpush.bf16.msra.mxu1 %v6159_v5  ;;  %3283 = vmatpush.bf16.msra.mxu2 %v6167_v38  ;;  %v7249_v30 = vmax.f32 %v1479_v7, %v1480_v17 }
 0x16e   : > { %v1222_v36 = vrot.slane %v1156_v39, 2  ;;  %v1223_v24 = vrot.slane %v1156_v39, 4  ;;  %v1640_v49 = vmax.f32 %v1638_v63, %v1639_v48  ;;  %v1440_v42 = vsel %vm1411_vm2, %v1156_v39, -inf  ;;  %v6150_v63 = vld [vmem:[#allocation7 + $0x8] sm:$0xff] }
 0x16f   : > { %v7238_v4 = vpop.permute.xlu1 %715  ;;  %997 = vperm.xlu1 %6395, %v7173_v47   ;;  %v1647_v13 = vmax.f32 %v1645_v31, %v1646_v35  ;;  %v1654_v23 = vmax.f32 %v1652_v43, %v1653_v20  ;;  %v1660_v0 = vrot.slane %v1659_v55, 2  ;;  %v1441_v18 = vrot.slane %v1440_v42, 4  ;;  %v6158_v31 = vld [vmem:[#allocation7 + $0x48] sm:$0xff] }
 0x170   : > { %v1447_v56 = vsel %vm1411_vm2, %v1222_v36, -inf  ;;  %v1224_v61 = vrot.slane %v1156_v39, 6  ;;  %v7246_v47 = vsel %vm1411_vm2, %v1223_v24, -inf  ;;  %v1061_v35 = vmul.f32 %v7048_v40, %v939_v37  ;;  %v969_v36 = vpop.permute.xlu2 %968  ;;  %3186 = vmatpush.bf16.msra.mxu0 %v6150_v63 }
 0x171   : > { %6398 = vset.pattern.permute.xlu2 %v6832_v6  ;;  %v1448_v27 = vrot.slane %v1447_v56, 4  ;;  %v1641_v43 = vrot.slane %v1640_v49, 1  ;;  %v1648_v48 = vrot.slane %v1647_v13, 1  ;;  %v1655_v20 = vrot.slane %v1654_v23, 1  ;;  %3235 = vmatpush.bf16.msra.mxu1 %v6158_v31 }
 0x172   : > { %v1442_v2 = vmax.f32 %v1440_v42, %v1441_v18  ;;  %v9831_v6 = vrot.slane %v7204_v62, 2  ;;  %v7256_v44 = vmax.f32 %v1659_v55, %v1660_v0  ;;  %v898_v37 = vadd.f32 %v7089_v52, %v832_v21  ;;  %3284 = vmatpush.bf16.msra.mxu2 %v6166_v29  ;;  %v6149_v52 = vld [vmem:[#allocation7] sm:$0xff]  ;;  %v952_v29 = vpop.permute.xlu0 %951 }
 0x173   : > { %v7259_v24 = vmax.f32 %v1447_v56, %v1448_v27  ;;  %v1126_v18 = vadd.f32 %v7067_v50, %v1092_v57  ;;  %v7264_v7 = vsel %vm1411_vm2, %v1224_v61, -inf  ;;  %v1093_v17 = vadd.f32 %v1061_v35, %v7157_v59  ;;  %v6157_v21 = vld [vmem:[#allocation7 + $0x40] sm:$0xff] }
 0x174   : > { %v7254_v39 = vmax.f32 %v7204_v62, %v9831_v6  ;;  %9832 = vst [vmem:[#allocation29_spill] sm:$0xff] %v7256_v44  ;;  %v1443_v5 = vrot.slane %v1442_v2, 2  ;;  %v1068_v62 = vmul.f32 %v7048_v40, %v969_v36  ;;  %v1063_v55 = vmul.f32 %v7048_v40, %v7216_v12  ;;  %v6165_v61 = vld [vmem:[#allocation7 + $0x80] sm:$0xff]  ;;  %3187 = vmatpush.bf16.msra.mxu0 %v6149_v52 }
 0x175   : > { %v7270_v56 = vmax.f32 %v1640_v49, %v1641_v43  ;;  %v7272_v42 = vmax.f32 %v1647_v13, %v1648_v48  ;;  %v7274_v0 = vmax.f32 %v1654_v23, %v1655_v20  ;;  %v1158_v57 = vmax.f32 %v1126_v18, 0.0  ;;  %3236 = vmatpush.bf16.msra.mxu1 %v6157_v21 }
 0x176   : > { %v7277_v27 = vmax.f32 %v1442_v2, %v1443_v5  ;;  %v1127_v59 = vadd.f32 %v7067_v50, %v1093_v17  ;;  %v1100_v35 = vadd.f32 %v1068_v62, %v898_v37  ;;  %v1095_v12 = vadd.f32 %v1063_v55, %v7160_v28  ;;  %3285 = vmatpush.bf16.msra.mxu2 %v6165_v61 }
 0x177   : > { %9833 = vst [vmem:[#allocation30_spill] sm:$0xff] %v7270_v56  ;;  %766 = vperm.xlu1 %6395, %v7184_v3   ;;  %v729_v63 = vpop.permute.xlu1 %728  ;;  %v1228_v31 = vrot.slane %v1158_v57, 2  ;;  %v1229_v3 = vrot.slane %v1158_v57, 4  ;;  %v1496_v43 = vsel %vm1411_vm2, %v1158_v57, -inf  ;;  %v7288_v2 = vmul.f32 %v7048_v40, %v952_v29 }
 0x178   : > { %9834 = vst [vmem:[#allocation31_spill] sm:$0xff] %v7272_v42  ;;  %v1159_v48 = vmax.f32 %v1127_v59, 0.0  ;;  %v1134_v20 = vadd.f32 %v7067_v50, %v1100_v35  ;;  %v1497_v28 = vrot.slane %v1496_v43, 4  ;;  %v7292_v36 = vmul.f32 %v6970_v46, %v7238_v4 }
 0x179   : > { %9835 = vst [vmem:[#allocation32_spill] sm:$0xff] %v7274_v0  ;;  %491 = vperm.xlu2 %6398, %v6858_v14   ;;  %v7295_v6 = vmul.f32 %v6970_v46, %v729_v63  ;;  %v1230_v5 = vrot.slane %v1158_v57, 6  ;;  %v1129_v17 = vadd.f32 %v7067_v50, %v1095_v12  ;;  %v1503_v62 = vsel %vm1411_vm2, %v1228_v31, -inf }
 0x17a   : > { %v1231_v18 = vrot.slane %v1159_v48, 2  ;;  %v1232_v55 = vrot.slane %v1159_v48, 4  ;;  %v1233_v52 = vrot.slane %v1159_v48, 6  ;;  %v1524_v21 = vsel %vm1411_vm2, %v1159_v48, -inf }
 0x17b   : > { %v7302_v61 = vsel %vm1411_vm2, %v1229_v3, -inf  ;;  %v1525_v4 = vrot.slane %v1524_v21, 4  ;;  %v7305_v35 = vmax.f32 %v1134_v20, 0.0  ;;  %v1498_v29 = vmax.f32 %v1496_v43, %v1497_v28 }
 0x17c   : > { %v1531_v59 = vsel %vm1411_vm2, %v1231_v18, -inf  ;;  %v1538_v57 = vsel %vm1411_vm2, %v1232_v55, -inf  ;;  %v1545_v12 = vsel %vm1411_vm2, %v1233_v52, -inf  ;;  %v1504_v3 = vrot.slane %v1503_v62, 4 }
 0x17d   : > { %9836 = vst [vmem:[#allocation33_spill] sm:$0xff] %v7305_v35  ;;  %v1532_v63 = vrot.slane %v1531_v59, 4  ;;  %v1526_v31 = vmax.f32 %v1524_v21, %v1525_v4  ;;  %v1539_v49 = vrot.slane %v1538_v57, 4  ;;  %v1546_v23 = vrot.slane %v1545_v12, 4 }
 0x17e   : > { %v1252_v48 = vrot.slane %v7305_v35, 2  ;;  %v7312_v37 = vsel %vm1411_vm2, %v1230_v5, -inf  ;;  %v1253_v20 = vrot.slane %v7305_v35, 4  ;;  %v1499_v52 = vrot.slane %v1498_v29, 2  ;;  %v7320_v5 = vpop.permute.xlu2 %447 }
 0x17f   : > { %6397 = vset.pattern.permute.xlu1 %v6823_v1  ;;  %v1533_v18 = vmax.f32 %v1531_v59, %v1532_v63  ;;  %v1527_v43 = vrot.slane %v1526_v31, 2  ;;  %v1540_v28 = vmax.f32 %v1538_v57, %v1539_v49  ;;  %v1547_v55 = vmax.f32 %v1545_v12, %v1546_v23 }
 0x180   : > { %v1720_v1 = vsel %vm1411_vm2, %v7305_v35, -inf  ;;  %v1727_v38 = vsel %vm1411_vm2, %v1252_v48, -inf  ;;  %v7323_v49 = vsel %vm1411_vm2, %v1253_v20, -inf  ;;  %v1161_v23 = vmax.f32 %v1129_v17, 0.0 }
 0x181   : > { %6401 = vset.pattern.permute.xlu2 %v9827_v33  ;;  %v1534_v21 = vrot.slane %v1533_v18, 2  ;;  %v1721_v4 = vrot.slane %v1720_v1, 4  ;;  %v1528_v59 = vmax.f32 %v1526_v31, %v1527_v43  ;;  %v1541_v63 = vrot.slane %v1540_v28, 2  ;;  %9837 = vst [vmem:[#allocation34_spill] sm:$0xff] %v7323_v49 }
 0x182   : > { %771 = vperm.xlu2 %6401, %v7085_v41   ;;  %v1548_v13 = vrot.slane %v1547_v55, 2  ;;  %v1728_v56 = vrot.slane %v1727_v38, 4  ;;  %v7325_v57 = vmax.f32 %v1503_v62, %v1504_v3  ;;  %v7329_v48 = vmax.f32 %v1498_v29, %v1499_v52 }
 0x183   : > { %v1535_v0 = vmax.f32 %v1533_v18, %v1534_v21  ;;  %v1722_v42 = vmax.f32 %v1720_v1, %v1721_v4  ;;  %v1529_v44 = vrot.slane %v1528_v59, 1  ;;  %v1542_v10 = vmax.f32 %v1540_v28, %v1541_v63 }
 0x184   : > { %v1237_v31 = vrot.slane %v1161_v23, 2  ;;  %v1238_v43 = vrot.slane %v1161_v23, 4  ;;  %v7332_v18 = vmax.f32 %v1547_v55, %v1548_v13  ;;  %v7335_v1 = vmax.f32 %v1727_v38, %v1728_v56 }
 0x185   : > { %v1536_v62 = vrot.slane %v1535_v0, 1  ;;  %v1723_v3 = vrot.slane %v1722_v42, 2  ;;  %v1239_v21 = vrot.slane %v1161_v23, 6  ;;  %v1580_v4 = vsel %vm1411_vm2, %v1161_v23, -inf  ;;  %v964_v23 = vpop.permute.xlu0 %963 }
 0x186   : > { %v7339_v29 = vmax.f32 %v1528_v59, %v1529_v44  ;;  %v1581_v28 = vrot.slane %v1580_v4, 4  ;;  %v1587_v52 = vsel %vm1411_vm2, %v1237_v31, -inf  ;;  %v1594_v63 = vsel %vm1411_vm2, %v1238_v43, -inf  ;;  %v738_v43 = vpop.permute.xlu2 %737 }
 0x187   : > { %485 = vperm.xlu1 %6397, %v6858_v14   ;;  %v1543_v13 = vrot.slane %v1542_v10, 1  ;;  %v1588_v55 = vrot.slane %v1587_v52, 4  ;;  %v1595_v12 = vrot.slane %v1594_v63, 4  ;;  %v1601_v38 = vsel %vm1411_vm2, %v1239_v21, -inf }
 0x188   : > { %9838 = vst [vmem:[#allocation35_spill] sm:$0xff] %v7339_v29  ;;  %v1582_v20 = vmax.f32 %v1580_v4, %v1581_v28  ;;  %v1602_v17 = vrot.slane %v1601_v38, 4  ;;  %v894_v41 = vadd.f32 %v7030_v16, %v7292_v36  ;;  %v7347_v44 = vmax.f32 %v1722_v42, %v1723_v3  ;;  %v725_v4 = vpop.permute.xlu1 %724 }
 0x189   : > { %v1589_v31 = vmax.f32 %v1587_v52, %v1588_v55  ;;  %v1596_v35 = vmax.f32 %v1594_v63, %v1595_v12  ;;  %v897_v21 = vadd.f32 %v7042_v22, %v7295_v6  ;;  %v7353_v28 = vmax.f32 %v1535_v0, %v1536_v62 }
 0x18a   : > { %v1583_v49 = vrot.slane %v1582_v20, 2  ;;  %v1603_v29 = vmax.f32 %v1601_v38, %v1602_v17  ;;  %v1096_v51 = vadd.f32 %v7288_v2, %v894_v41  ;;  %v1067_v42 = vmul.f32 %v7048_v40, %v964_v23 }
 0x18b   : > { %v1590_v56 = vrot.slane %v1589_v31, 2  ;;  %v1597_v16 = vrot.slane %v1596_v35, 2  ;;  %v833_v17 = vmul.f32 %v6970_v46, %v738_v43  ;;  %v830_v22 = vmul.f32 %v6970_v46, %v725_v4 }
 0x18c   : > { %v1584_v36 = vmax.f32 %v1582_v20, %v1583_v49  ;;  %v1604_v3 = vrot.slane %v1603_v29, 2  ;;  %v1130_v12 = vadd.f32 %v7067_v50, %v1096_v51  ;;  %v1099_v41 = vadd.f32 %v1067_v42, %v897_v21 }
 0x18d   : > { %v1591_v52 = vmax.f32 %v1589_v31, %v1590_v56  ;;  %v7359_v2 = vmax.f32 %v1596_v35, %v1597_v16  ;;  %v7362_v0 = vmax.f32 %v1542_v10, %v1543_v13  ;;  %v7371_v51 = vmul.f32 %v6968_v45, %v7320_v5 }
 0x18e   : > { %v1585_v62 = vrot.slane %v1584_v36, 1  ;;  %v7365_v40 = vmax.f32 %v1130_v12, 0.0  ;;  %v1133_v35 = vadd.f32 %v7067_v50, %v1099_v41  ;;  %v7374_v63 = vmax.f32 %v1603_v29, %v1604_v3 }
 0x18f   : > { %6400 = vset.pattern.permute.xlu1 %v6835_v8  ;;  %v1592_v20 = vrot.slane %v1591_v52, 1  ;;  %v7378_v10 = vadd.f32 %v7057_v26, %v833_v17  ;;  %v1599_v13 = vrot.slane %v7359_v2, 1  ;;  %v7382_v38 = vadd.f32 %v7076_v25, %v830_v22 }
 0x190   : > { %v1240_v46 = vrot.slane %v7365_v40, 2  ;;  %v1165_v55 = vmax.f32 %v1133_v35, 0.0  ;;  %v9839_v56 = vrot.slane %v7202_v9, 1  ;;  %v7389_v50 = vmax.f32 %v1584_v36, %v1585_v62 }
 0x191   : > { %v1608_v29 = vsel %vm1411_vm2, %v7365_v40, -inf  ;;  %v9840_v23 = vrot.slane %v7259_v24, 2  ;;  %v9841_v31 = vrot.slane %v7246_v47, 4  ;;  %v1241_v25 = vrot.slane %v7365_v40, 4 }
 0x192   : > { %v7387_v45 = vmax.f32 %v7202_v9, %v9839_v56  ;;  %v1249_v21 = vrot.slane %v1165_v55, 2  ;;  %v1250_v4 = vrot.slane %v1165_v55, 4  ;;  %v1251_v16 = vrot.slane %v1165_v55, 6 }
 0x193   : > { %v1451_v26 = vmax.f32 %v7259_v24, %v9840_v23  ;;  %v1456_v43 = vmax.f32 %v7246_v47, %v9841_v31  ;;  %v7401_v9 = vmax.f32 %v1591_v52, %v1592_v20  ;;  %v1242_v42 = vrot.slane %v7365_v40, 6 }
 0x194   : > { %v7405_v36 = vsel %vm1411_vm2, %v1240_v46, -inf  ;;  %v1609_v24 = vrot.slane %v1608_v29, 4  ;;  %v1699_v12 = vsel %vm1411_vm2, %v1249_v21, -inf  ;;  %v1706_v47 = vsel %vm1411_vm2, %v1250_v4, -inf }
 0x195   : > { %v1457_v3 = vrot.slane %v1456_v43, 2  ;;  %v1713_v17 = vsel %vm1411_vm2, %v1251_v16, -inf  ;;  %v1700_v41 = vrot.slane %v1699_v12, 4  ;;  %v1707_v22 = vrot.slane %v1706_v47, 4 }
 0x196   : > { %v1714_v62 = vrot.slane %v1713_v17, 4  ;;  %v1452_v35 = vrot.slane %v1451_v26, 1  ;;  %v9842_v52 = vrot.slane %v7277_v27, 1  ;;  %v9843_v56 = vrot.slane %v7264_v7, 4 }
 0x197   : > { %503 = vperm.xlu1 %6400, %v6858_v14   ;;  %v1616_v14 = vrot.slane %v7405_v36, 4  ;;  %v1458_v46 = vmax.f32 %v1456_v43, %v1457_v3  ;;  %v7419_v31 = vmax.f32 %v1699_v12, %v1700_v41  ;;  %v1708_v21 = vmax.f32 %v1706_v47, %v1707_v22 }
 0x198   : > { %v7414_v20 = vmax.f32 %v7277_v27, %v9842_v52  ;;  %v1463_v23 = vmax.f32 %v7264_v7, %v9843_v56  ;;  %v7421_v4 = vmax.f32 %v1713_v17, %v1714_v62  ;;  %v1487_v16 = vrot.slane %v7254_v39, 1 }
 0x199   : > { %v1459_v49 = vrot.slane %v1458_v46, 1  ;;  %v9844_v59 = vrot.slane %v7213_v58, 2  ;;  %v1501_v27 = vrot.slane %v7329_v48, 1  ;;  %v7428_v43 = vmax.f32 %v1608_v29, %v1609_v24 }
 0x19a   : > { %v1464_v6 = vrot.slane %v1463_v23, 2  ;;  %v7431_v3 = vsel %vm1411_vm2, %v1165_v55, -inf  ;;  %v1709_v7 = vrot.slane %v1708_v21, 2  ;;  %v7433_v12 = vmax.f32 %v1451_v26, %v1452_v35 }
 0x19b   : > { %v1493_v8 = vmax.f32 %v7213_v58, %v9844_v59  ;;  %v1702_v47 = vrot.slane %v7419_v31, 2  ;;  %v9845_v41 = vrot.slane %v7220_v34, 1  ;;  %v1716_v58 = vrot.slane %v7421_v4, 2 }
 0x19c   : > { %v1465_v17 = vmax.f32 %v1463_v23, %v1464_v6  ;;  %v7443_v59 = vmax.f32 %v1458_v46, %v1459_v49  ;;  %v1488_v55 = vmax.f32 %v7254_v39, %v1487_v16  ;;  %v1506_v29 = vrot.slane %v7325_v57, 2 }
 0x19d   : > { %v7439_v22 = vmax.f32 %v7220_v34, %v9845_v41  ;;  %v1494_v62 = vrot.slane %v1493_v8, 1  ;;  %v7448_v24 = vmax.f32 %v7329_v48, %v1501_v27  ;;  %v9846_v6 = vrot.slane %v7302_v61, 4 }
 0x19e   : > { %v1466_v26 = vrot.slane %v1465_v17, 1  ;;  %v9847_v35 = vrot.slane %v7312_v37, 4  ;;  %v7456_v52 = vmax.f32 %v1708_v21, %v1709_v7  ;;  %v1507_v46 = vmax.f32 %v7325_v57, %v1506_v29 }
 0x19f   : > { %6402 = vset.pattern.permute.xlu1 %v9827_v33  ;;  %v1512_v34 = vmax.f32 %v7302_v61, %v9846_v6  ;;  %v1495_v49 = vmax.f32 %v1493_v8, %v1494_v62  ;;  %v2430_v48 = vsel %vm2429_vm3, %v7227_v60, %v7211_v15  ;;  %v2707_v6 = vsel %vm2441_vm9, %v7249_v30, %v7439_v22 }
 0x1a0   : > { %v1519_v33 = vmax.f32 %v7312_v37, %v9847_v35  ;;  %v1467_v39 = vmax.f32 %v1465_v17, %v1466_v26  ;;  %v1508_v16 = vrot.slane %v1507_v46, 1  ;;  %v2432_v37 = vsel %vm2431_vm4, %v7232_v11, %v2430_v48 }
 0x1a1   : > { %v1513_v56 = vrot.slane %v1512_v34, 2  ;;  %v2434_v57 = vsel %vm2433_vm5, %v7387_v45, %v2432_v37  ;;  %v2700_v26 = vsel %vm2441_vm9, %v7227_v60, %v7211_v15  ;;  %v2708_v15 = vsel %vm2429_vm3, %v1488_v55, %v2707_v6 }
 0x1a2   : > { %v1520_v23 = vrot.slane %v1519_v33, 2  ;;  %v1509_v8 = vmax.f32 %v1507_v46, %v1508_v16  ;;  %v2436_v17 = vsel %vm2435_vm6, %v7414_v20, %v2434_v57  ;;  %v2442_v41 = vsel %vm2441_vm9, %v7439_v22, %v1467_v39  ;;  %v746_v57 = vpop.permute.xlu0 %745 }
 0x1a3   : > { %v1514_v61 = vmax.f32 %v1512_v34, %v1513_v56  ;;  %v2438_v62 = vsel %vm2437_vm7, %v7433_v12, %v2436_v17  ;;  %v2443_v29 = vsel %vm2429_vm3, %v7249_v30, %v2442_v41  ;;  %v2701_v48 = vsel %vm2429_vm3, %v7232_v11, %v2700_v26 }
 0x1a4   : > { %v1521_v27 = vmax.f32 %v1519_v33, %v1520_v23  ;;  %v2440_v33 = vsel %vm2439_vm8, %v7443_v59, %v2438_v62  ;;  %v2444_v46 = vsel %vm2431_vm4, %v1488_v55, %v2443_v29  ;;  %v2572_v37 = vsel %vm2441_vm9, %v7232_v11, %v7227_v60  ;;  %v981_v62 = vpop.permute.xlu2 %980 }
 0x1a5   : > { %v1515_v21 = vrot.slane %v1514_v61, 1  ;;  %v2445_v56 = vsel %vm2433_vm5, %v1495_v49, %v2444_v46  ;;  %v2556_v23 = vsel %vm537_vm0, 0.0, %v2440_v33  ;;  %v2573_v41 = vsel %vm2429_vm3, %v7387_v45, %v2572_v37 }
 0x1a6   : > { %v1522_v7 = vrot.slane %v1521_v27, 1  ;;  %v2446_v16 = vsel %vm2435_vm6, %v7448_v24, %v2445_v56  ;;  %v2574_v11 = vsel %vm2431_vm4, %v7414_v20, %v2573_v41 }
 0x1a7   : > { %v1516_v34 = vmax.f32 %v1514_v61, %v1515_v21  ;;  %v2702_v61 = vsel %vm2431_vm4, %v7387_v45, %v2701_v48  ;;  %v2447_v21 = vsel %vm2437_vm7, %v1509_v8, %v2446_v16  ;;  %v2575_v46 = vsel %vm2433_vm5, %v7433_v12, %v2574_v11 }
 0x1a8   : > { %v1523_v35 = vmax.f32 %v1521_v27, %v1522_v7  ;;  %v2709_v27 = vsel %vm2431_vm4, %v1495_v49, %v2708_v15  ;;  %v2703_v7 = vsel %vm2433_vm5, %v7414_v20, %v2702_v61  ;;  %v2579_v45 = vsel %vm2441_vm9, %v1488_v55, %v7249_v30 }
 0x1a9   : > { %v2710_v17 = vsel %vm2433_vm5, %v7448_v24, %v2709_v27  ;;  %v2448_v29 = vsel %vm2439_vm8, %v1516_v34, %v2447_v21  ;;  %v2704_v26 = vsel %vm2435_vm6, %v7433_v12, %v2703_v7  ;;  %v2576_v15 = vsel %vm2435_vm6, %v7443_v59, %v2575_v46  ;;  %v960_v12 = vpop.permute.xlu1 %959  ;;  %v7527_v21 = vld [vmem:[#allocation5] ss:$0 sm:$0xff] }
 0x1aa   : > { %v2711_v60 = vsel %vm2435_vm6, %v1509_v8, %v2710_v17  ;;  %v2705_v6 = vsel %vm2437_vm7, %v7443_v59, %v2704_v26  ;;  %v2580_v20 = vsel %vm2429_vm3, %v1495_v49, %v2579_v45  ;;  %v2577_v27 = vsel %vm2437_vm7, %v1467_v39, %v2576_v15  ;;  %v7530_v59 = vld [vmem:[#allocation5 + $0x2] ss:$0 sm:$0xff] }
 0x1ab   : > { %v2712_v33 = vsel %vm2437_vm7, %v1516_v34, %v2711_v60  ;;  %v2706_v56 = vsel %vm2439_vm8, %v1467_v39, %v2705_v6  ;;  %v2581_v37 = vsel %vm2431_vm4, %v7448_v24, %v2580_v20  ;;  %v2578_v30 = vsel %vm2439_vm8, %v7439_v22, %v2577_v27 }
 0x1ac   : > { %v2713_v48 = vsel %vm2439_vm8, %v1523_v35, %v2712_v33  ;;  %v2828_v16 = vpack.c.bf16 %v2706_v56, %v2556_v23  ;;  %v2582_v55 = vsel %vm2433_vm5, %v1509_v8, %v2581_v37  ;;  %v835_v7 = vmul.f32 %v7527_v21, %v746_v57  ;;  %v750_v45 = vpop.permute.xlu2 %749 }
 0x1ad   : > { %v2830_v61 = vpack.c.bf16 %v2713_v48, %v2448_v29  ;;  %v1071_v49 = vmul.f32 %v7530_v59, %v981_v62  ;;  %v7536_v24 = vmax.f32 %v7421_v4, %v1716_v58  ;;  %v2583_v22 = vsel %vm2435_vm6, %v1516_v34, %v2582_v55  ;;  %v977_v4 = vpop.permute.xlu0 %976  ;;  %v7553_v48 = vld [vmem:[#allocation5 + $0x3] ss:$0 sm:$0xff]  ;;  %v9852_v34 = vld [vmem:[#allocation22_spill] sm:$0xff] }
 0x1ae   : > { %v2940_v23 = vunpack.c.l.b16 %v2828_v16  ;;  %v2941_v39 = vunpack.c.h.b16 %v2828_v16  ;;  %v901_v8 = vadd.f32 %v7095_v54, %v835_v7  ;;  %v1066_v29 = vmul.f32 %v7530_v59, %v960_v12 }
 0x1af   : > { %v2943_v17 = vunpack.c.l.b16 %v2830_v61  ;;  %v2944_v41 = vunpack.c.h.b16 %v2830_v61  ;;  %v2584_v60 = vsel %vm2437_vm7, %v1523_v35, %v2583_v22  ;;  %v2829_v62 = vpack.c.bf16 %v2578_v30, %v2578_v30 }
 0x1b0   : > { %v1693_v11 = vrot.slane %v7431_v3, 4  ;;  %v2692_v6 = vsel %vm610_vm1, %v2584_v60, 0.0  ;;  %v1103_v33 = vadd.f32 %v1071_v49, %v901_v8  ;;  %v1098_v46 = vadd.f32 %v1066_v29, %v7382_v38 }
 0x1b1   : > { %v2988_v57 = vpack.c.b16 %v2943_v17, %v2940_v23  ;;  %v2989_v26 = vpack.c.b16 %v2944_v41, %v2941_v39  ;;  %v1611_v58 = vrot.slane %v7428_v43, 2  ;;  %v7549_v54 = vmax.f32 %v7419_v31, %v1702_v47 }
 0x1b2   : > { %v2831_v35 = vpack.c.bf16 %v2692_v6, %v2692_v6  ;;  %v1137_v38 = vadd.f32 %v7553_v48, %v1103_v33  ;;  %v1132_v15 = vadd.f32 %v7553_v48, %v1098_v46  ;;  %v9848_v20 = vrot.slane %v7175_v53, 2 }
 0x1b3   : > { %3188 = vmatmul.bf16.vlgmr.msra.gmra.mxu0 %v2988_v57  ;;  %3237 = vmatmul.bf16.vlgmr.msra.gmra.mxu1 %v2989_v26  ;;  %v2942_v31 = vunpack.c.l.b16 %v2829_v62  ;;  %v7561_v61 = vmul.f32 %v7530_v59, %v977_v4  ;;  %v9849_v27 = vrot.slane %v7152_v19, 4  ;;  %v836_v55 = vmul.f32 %v7527_v21, %v750_v45 }
 0x1b4   : > { %v1563_v16 = vmax.f32 %v7175_v53, %v9848_v20  ;;  %v2945_v47 = vunpack.c.l.b16 %v2831_v35  ;;  %v1169_v12 = vmax.f32 %v1137_v38, 0.0  ;;  %v1164_v30 = vmax.f32 %v1132_v15, 0.0 }
 0x1b5   : > { %v1568_v37 = vmax.f32 %v7152_v19, %v9849_v27  ;;  %v1606_v7 = vrot.slane %v7374_v63, 1  ;;  %v9850_v53 = vrot.slane %v7179_v32, 4  ;;  %v9851_v56 = vrot.slane %v7332_v18, 1 }
 0x1b6   : > { %v2990_v49 = vpack.c.b16 %v2945_v47, %v2942_v31  ;;  %v1564_v23 = vrot.slane %v1563_v16, 1  ;;  %v1261_v41 = vrot.slane %v1169_v12, 2  ;;  %v1262_v22 = vrot.slane %v1169_v12, 4 }
 0x1b7   : > { %v1569_v17 = vrot.slane %v1568_v37, 2  ;;  %v1575_v39 = vmax.f32 %v7179_v32, %v9850_v53  ;;  %v1263_v8 = vrot.slane %v1169_v12, 6  ;;  %v1804_v29 = vsel %vm1411_vm2, %v1169_v12, -inf }
 0x1b8   : > { %3286 = vmatmul.bf16.vlgmr.msra.gmra.mxu2 %v2990_v49  ;;  %v1805_v19 = vrot.slane %v1804_v29, 4  ;;  %v1246_v57 = vrot.slane %v1164_v30, 2  ;;  %v1247_v26 = vrot.slane %v1164_v30, 4  ;;  %v1248_v60 = vrot.slane %v1164_v30, 6 }
 0x1b9   : > { %v1811_v62 = vsel %vm1411_vm2, %v1261_v41, -inf  ;;  %v1818_v6 = vsel %vm1411_vm2, %v1262_v22, -inf  ;;  %v1825_v33 = vsel %vm1411_vm2, %v1263_v8, -inf  ;;  %v1664_v46 = vsel %vm1411_vm2, %v1164_v30, -inf }
 0x1ba   : > { %v1806_v4 = vmax.f32 %v1804_v29, %v1805_v19  ;;  %v1812_v32 = vrot.slane %v1811_v62, 4  ;;  %v1819_v35 = vrot.slane %v1818_v6, 4  ;;  %v1826_v45 = vrot.slane %v1825_v33, 4 }
 0x1bb   : > { %v1665_v38 = vrot.slane %v1664_v46, 4  ;;  %v1671_v15 = vsel %vm1411_vm2, %v1246_v57, -inf  ;;  %v1678_v20 = vsel %vm1411_vm2, %v1247_v26, -inf  ;;  %v1576_v31 = vrot.slane %v1575_v39, 2 }
 0x1bc   : > { %v1807_v47 = vrot.slane %v1806_v4, 2  ;;  %v1813_v27 = vmax.f32 %v1811_v62, %v1812_v32  ;;  %v1820_v12 = vmax.f32 %v1818_v6, %v1819_v35  ;;  %v1827_v49 = vmax.f32 %v1825_v33, %v1826_v45  ;;  %v9853_v6 = vld [vmem:[#allocation28_spill] sm:$0xff] }
 0x1bd   : > { %v1666_v53 = vmax.f32 %v1664_v46, %v1665_v38  ;;  %v1672_v41 = vrot.slane %v1671_v15, 4  ;;  %v1679_v22 = vrot.slane %v1678_v20, 4  ;;  %v7579_v8 = vsel %vm1411_vm2, %v1248_v60, -inf }
 0x1be   : > { %v7581_v30 = vmax.f32 %v1806_v4, %v1807_v47  ;;  %v1814_v29 = vrot.slane %v1813_v27, 2  ;;  %v1821_v19 = vrot.slane %v1820_v12, 2  ;;  %v7586_v57 = vmax.f32 %v7332_v18, %v9851_v56 }
 0x1bf   : > { %v1828_v26 = vrot.slane %v1827_v49, 2  ;;  %v7589_v62 = vadd.f32 %v9852_v34, %v836_v55  ;;  %v9854_v33 = vrot.slane %v9853_v6, 1  ;;  %v7599_v60 = vmax.f32 %v7359_v2, %v1599_v13 }
 0x1c0   : > { %v1667_v4 = vrot.slane %v1666_v53, 2  ;;  %v7601_v32 = vmax.f32 %v1671_v15, %v1672_v41  ;;  %v1686_v18 = vrot.slane %v7579_v8, 4  ;;  %v7605_v56 = vmax.f32 %v7374_v63, %v1606_v7 }
 0x1c1   : > { %v7594_v46 = vmax.f32 %v9853_v6, %v9854_v33  ;;  %v7607_v34 = vmax.f32 %v1678_v20, %v1679_v22  ;;  %v7609_v55 = vmax.f32 %v1563_v16, %v1564_v23  ;;  %v1570_v35 = vmax.f32 %v1568_v37, %v1569_v17 }
 0x1c2   : > { %v1577_v45 = vmax.f32 %v1575_v39, %v1576_v31  ;;  %v1809_v38 = vrot.slane %v7581_v30, 1  ;;  %v7612_v47 = vmax.f32 %v1813_v27, %v1814_v29  ;;  %v7614_v2 = vmax.f32 %v1820_v12, %v1821_v19 }
 0x1c3   : > { %v1612_v13 = vmax.f32 %v7428_v43, %v1611_v58  ;;  %v7619_v15 = vmax.f32 %v1827_v49, %v1828_v26  ;;  %v1571_v63 = vrot.slane %v1570_v35, 1  ;;  %v1617_v16 = vmax.f32 %v7405_v36, %v1616_v14  ;;  %v9855_v49 = vld [vmem:[#allocation35_spill] sm:$0xff] }
 0x1c4   : > { %v1578_v7 = vrot.slane %v1577_v45, 1  ;;  %v7624_v37 = vmax.f32 %v1666_v53, %v1667_v4  ;;  %v1622_v17 = vsel %vm1411_vm2, %v1241_v25, -inf  ;;  %v1629_v39 = vsel %vm1411_vm2, %v1242_v42, -inf }
 0x1c5   : > { %v1613_v23 = vrot.slane %v1612_v13, 1  ;;  %v1572_v43 = vmax.f32 %v1570_v35, %v1571_v63  ;;  %v1618_v20 = vrot.slane %v1617_v16, 2  ;;  %v1623_v31 = vrot.slane %v1622_v17, 4 }
 0x1c6   : > { %v1579_v58 = vmax.f32 %v1577_v45, %v1578_v7  ;;  %v1630_v12 = vrot.slane %v1629_v39, 4  ;;  %v2449_v36 = vsel %vm2429_vm3, %v7353_v28, %v9855_v49  ;;  %v2714_v14 = vsel %vm2441_vm9, %v7353_v28, %v9855_v49 }
 0x1c7   : > { %v1614_v27 = vmax.f32 %v1612_v13, %v1613_v23  ;;  %v1619_v53 = vmax.f32 %v1617_v16, %v1618_v20  ;;  %v1624_v25 = vmax.f32 %v1622_v17, %v1623_v31  ;;  %v2450_v40 = vsel %vm2431_vm4, %v7362_v0, %v2449_v36 }
 0x1c8   : > { %v2455_v42 = vsel %vm2441_vm9, %v7389_v50, %v1579_v58  ;;  %v1631_v41 = vmax.f32 %v1629_v39, %v1630_v12  ;;  %v2451_v22 = vsel %vm2433_vm5, %v7586_v57, %v2450_v40  ;;  %v2715_v19 = vsel %vm2429_vm3, %v7362_v0, %v2714_v14  ;;  %v7660_v39 = vpop.permute.xlu1 %441 }
 0x1c9   : > { %v2456_v29 = vsel %vm2429_vm3, %v7401_v9, %v2455_v42  ;;  %v1620_v26 = vrot.slane %v1619_v53, 1  ;;  %v1625_v6 = vrot.slane %v1624_v25, 2  ;;  %v2452_v33 = vsel %vm2435_vm6, %v7594_v46, %v2451_v22 }
 0x1ca   : > { %v2457_v4 = vsel %vm2431_vm4, %v7599_v60, %v2456_v29  ;;  %v1632_v35 = vrot.slane %v1631_v41, 2  ;;  %v2453_v45 = vsel %vm2437_vm7, %v7609_v55, %v2452_v33  ;;  %v2716_v63 = vsel %vm2431_vm4, %v7586_v57, %v2715_v19 }
 0x1cb   : > { %v2458_v13 = vsel %vm2433_vm5, %v7605_v56, %v2457_v4  ;;  %v1621_v7 = vmax.f32 %v1619_v53, %v1620_v26  ;;  %v1626_v16 = vmax.f32 %v1624_v25, %v1625_v6  ;;  %v2454_v23 = vsel %vm2439_vm8, %v1572_v43, %v2453_v45 }
 0x1cc   : > { %v2459_v17 = vsel %vm2435_vm6, %v1614_v27, %v2458_v13  ;;  %v1633_v20 = vmax.f32 %v1631_v41, %v1632_v35  ;;  %v2557_v31 = vsel %vm537_vm0, 0.0, %v2454_v23  ;;  %v2717_v12 = vsel %vm2433_vm5, %v7594_v46, %v2716_v63 }
 0x1cd   : > { %v2721_v49 = vsel %vm2441_vm9, %v7401_v9, %v7389_v50  ;;  %v1627_v36 = vrot.slane %v1626_v16, 1  ;;  %v2460_v14 = vsel %vm2437_vm7, %v1621_v7, %v2459_v17  ;;  %v2718_v53 = vsel %vm2435_vm6, %v7609_v55, %v2717_v12 }
 0x1ce   : > { %v2722_v25 = vsel %vm2429_vm3, %v7599_v60, %v2721_v49  ;;  %v1634_v40 = vrot.slane %v1633_v20, 1  ;;  %v2719_v42 = vsel %vm2437_vm7, %v1572_v43, %v2718_v53  ;;  %v2585_v22 = vsel %vm2441_vm9, %v7362_v0, %v7353_v28 }
 0x1cf   : > { %v2723_v41 = vsel %vm2431_vm4, %v7605_v56, %v2722_v25  ;;  %v1628_v29 = vmax.f32 %v1626_v16, %v1627_v36  ;;  %v2720_v19 = vsel %vm2439_vm8, %v1579_v58, %v2719_v42  ;;  %v2586_v6 = vsel %vm2429_vm3, %v7586_v57, %v2585_v22 }
 0x1d0   : > { %v2724_v26 = vsel %vm2433_vm5, %v1614_v27, %v2723_v41  ;;  %v1635_v33 = vmax.f32 %v1633_v20, %v1634_v40  ;;  %v2832_v35 = vpack.c.bf16 %v2720_v19, %v2557_v31  ;;  %v2587_v45 = vsel %vm2431_vm4, %v7594_v46, %v2586_v6  ;;  %v7723_v6 = vld [vmem:[#allocation5 + $0x1] ss:$0 sm:$0xff] }
 0x1d1   : > { %v2725_v4 = vsel %vm2435_vm6, %v1621_v7, %v2724_v26  ;;  %v2461_v13 = vsel %vm2439_vm8, %v1628_v29, %v2460_v14  ;;  %v2588_v28 = vsel %vm2433_vm5, %v7609_v55, %v2587_v45  ;;  %v2592_v0 = vsel %vm2441_vm9, %v7599_v60, %v7401_v9  ;;  %v7700_v55 = vpop.permute.xlu1 %453  ;;  %v7706_v14 = vpop.permute.xlu2 %460 }
 0x1d2   : > { %v2726_v63 = vsel %vm2437_vm7, %v1628_v29, %v2725_v4  ;;  %v1816_v57 = vrot.slane %v7612_v47, 1  ;;  %v1674_v16 = vrot.slane %v7601_v32, 2  ;;  %v2589_v17 = vsel %vm2435_vm6, %v1572_v43, %v2588_v28 }
 0x1d3   : > { %v2727_v23 = vsel %vm2439_vm8, %v1635_v33, %v2726_v63  ;;  %v2946_v20 = vunpack.c.l.b16 %v2832_v35  ;;  %v2590_v31 = vsel %vm2437_vm7, %v1579_v58, %v2589_v17  ;;  %v2593_v12 = vsel %vm2429_vm3, %v7605_v56, %v2592_v0 }
 0x1d4   : > { %v2834_v46 = vpack.c.bf16 %v2727_v23, %v2461_v13  ;;  %v2947_v49 = vunpack.c.h.b16 %v2832_v35  ;;  %v2591_v9 = vsel %vm2439_vm8, %v7389_v50, %v2590_v31  ;;  %v2594_v60 = vsel %vm2431_vm4, %v1614_v27, %v2593_v12  ;;  %v9860_v12 = vld [vmem:[#allocation29_spill] sm:$0xff] }
 0x1d5   : > { %v647_v36 = vrot.slane %v7660_v39, 1  ;;  %v2595_v25 = vsel %vm2433_vm5, %v1621_v7, %v2594_v60  ;;  %v574_v58 = vrot.slane %v7660_v39, 7  ;;  %v7713_v56 = vmax.f32 %v7581_v30, %v1809_v38  ;;  %v9856_v38 = vld [vmem:[#allocation16_spill] sm:$0xff] }
 0x1d6   : > { %v2949_v43 = vunpack.c.l.b16 %v2834_v46  ;;  %v2950_v53 = vunpack.c.h.b16 %v2834_v46  ;;  %v2596_v50 = vsel %vm2435_vm6, %v1628_v29, %v2595_v25  ;;  %v2833_v27 = vpack.c.bf16 %v2591_v9, %v2591_v9 }
 0x1d7   : > { %v1669_v42 = vrot.slane %v7624_v37, 1  ;;  %v2597_v19 = vsel %vm2437_vm7, %v1635_v33, %v2596_v50  ;;  %v7720_v7 = vmax.f32 %v7612_v47, %v1816_v57  ;;  %v7727_v30 = vmul.f32 %v7723_v6, %v7660_v39 }
 0x1d8   : > { %v2991_v41 = vpack.c.b16 %v2949_v43, %v2946_v20  ;;  %v2992_v22 = vpack.c.b16 %v2950_v53, %v2947_v49  ;;  %v2693_v26 = vsel %vm610_vm1, %v2597_v19, 0.0  ;;  %v9857_v29 = vrot.slane %v9856_v38, 1 }
 0x1d9   : > { %v2835_v33 = vpack.c.bf16 %v2693_v26, %v2693_v26  ;;  %v580_v47 = vrot.slane %v7706_v14, 7  ;;  %v653_v35 = vrot.slane %v7706_v14, 1  ;;  %v9858_v45 = vrot.slane %v7320_v5, 7  ;;  %v9865_v26 = vld [vmem:[#allocation34_spill] sm:$0xff] }
 0x1da   : > { %v648_v4 = vsel %vm610_vm1, %v9857_v29, %v647_v36  ;;  %3193 = vmatmul.bf16.gmra.mxu0 %v2991_v41  ;;  %3242 = vmatmul.bf16.gmra.mxu1 %v2992_v22  ;;  %v2948_v63 = vunpack.c.l.b16 %v2833_v27  ;;  %v578_v28 = vrot.slane %v7700_v55, 7  ;;  %v9859_v0 = vrot.slane %v9856_v38, 7 }
 0x1db   : > { %v577_v13 = vsel %vm537_vm0, %v574_v58, %v9858_v45  ;;  %1006 = vperm.xlu2 %6401, %v648_v4   ;;  %v1681_v23 = vrot.slane %v7607_v34, 2  ;;  %v2951_v17 = vunpack.c.l.b16 %v2835_v33  ;;  %v1675_v46 = vmax.f32 %v7601_v32, %v1674_v16  ;;  %v7761_v16 = vpop.permute.xlu2 %478  ;;  %v9867_v33 = vld [vmem:[#allocation33_spill] sm:$0xff] }
 0x1dc   : > { %779 = vperm.xlu1 %6402, %v577_v13   ;;  %v575_v57 = vsel %vm537_vm0, %v9859_v0, %v574_v58  ;;  %v1687_v20 = vmax.f32 %v7579_v8, %v1686_v18  ;;  %v1694_v31 = vmax.f32 %v7431_v3, %v1693_v11  ;;  %v9861_v49 = vrot.slane %v9860_v12, 1  ;;  %v7763_v58 = vpop.permute.xlu1 %972  ;;  %v9869_v13 = vld [vmem:[#allocation31_spill] sm:$0xff] }
 0x1dd   : > { %v7757_v60 = vmax.f32 %v7624_v37, %v1669_v42  ;;  %v1682_v43 = vmax.f32 %v7607_v34, %v1681_v23  ;;  %v1704_v32 = vrot.slane %v7549_v54, 1  ;;  %v2993_v53 = vpack.c.b16 %v2951_v17, %v2948_v63 }
 0x1de   : > { %v7754_v9 = vmax.f32 %v9860_v12, %v9861_v49  ;;  %v1676_v8 = vrot.slane %v1675_v46, 1  ;;  %v1688_v18 = vrot.slane %v1687_v20, 2  ;;  %v1695_v25 = vrot.slane %v1694_v31, 2 }
 0x1df   : > { %v1683_v3 = vrot.slane %v1682_v43, 1  ;;  %v1705_v11 = vmax.f32 %v7549_v54, %v1704_v32  ;;  %v9862_v50 = vrot.slane %v7456_v52, 1  ;;  %v9863_v27 = vrot.slane %v7335_v1, 2  ;;  %3291 = vmatmul.bf16.gmra.mxu2 %v2993_v53 }
 0x1e0   : > { %v1689_v42 = vmax.f32 %v1687_v20, %v1688_v18  ;;  %v1696_v41 = vmax.f32 %v1694_v31, %v1695_v25  ;;  %v9864_v22 = vrot.slane %v7536_v24, 1  ;;  %v9866_v38 = vrot.slane %v9865_v26, 4 }
 0x1e1   : > { %v1712_v37 = vmax.f32 %v7456_v52, %v9862_v50  ;;  %v1731_v34 = vmax.f32 %v7335_v1, %v9863_v27  ;;  %v7778_v54 = vmax.f32 %v1675_v46, %v1676_v8  ;;  %v9868_v52 = vrot.slane %v9867_v33, 6  ;;  %v9870_v1 = vld [vmem:[#allocation32_spill] sm:$0xff] }
 0x1e2   : > { %v1719_v19 = vmax.f32 %v7536_v24, %v9864_v22  ;;  %v1736_v29 = vmax.f32 %v9865_v26, %v9866_v38  ;;  %v2598_v63 = vsel %vm2441_vm9, %v9870_v1, %v9869_v13  ;;  %v1690_v0 = vrot.slane %v1689_v42, 1 }
 0x1e3   : > { %v1732_v4 = vrot.slane %v1731_v34, 1  ;;  %v1741_v45 = vsel %vm1411_vm2, %v9868_v52, -inf  ;;  %v1697_v23 = vrot.slane %v1696_v41, 1  ;;  %v651_v24 = vrot.slane %v7700_v55, 1  ;;  %v7809_v38 = vpop.permute.xlu2 %762 }
 0x1e4   : > { %v1737_v17 = vrot.slane %v1736_v29, 2  ;;  %v1742_v20 = vrot.slane %v1741_v45, 4  ;;  %775 = vperm.xlu1 %6402, %v575_v57   ;;  %v7787_v31 = vmax.f32 %v1682_v43, %v1683_v3  ;;  %v2599_v46 = vsel %vm2429_vm3, %v7754_v9, %v2598_v63 }
 0x1e5   : > { %v2605_v12 = vsel %vm2441_vm9, %v1712_v37, %v1705_v11  ;;  %v7792_v49 = vmax.f32 %v1689_v42, %v1690_v0  ;;  %v1698_v32 = vmax.f32 %v1696_v41, %v1697_v23  ;;  %v9871_v18 = vrot.slane %v7347_v44, 1 }
 0x1e6   : > { %v1738_v53 = vmax.f32 %v1736_v29, %v1737_v17  ;;  %v1743_v8 = vmax.f32 %v1741_v45, %v1742_v20  ;;  %v1733_v50 = vmax.f32 %v1731_v34, %v1732_v4  ;;  %v2600_v57 = vsel %vm2431_vm4, %v7757_v60, %v2599_v46  ;;  %v742_v45 = vpop.permute.xlu1 %741 }
 0x1e7   : > { %v1726_v25 = vmax.f32 %v7347_v44, %v9871_v18  ;;  %v2606_v43 = vsel %vm2429_vm3, %v1719_v19, %v2605_v12  ;;  %v2468_v22 = vsel %vm2441_vm9, %v1698_v32, %v7792_v49  ;;  %v2601_v42 = vsel %vm2433_vm5, %v7778_v54, %v2600_v57 }
 0x1e8   : > { %v1739_v3 = vrot.slane %v1738_v53, 1  ;;  %v1744_v27 = vrot.slane %v1743_v8, 2  ;;  %v2469_v41 = vsel %vm2429_vm3, %v1705_v11, %v2468_v22  ;;  %v2602_v26 = vsel %vm2435_vm6, %v7787_v31, %v2601_v42 }
 0x1e9   : > { %v2607_v44 = vsel %vm2431_vm4, %v1726_v25, %v2606_v43  ;;  %v2735_v34 = vsel %vm2441_vm9, %v1705_v11, %v1698_v32  ;;  %v2603_v33 = vsel %vm2437_vm7, %v7792_v49, %v2602_v26  ;;  %v9872_v23 = vrot.slane %v7320_v5, 1 }
 0x1ea   : > { %v1740_v29 = vmax.f32 %v1738_v53, %v1739_v3  ;;  %v1745_v4 = vmax.f32 %v1743_v8, %v1744_v27  ;;  %v2608_v52 = vsel %vm2433_vm5, %v1733_v50, %v2607_v44  ;;  %v2604_v63 = vsel %vm2439_vm8, %v1698_v32, %v2603_v33  ;;  %v9874_v32 = vld [vmem:[#allocation30_spill] sm:$0xff] }
 0x1eb   : > { %v2736_v0 = vsel %vm2429_vm3, %v1712_v37, %v2735_v34  ;;  %v652_v11 = vsel %vm610_vm1, %v9872_v23, %v651_v24  ;;  %v9873_v17 = vrot.slane %v7320_v5, 7  ;;  %v2837_v53 = vpack.c.bf16 %v2604_v63, %v2604_v63 }
 0x1ec   : > { %v1746_v46 = vrot.slane %v1745_v4, 1  ;;  %v2609_v12 = vsel %vm2435_vm6, %v1740_v29, %v2608_v52  ;;  %1014 = vperm.xlu0 %6399, %v652_v11   ;;  %v2462_v8 = vsel %vm2429_vm3, %v9869_v13, %v9874_v32  ;;  %v2470_v57 = vsel %vm2431_vm4, %v1712_v37, %v2469_v41 }
 0x1ed   : > { %v579_v20 = vsel %vm537_vm0, %v9873_v17, %v578_v28  ;;  %v2463_v18 = vsel %vm2431_vm4, %v9870_v1, %v2462_v8  ;;  %v2728_v43 = vsel %vm2441_vm9, %v9869_v13, %v9874_v32  ;;  %v2737_v28 = vsel %vm2431_vm4, %v1719_v19, %v2736_v0  ;;  %v990_v13 = vpop.permute.xlu0 %989  ;;  %v759_v0 = vpop.permute.xlu2 %758 }
 0x1ee   : > { %783 = vperm.xlu2 %6401, %v579_v20   ;;  %v1747_v3 = vmax.f32 %v1745_v4, %v1746_v46  ;;  %v2954_v27 = vunpack.c.l.b16 %v2837_v53  ;;  %v2464_v22 = vsel %vm2433_vm5, %v7754_v9, %v2463_v18  ;;  %v2471_v42 = vsel %vm2433_vm5, %v1719_v19, %v2470_v57 }
 0x1ef   : > { %v2465_v26 = vsel %vm2435_vm6, %v7757_v60, %v2464_v22  ;;  %v2472_v44 = vsel %vm2435_vm6, %v1726_v25, %v2471_v42  ;;  %v2729_v37 = vsel %vm2429_vm3, %v9870_v1, %v2728_v43  ;;  %v2738_v41 = vsel %vm2433_vm5, %v1726_v25, %v2737_v28 }
 0x1f0   : > { %v2610_v34 = vsel %vm2437_vm7, %v1747_v3, %v2609_v12  ;;  %v2466_v4 = vsel %vm2437_vm7, %v7778_v54, %v2465_v26  ;;  %v2473_v33 = vsel %vm2437_vm7, %v1733_v50, %v2472_v44  ;;  %v2730_v19 = vsel %vm2431_vm4, %v7754_v9, %v2729_v37  ;;  %v986_v9 = vpop.permute.xlu1 %985  ;;  %v9876_v44 = vld [vmem:[#allocation20_spill] sm:$0xff] }
 0x1f1   : > { %v2694_v52 = vsel %vm610_vm1, %v2610_v34, 0.0  ;;  %v2467_v63 = vsel %vm2439_vm8, %v7787_v31, %v2466_v4  ;;  %v2474_v1 = vsel %vm2439_vm8, %v1740_v29, %v2473_v33  ;;  %v2731_v25 = vsel %vm2433_vm5, %v7757_v60, %v2730_v19 }
 0x1f2   : > { %v2839_v23 = vpack.c.bf16 %v2694_v52, %v2694_v52  ;;  %v2558_v11 = vsel %vm537_vm0, 0.0, %v2467_v63  ;;  %v2732_v17 = vsel %vm2435_vm6, %v7778_v54, %v2731_v25  ;;  %v2739_v20 = vsel %vm2435_vm6, %v1733_v50, %v2738_v41 }
 0x1f3   : > { %v2733_v46 = vsel %vm2437_vm7, %v7787_v31, %v2732_v17  ;;  %v2740_v12 = vsel %vm2437_vm7, %v1740_v29, %v2739_v20  ;;  %v1069_v53 = vmul.f32 %v7530_v59, %v7763_v58  ;;  %v9875_v60 = vrot.slane %v7320_v5, 1 }
 0x1f4   : > { %v2957_v8 = vunpack.c.l.b16 %v2839_v23  ;;  %v2734_v54 = vsel %vm2439_vm8, %v7792_v49, %v2733_v46  ;;  %v2741_v50 = vsel %vm2439_vm8, %v1747_v3, %v2740_v12  ;;  %v608_v31 = vsel %vm537_vm0, 0.0, %v580_v47  ;;  %v9877_v46 = vld [vmem:[#allocation17_spill] sm:$0xff] }
 0x1f5   : > { %v650_v32 = vsel %vm610_vm1, %v647_v36, %v9875_v60  ;;  %v2836_v29 = vpack.c.bf16 %v2734_v54, %v2558_v11  ;;  %v2838_v18 = vpack.c.bf16 %v2741_v50, %v2474_v1  ;;  %v1101_v58 = vadd.f32 %v1069_v53, %v7378_v10  ;;  %788 = vperm.xlu0 %6399, %v608_v31   ;;  %v1003_v26 = vpop.permute.xlu0 %1002  ;;  %v994_v25 = vpop.permute.xlu2 %993 }
 0x1f6   : > { %1010 = vperm.xlu1 %6402, %v650_v32   ;;  %v680_v5 = vsel %vm610_vm1, %v651_v24, 0.0  ;;  %v7884_v39 = vmul.f32 %v7723_v6, %v7706_v14  ;;  %v7887_v36 = vmul.f32 %v7530_v59, %v990_v13  ;;  %v2996_v49 = vpack.c.b16 %v2957_v8, %v2954_v27 }
 0x1f7   : > { %1019 = vperm.xlu2 %6401, %v680_v5   ;;  %v834_v57 = vmul.f32 %v7527_v21, %v742_v45  ;;  %v2952_v43 = vunpack.c.l.b16 %v2836_v29  ;;  %v2955_v28 = vunpack.c.l.b16 %v2838_v18  ;;  %v2953_v3 = vunpack.c.h.b16 %v2836_v29 }
 0x1f8   : > { %v2956_v10 = vunpack.c.h.b16 %v2838_v18  ;;  %v7892_v22 = vmul.f32 %v7723_v6, %v7700_v55  ;;  %3296 = vmatmul.bf16.gmra.mxu2 %v2996_v49  ;;  %v585_v24 = vrot.slane %v7761_v16, 7  ;;  %v1135_v42 = vadd.f32 %v7553_v48, %v1101_v58  ;;  %v7906_v19 = vpop.permute.xlu1 %472  ;;  %v9879_v58 = vld [vmem:[#allocation23_spill] sm:$0xff] }
 0x1f9   : > { %v900_v37 = vadd.f32 %v9876_v44, %v834_v57  ;;  %v9783_v27 = vrot.slane %v7761_v16, 1  ;;  %v2994_v41 = vpack.c.b16 %v2955_v28, %v2952_v43  ;;  %v1072_v13 = vmul.f32 %v7530_v59, %v986_v9 }
 0x1fa   : > { %v2995_v45 = vpack.c.b16 %v2956_v10, %v2953_v3  ;;  %v7901_v34 = vmul.f32 %v7723_v6, %v7761_v16  ;;  %v1167_v55 = vmax.f32 %v1135_v42, 0.0  ;;  %v839_v4 = vmul.f32 %v7527_v21, %v7809_v38  ;;  %v9880_v10 = vld [vmem:[#allocation24_spill] sm:$0xff] }
 0x1fb   : > { %v1102_v33 = vadd.f32 %v7561_v61, %v900_v37  ;;  %3198 = vmatmul.bf16.gmra.mxu0 %v2994_v41  ;;  %v7909_v52 = vmul.f32 %v7530_v59, %v1003_v26  ;;  %v838_v63 = vmul.f32 %v7527_v21, %v759_v0  ;;  %v1104_v1 = vadd.f32 %v1072_v13, %v7589_v62 }
 0x1fc   : > { %3247 = vmatmul.bf16.gmra.mxu1 %v2995_v45  ;;  %v656_v23 = vrot.slane %v7906_v19, 1  ;;  %v1255_v11 = vrot.slane %v1167_v55, 2  ;;  %v1256_v17 = vrot.slane %v1167_v55, 4  ;;  %v1257_v20 = vrot.slane %v1167_v55, 6 }
 0x1fd   : > { %v1748_v38 = vsel %vm1411_vm2, %v1167_v55, -inf  ;;  %v1136_v9 = vadd.f32 %v7553_v48, %v1102_v33  ;;  %v9878_v12 = vrot.slane %v9877_v46, 1  ;;  %v1138_v0 = vadd.f32 %v7553_v48, %v1104_v1 }
 0x1fe   : > { %v1749_v61 = vrot.slane %v1748_v38, 4  ;;  %v1755_v62 = vsel %vm1411_vm2, %v1255_v11, -inf  ;;  %v1762_v60 = vsel %vm1411_vm2, %v1256_v17, -inf  ;;  %v1769_v32 = vsel %vm1411_vm2, %v1257_v20, -inf }
 0x1ff   : > { %v655_v53 = vsel %vm610_vm1, %v653_v35, %v9878_v12  ;;  %v1074_v8 = vmul.f32 %v7530_v59, %v994_v25  ;;  %v1756_v50 = vrot.slane %v1755_v62, 4  ;;  %v1763_v31 = vrot.slane %v1762_v60, 4 }
 0x200   : > { %1023 = vperm.xlu2 %6401, %v655_v53   ;;  %v1750_v54 = vmax.f32 %v1748_v38, %v1749_v61  ;;  %v1770_v29 = vrot.slane %v1769_v32, 4  ;;  %v7926_v18 = vmax.f32 %v1136_v9, 0.0  ;;  %v904_v5 = vadd.f32 %v9879_v58, %v838_v63  ;;  %v755_v11 = vpop.permute.xlu1 %754  ;;  %v7942_v61 = vpop.permute.xlu2 %491 }
 0x201   : > { %v1170_v35 = vmax.f32 %v1138_v0, 0.0  ;;  %v659_v49 = vsel %vm610_vm1, %v656_v23, %v9783_v27  ;;  %v1757_v43 = vmax.f32 %v1755_v62, %v1756_v50  ;;  %v1764_v28 = vmax.f32 %v1762_v60, %v1763_v31 }
 0x202   : > { %v1751_v57 = vrot.slane %v1750_v54, 2  ;;  %v1771_v3 = vmax.f32 %v1769_v32, %v1770_v29  ;;  %1031 = vperm.xlu0 %6399, %v659_v49   ;;  %v7935_v42 = vadd.f32 %v9880_v10, %v839_v4  ;;  %v1258_v26 = vrot.slane %v7926_v18, 2 }
 0x203   : > { %v1776_v44 = vsel %vm1411_vm2, %v7926_v18, -inf  ;;  %v1106_v37 = vadd.f32 %v1074_v8, %v904_v5  ;;  %v1758_v45 = vrot.slane %v1757_v43, 2  ;;  %v1765_v13 = vrot.slane %v1764_v28, 2 }
 0x204   : > { %v1752_v41 = vmax.f32 %v1750_v54, %v1751_v57  ;;  %v1772_v55 = vrot.slane %v1771_v3, 2  ;;  %v1777_v33 = vrot.slane %v1776_v44, 4  ;;  %v1783_v63 = vsel %vm1411_vm2, %v1258_v26, -inf }
 0x205   : > { %v1264_v1 = vrot.slane %v1170_v35, 2  ;;  %v583_v25 = vrot.slane %v7906_v19, 7  ;;  %v1759_v4 = vmax.f32 %v1757_v43, %v1758_v45  ;;  %v1766_v20 = vmax.f32 %v1764_v28, %v1765_v13 }
 0x206   : > { %v1753_v17 = vrot.slane %v1752_v41, 1  ;;  %v1265_v38 = vrot.slane %v1170_v35, 4  ;;  %v7944_v9 = vmax.f32 %v1771_v3, %v1772_v55  ;;  %v1778_v12 = vmax.f32 %v1776_v44, %v1777_v33 }
 0x207   : > { %v1784_v53 = vrot.slane %v1783_v63, 4  ;;  %v1832_v0 = vsel %vm1411_vm2, %v1170_v35, -inf  ;;  %v1760_v62 = vrot.slane %v1759_v4, 1  ;;  %v1767_v60 = vrot.slane %v1766_v20, 1 }
 0x208   : > { %v1140_v32 = vadd.f32 %v7553_v48, %v1106_v37  ;;  %v7950_v8 = vmul.f32 %v7723_v6, %v7906_v19  ;;  %v1779_v54 = vrot.slane %v1778_v12, 2  ;;  %v1266_v50 = vrot.slane %v1170_v35, 6  ;;  %v9885_v19 = vld [vmem:[#allocation25_spill] sm:$0xff] }
 0x209   : > { %v1833_v31 = vrot.slane %v1832_v0, 4  ;;  %v1839_v29 = vsel %vm1411_vm2, %v1264_v1, -inf  ;;  %v1259_v58 = vrot.slane %v7926_v18, 4  ;;  %v1260_v5 = vrot.slane %v7926_v18, 6 }
 0x20a   : > { %9881 = vst [vmem:[#allocation22_spill] sm:$0xff] %v7950_v8  ;;  %v1840_v49 = vrot.slane %v1839_v29, 4  ;;  %v7956_v57 = vsel %vm1411_vm2, %v1265_v38, -inf  ;;  %v7958_v43 = vmax.f32 %v1752_v41, %v1753_v17  ;;  %v1774_v28 = vrot.slane %v7944_v9, 1 }
 0x20b   : > { %v1785_v3 = vmax.f32 %v1783_v63, %v1784_v53  ;;  %v1834_v10 = vmax.f32 %v1832_v0, %v1833_v31  ;;  %v7961_v26 = vmax.f32 %v1759_v4, %v1760_v62  ;;  %v7963_v35 = vmax.f32 %v1766_v20, %v1767_v60  ;;  %v998_v0 = vpop.permute.xlu1 %997  ;;  %v772_v31 = vpop.permute.xlu2 %771 }
 0x20c   : > { %v1780_v44 = vmax.f32 %v1778_v12, %v1779_v54  ;;  %v1172_v37 = vmax.f32 %v1140_v32, 0.0  ;;  %v7965_v45 = vmax.f32 %v1839_v29, %v1840_v49  ;;  %v7969_v55 = vsel %vm1411_vm2, %v1266_v50, -inf }
 0x20d   : > { %v9882_v41 = vrot.slane %v9877_v46, 7  ;;  %v1835_v1 = vrot.slane %v1834_v10, 2  ;;  %v586_v12 = vsel %vm537_vm0, %v583_v25, %v585_v24  ;;  %v837_v53 = vmul.f32 %v7527_v21, %v755_v11 }
 0x20e   : > { %v1270_v63 = vrot.slane %v1172_v37, 2  ;;  %v1271_v17 = vrot.slane %v1172_v37, 4  ;;  %v1888_v4 = vsel %vm1411_vm2, %v1172_v37, -inf  ;;  %v1272_v20 = vrot.slane %v1172_v37, 6  ;;  %800 = vperm.xlu2 %6401, %v586_v12  }
 0x20f   : > { %v584_v33 = vsel %vm537_vm0, %v9882_v41, %v583_v25  ;;  %v1889_v38 = vrot.slane %v1888_v4, 4  ;;  %v9883_v54 = vrot.slane %v9877_v46, 1  ;;  %v7990_v25 = vmul.f32 %v7723_v6, %v7942_v61 }
 0x210   : > { %796 = vperm.xlu1 %6402, %v584_v33   ;;  %v1895_v60 = vsel %vm1411_vm2, %v1270_v63, -inf  ;;  %v7992_v11 = vmax.f32 %v1834_v10, %v1835_v1  ;;  %v7995_v37 = vsel %vm1411_vm2, %v1271_v17, -inf  ;;  %v903_v41 = vadd.f32 %v9885_v19, %v837_v53 }
 0x211   : > { %v657_v50 = vsel %vm610_vm1, %v9883_v54, %v656_v23  ;;  %v1890_v29 = vmax.f32 %v1888_v4, %v1889_v38  ;;  %v1896_v49 = vrot.slane %v1895_v60, 4  ;;  %9884 = vst [vmem:[#allocation28_spill] sm:$0xff] %v7990_v25  ;;  %v1075_v33 = vmul.f32 %v7530_v59, %v998_v0 }
 0x212   : > { %1027 = vperm.xlu0 %6399, %v657_v50   ;;  %v8002_v4 = vsel %vm1411_vm2, %v1272_v20, -inf  ;;  %v841_v38 = vmul.f32 %v7527_v21, %v772_v31  ;;  %v1105_v12 = vadd.f32 %v7887_v36, %v903_v41  ;;  %v1781_v1 = vrot.slane %v1780_v44, 1 }
 0x213   : > { %v1891_v23 = vrot.slane %v1890_v29, 2  ;;  %v7999_v63 = vmax.f32 %v1895_v60, %v1896_v49  ;;  %v1107_v10 = vadd.f32 %v1075_v33, %v7935_v42  ;;  %v1786_v54 = vrot.slane %v1785_v3, 2 }
 0x214   : > { %v9886_v59 = vrot.slane %v9877_v46, 7  ;;  %v1790_v20 = vsel %vm1411_vm2, %v1259_v58, -inf  ;;  %v1139_v21 = vadd.f32 %v7553_v48, %v1105_v12  ;;  %v8026_v14 = vmax.f32 %v7944_v9, %v1774_v28 }
 0x215   : > { %v8007_v17 = vmax.f32 %v1890_v29, %v1891_v23  ;;  %v1141_v36 = vadd.f32 %v7553_v48, %v1107_v10  ;;  %v8018_v42 = vmax.f32 %v1785_v3, %v1786_v54  ;;  %v1791_v60 = vrot.slane %v1790_v20, 4  ;;  %v9887_v29 = vld [vmem:[#allocation19_spill] sm:$0xff] }
 0x216   : > { %v582_v0 = vsel %vm537_vm0, %v580_v47, %v9886_v59  ;;  %v8023_v46 = vadd.f32 %v9887_v29, %v841_v38  ;;  %v1171_v58 = vmax.f32 %v1139_v21, 0.0  ;;  %v8029_v19 = vmax.f32 %v1780_v44, %v1781_v1 }
 0x217   : > { %v1173_v49 = vmax.f32 %v1141_v36, 0.0  ;;  %v1788_v48 = vrot.slane %v8018_v42, 1  ;;  %v8032_v3 = vmax.f32 %v1790_v20, %v1791_v60  ;;  %v1797_v41 = vsel %vm1411_vm2, %v1260_v5, -inf }
 0x218   : > { %792 = vperm.xlu1 %6402, %v582_v0   ;;  %v1830_v33 = vrot.slane %v7619_v15, 1  ;;  %v1267_v23 = vrot.slane %v1171_v58, 2  ;;  %v1268_v38 = vrot.slane %v1171_v58, 4  ;;  %v1269_v9 = vrot.slane %v1171_v58, 6 }
 0x219   : > { %v1860_v28 = vsel %vm1411_vm2, %v1171_v58, -inf  ;;  %v1273_v10 = vrot.slane %v1173_v49, 2  ;;  %v1274_v54 = vrot.slane %v1173_v49, 4  ;;  %v1275_v44 = vrot.slane %v1173_v49, 6 }
 0x21a   : > { %v1861_v12 = vrot.slane %v1860_v28, 4  ;;  %v1867_v1 = vsel %vm1411_vm2, %v1267_v23, -inf  ;;  %v1874_v59 = vsel %vm1411_vm2, %v1268_v38, -inf  ;;  %v1881_v0 = vsel %vm1411_vm2, %v1269_v9, -inf }
 0x21b   : > { %v1916_v18 = vsel %vm1411_vm2, %v1173_v49, -inf  ;;  %v1868_v20 = vrot.slane %v1867_v1, 4  ;;  %v1875_v21 = vrot.slane %v1874_v59, 4  ;;  %v1882_v36 = vrot.slane %v1881_v0, 4 }
 0x21c   : > { %v1862_v5 = vmax.f32 %v1860_v28, %v1861_v12  ;;  %v1917_v60 = vrot.slane %v1916_v18, 4  ;;  %v1923_v29 = vsel %vm1411_vm2, %v1273_v10, -inf  ;;  %v1930_v58 = vsel %vm1411_vm2, %v1274_v54, -inf }
 0x21d   : > { %v1937_v31 = vsel %vm1411_vm2, %v1275_v44, -inf  ;;  %v1869_v50 = vmax.f32 %v1867_v1, %v1868_v20  ;;  %v1876_v23 = vmax.f32 %v1874_v59, %v1875_v21  ;;  %v1883_v47 = vmax.f32 %v1881_v0, %v1882_v36 }
 0x21e   : > { %v1863_v53 = vrot.slane %v1862_v5, 2  ;;  %v1918_v38 = vmax.f32 %v1916_v18, %v1917_v60  ;;  %v1924_v24 = vrot.slane %v1923_v29, 4  ;;  %v1931_v9 = vrot.slane %v1930_v58, 4 }
 0x21f   : > { %v1938_v32 = vrot.slane %v1937_v31, 4  ;;  %v1870_v28 = vrot.slane %v1869_v50, 2  ;;  %v1877_v12 = vrot.slane %v1876_v23, 2  ;;  %v1884_v27 = vrot.slane %v1883_v47, 2 }
 0x220   : > { %v1864_v49 = vmax.f32 %v1862_v5, %v1863_v53  ;;  %v1919_v62 = vrot.slane %v1918_v38, 2  ;;  %v1925_v13 = vmax.f32 %v1923_v29, %v1924_v24  ;;  %v1932_v40 = vmax.f32 %v1930_v58, %v1931_v9 }
 0x221   : > { %v1939_v10 = vmax.f32 %v1937_v31, %v1938_v32  ;;  %v1871_v54 = vmax.f32 %v1869_v50, %v1870_v28  ;;  %v1798_v8 = vrot.slane %v1797_v41, 4  ;;  %v1842_v44 = vrot.slane %v7965_v45, 2 }
 0x222   : > { %v1865_v25 = vrot.slane %v1864_v49, 1  ;;  %v8047_v1 = vmax.f32 %v1918_v38, %v1919_v62  ;;  %v1926_v59 = vrot.slane %v1925_v13, 2  ;;  %v1933_v0 = vrot.slane %v1932_v40, 2 }
 0x223   : > { %v1940_v18 = vrot.slane %v1939_v10, 2  ;;  %v1872_v20 = vrot.slane %v1871_v54, 1  ;;  %v9888_v53 = vrot.slane %v7614_v2, 1  ;;  %v8055_v24 = vmax.f32 %v7619_v15, %v1830_v33 }
 0x224   : > { %v1837_v32 = vrot.slane %v7992_v11, 1  ;;  %v8058_v50 = vmax.f32 %v1864_v49, %v1865_v25  ;;  %v8060_v31 = vmax.f32 %v1876_v23, %v1877_v12  ;;  %v8062_v62 = vmax.f32 %v1883_v47, %v1884_v27 }
 0x225   : > { %v8052_v5 = vmax.f32 %v7614_v2, %v9888_v53  ;;  %v1789_v21 = vmax.f32 %v8018_v42, %v1788_v48  ;;  %v1921_v36 = vrot.slane %v8047_v1, 1  ;;  %v8066_v60 = vmax.f32 %v1925_v13, %v1926_v59 }
 0x226   : > { %v1793_v2 = vrot.slane %v8032_v3, 2  ;;  %v1799_v29 = vmax.f32 %v1797_v41, %v1798_v8  ;;  %v8069_v58 = vmax.f32 %v1871_v54, %v1872_v20  ;;  %v8071_v15 = vmax.f32 %v1932_v40, %v1933_v0  ;;  %v767_v20 = vpop.permute.xlu1 %766 }
 0x227   : > { %v8073_v33 = vmax.f32 %v1939_v10, %v1940_v18  ;;  %v1843_v25 = vmax.f32 %v7965_v45, %v1842_v44  ;;  %v9889_v42 = vrot.slane %v7956_v57, 4  ;;  %v9890_v13 = vrot.slane %v7969_v55, 4 }
 0x228   : > { %v1794_v27 = vmax.f32 %v8032_v3, %v1793_v2  ;;  %v1800_v47 = vrot.slane %v1799_v29, 2  ;;  %v8084_v8 = vmax.f32 %v7992_v11, %v1837_v32  ;;  %v2475_v41 = vsel %vm2429_vm3, %v7961_v26, %v7958_v43 }
 0x229   : > { %v1848_v48 = vmax.f32 %v7956_v57, %v9889_v42  ;;  %v1855_v23 = vmax.f32 %v7969_v55, %v9890_v13  ;;  %v1844_v40 = vrot.slane %v1843_v25, 1  ;;  %v2742_v45 = vsel %vm2441_vm9, %v7961_v26, %v7958_v43 }
 0x22a   : > { %v1795_v3 = vrot.slane %v1794_v27, 1  ;;  %v1801_v38 = vmax.f32 %v1799_v29, %v1800_v47  ;;  %v2476_v55 = vsel %vm2431_vm4, %v7963_v35, %v2475_v41  ;;  %v2743_v11 = vsel %vm2429_vm3, %v7963_v35, %v2742_v45 }
 0x22b   : > { %v1849_v9 = vrot.slane %v1848_v48, 2  ;;  %v1856_v57 = vrot.slane %v1855_v23, 2  ;;  %v8092_v49 = vmax.f32 %v1843_v25, %v1844_v40  ;;  %v2749_v28 = vsel %vm2441_vm9, %v7720_v7, %v7713_v56 }
 0x22c   : > { %v1796_v12 = vmax.f32 %v1794_v27, %v1795_v3  ;;  %v1802_v10 = vrot.slane %v1801_v38, 1  ;;  %v2477_v44 = vsel %vm2433_vm5, %v8026_v14, %v2476_v55  ;;  %v2744_v59 = vsel %vm2431_vm4, %v8026_v14, %v2743_v11 }
 0x22d   : > { %v1850_v54 = vmax.f32 %v1848_v48, %v1849_v9  ;;  %v1857_v43 = vmax.f32 %v1855_v23, %v1856_v57  ;;  %v2750_v0 = vsel %vm2429_vm3, %v8052_v5, %v2749_v28  ;;  %v2611_v18 = vsel %vm2441_vm9, %v7963_v35, %v7961_v26 }
 0x22e   : > { %v1803_v53 = vmax.f32 %v1801_v38, %v1802_v10  ;;  %v2478_v29 = vsel %vm2435_vm6, %v8029_v19, %v2477_v44  ;;  %v2745_v27 = vsel %vm2433_vm5, %v8029_v19, %v2744_v59  ;;  %v2751_v47 = vsel %vm2431_vm4, %v8055_v24, %v2750_v0 }
 0x22f   : > { %v1851_v32 = vrot.slane %v1850_v54, 1  ;;  %v1858_v2 = vrot.slane %v1857_v43, 1  ;;  %v2479_v25 = vsel %vm2437_vm7, %v1789_v21, %v2478_v29  ;;  %v2612_v42 = vsel %vm2429_vm3, %v8026_v14, %v2611_v18  ;;  %v486_v29 = vpop.permute.xlu1 %485 }
 0x230   : > { %v2480_v35 = vsel %vm2439_vm8, %v1796_v12, %v2479_v25  ;;  %v2481_v13 = vsel %vm2441_vm9, %v7713_v56, %v1803_v53  ;;  %v2746_v41 = vsel %vm2435_vm6, %v1789_v21, %v2745_v27  ;;  %v2752_v45 = vsel %vm2433_vm5, %v8084_v8, %v2751_v47  ;;  %v8140_v10 = vpop.f32.mrf.mxu0 }
 0x231   : > { %v1852_v48 = vmax.f32 %v1850_v54, %v1851_v32  ;;  %v1859_v26 = vmax.f32 %v1857_v43, %v1858_v2  ;;  %v2482_v23 = vsel %vm2429_vm3, %v7720_v7, %v2481_v13  ;;  %v2559_v40 = vsel %vm537_vm0, 0.0, %v2480_v35 }
 0x232   : > { %v2483_v14 = vsel %vm2431_vm4, %v8052_v5, %v2482_v23  ;;  %v2747_v3 = vsel %vm2437_vm7, %v1796_v12, %v2746_v41  ;;  %v2753_v38 = vsel %vm2435_vm6, %v8092_v49, %v2752_v45  ;;  %v2613_v9 = vsel %vm2431_vm4, %v8029_v19, %v2612_v42  ;;  %v3238_v19 = vpop.f32.mrf.mxu1  ;;  %v8173_v23 = vld [vmem:[#allocation5] ss:$0 sm:$0xff] }
 0x233   : > { %v2484_v57 = vsel %vm2433_vm5, %v8055_v24, %v2483_v14  ;;  %v2748_v55 = vsel %vm2439_vm8, %v1803_v53, %v2747_v3  ;;  %v2754_v11 = vsel %vm2437_vm7, %v1852_v48, %v2753_v38  ;;  %v2614_v28 = vsel %vm2433_vm5, %v1789_v21, %v2613_v9 }
 0x234   : > { %v2485_v54 = vsel %vm2435_vm6, %v8084_v8, %v2484_v57  ;;  %v2755_v43 = vsel %vm2439_vm8, %v1859_v26, %v2754_v11  ;;  %v2840_v44 = vpack.c.bf16 %v2748_v55, %v2559_v40  ;;  %v2615_v59 = vsel %vm2435_vm6, %v1796_v12, %v2614_v28  ;;  %v8176_v40 = vld [vmem:[#allocation5 + $0x2] ss:$0 sm:$0xff]  ;;  %v9895_v57 = vld [vmem:[#allocation27_spill] sm:$0xff] }
 0x235   : > { %v2486_v0 = vsel %vm2437_vm7, %v8092_v49, %v2485_v54  ;;  %v2616_v18 = vsel %vm2437_vm7, %v1803_v53, %v2615_v59  ;;  %v2618_v21 = vsel %vm2441_vm9, %v8052_v5, %v7720_v7  ;;  %v9891_v32 = vrot.slane %v7761_v16, 1  ;;  %v9892_v5 = vld [vmem:[#allocation18_spill] sm:$0xff] }
 0x236   : > { %v8158_v25 = vmax.f32 %v8047_v1, %v1921_v36  ;;  %v1928_v12 = vrot.slane %v8066_v60, 1  ;;  %v2487_v27 = vsel %vm2439_vm8, %v1852_v48, %v2486_v0  ;;  %v2617_v53 = vsel %vm2439_vm8, %v7713_v56, %v2616_v18  ;;  %v1007_v36 = vpop.permute.xlu2 %1006  ;;  %v8187_v0 = vld [vmem:[#allocation5 + $0x3] ss:$0 sm:$0xff] }
 0x237   : > { %v681_v2 = vsel %vm610_vm1, %v9891_v32, 0.0  ;;  %v2842_v47 = vpack.c.bf16 %v2755_v43, %v2487_v27  ;;  %v2958_v7 = vunpack.c.l.b16 %v2840_v44  ;;  %v2619_v16 = vsel %vm2429_vm3, %v8055_v24, %v2618_v21 }
 0x238   : > { %1036 = vperm.xlu1 %6402, %v681_v2   ;;  %v9893_v42 = vrot.slane %v9892_v5, 7  ;;  %v9894_v35 = vrot.slane %v7942_v61, 7  ;;  %v2620_v13 = vsel %vm2431_vm4, %v8084_v8, %v2619_v16  ;;  %v840_v56 = vmul.f32 %v8173_v23, %v767_v20 }
 0x239   : > { %v1077_v41 = vmul.f32 %v8176_v40, %v1007_v36  ;;  %v587_v24 = vrot.slane %v486_v29, 7  ;;  %v2961_v45 = vunpack.c.l.b16 %v2842_v47  ;;  %v2959_v14 = vunpack.c.h.b16 %v2840_v44 }
 0x23a   : > { %v591_v1 = vsel %vm537_vm0, %v9894_v35, %v9893_v42  ;;  %v2962_v3 = vunpack.c.h.b16 %v2842_v47  ;;  %v2621_v38 = vsel %vm2433_vm5, %v8092_v49, %v2620_v13  ;;  %v906_v8 = vadd.f32 %v9895_v57, %v840_v56  ;;  %v3240_v16 = vpop.f32.mrf.mxu1  ;;  %v8203_v42 = vpop.permute.xlu1 %503 }
 0x23b   : > { %813 = vperm.xlu0 %6399, %v591_v1   ;;  %v2622_v9 = vsel %vm2435_vm6, %v1852_v48, %v2621_v38  ;;  %v1109_v55 = vadd.f32 %v1077_v41, %v8023_v46  ;;  %v660_v11 = vrot.slane %v486_v29, 1  ;;  %v2997_v28 = vpack.c.b16 %v2961_v45, %v2958_v7  ;;  %v3287_v56 = vpop.f32.mrf.mxu2 }
 0x23c   : > { %v2998_v20 = vpack.c.b16 %v2962_v3, %v2959_v14  ;;  %v2623_v54 = vsel %vm2437_vm7, %v1859_v26, %v2622_v9  ;;  %v2841_v43 = vpack.c.bf16 %v2617_v53, %v2617_v53  ;;  %v1108_v44 = vadd.f32 %v7909_v52, %v906_v8  ;;  %v3191_v52 = vpop.f32.mrf.mxu0 }
 0x23d   : > { %v2695_v59 = vsel %vm610_vm1, %v2623_v54, 0.0  ;;  %v1143_v49 = vadd.f32 %v8187_v0, %v1109_v55  ;;  %v609_v48 = vsel %vm537_vm0, 0.0, %v587_v24  ;;  %v1879_v18 = vrot.slane %v8060_v31, 1  ;;  %3203 = vmatmul.bf16.gmra.mxu0 %v2997_v28 }
 0x23e   : > { %3252 = vmatmul.bf16.gmra.mxu1 %v2998_v20  ;;  %v2843_v46 = vpack.c.bf16 %v2695_v59, %v2695_v59  ;;  %v9896_v21 = vrot.slane %v7942_v61, 1  ;;  %v9897_v32 = vmov %v9894_v35  ;;  %v8199_v27 = vmax.f32 %v8066_v60, %v1928_v12  ;;  %805 = vperm.xlu2 %6401, %v609_v48  }
 0x23f   : > { %v589_v2 = vsel %vm537_vm0, %v587_v24, %v9897_v32  ;;  %v1935_v53 = vrot.slane %v8071_v15, 1  ;;  %v1142_v47 = vadd.f32 %v8187_v0, %v1108_v44  ;;  %v1175_v7 = vmax.f32 %v1143_v49, 0.0 }
 0x240   : > { %v662_v26 = vsel %vm610_vm1, %v660_v11, %v9896_v21  ;;  %v2960_v35 = vunpack.c.l.b16 %v2841_v43  ;;  %v2963_v1 = vunpack.c.l.b16 %v2843_v46  ;;  %v8206_v36 = vmul.f32 %v7723_v6, %v486_v29 }
 0x241   : > { %1040 = vperm.xlu1 %6402, %v662_v26   ;;  %v3239_v13 = vadd.f32 %v3238_v19, %v8140_v10  ;;  %v8209_v60 = vmax.f32 %v1142_v47, 0.0  ;;  %v1279_v12 = vrot.slane %v1175_v7, 2  ;;  %v1280_v41 = vrot.slane %v1175_v7, 4  ;;  %v8218_v19 = vld [vmem:[#allocation10] ss:$0 sm:$0xff] }
 0x242   : > { %9898 = vst [vmem:[#allocation35_spill] sm:$0xff] %v8206_v36  ;;  %v1281_v24 = vrot.slane %v1175_v7, 6  ;;  %v2999_v45 = vpack.c.b16 %v2963_v1, %v2960_v35  ;;  %v1972_v14 = vsel %vm1411_vm2, %v1175_v7, -inf  ;;  %v8212_v3 = vadd.f32 %v3240_v16, %v3191_v52 }
 0x243   : > { %809 = vperm.xlu0 %6399, %v589_v2   ;;  %v1276_v9 = vrot.slane %v8209_v60, 2  ;;  %v1944_v29 = vsel %vm1411_vm2, %v8209_v60, -inf  ;;  %v3288_v10 = vadd.f32 %v3287_v56, %v3239_v13  ;;  %v1973_v55 = vrot.slane %v1972_v14, 4 }
 0x244   : > { %3301 = vmatmul.bf16.gmra.mxu2 %v2999_v45  ;;  %v1945_v8 = vrot.slane %v1944_v29, 4  ;;  %v1979_v11 = vsel %vm1411_vm2, %v1279_v12, -inf  ;;  %v1986_v28 = vsel %vm1411_vm2, %v1280_v41, -inf  ;;  %v1993_v43 = vsel %vm1411_vm2, %v1281_v24, -inf }
 0x245   : > { %v1980_v20 = vrot.slane %v1979_v11, 4  ;;  %v1987_v54 = vrot.slane %v1986_v28, 4  ;;  %v8226_v59 = vmul.f32 %v7723_v6, %v8203_v42  ;;  %v1974_v44 = vmax.f32 %v1972_v14, %v1973_v55 }
 0x246   : > { %v1994_v49 = vrot.slane %v1993_v43, 4  ;;  %v8229_v48 = vmax.f32 %v8060_v31, %v1879_v18  ;;  %v1886_v46 = vrot.slane %v8062_v62, 1  ;;  %v8233_v21 = vsel %vm1411_vm2, %v1276_v9, -inf }
 0x247   : > { %9899 = vst [vmem:[#allocation16_spill] sm:$0xff] %v8226_v59  ;;  %v1981_v26 = vmax.f32 %v1979_v11, %v1980_v20  ;;  %v1988_v32 = vmax.f32 %v1986_v28, %v1987_v54  ;;  %v3328_v2 = vadd.f32 %v8218_v19, %v3288_v10  ;;  %v1277_v47 = vrot.slane %v8209_v60, 4 }
 0x248   : > { %v784_v52 = vpop.permute.xlu2 %783  ;;  %v1946_v7 = vmax.f32 %v1944_v29, %v1945_v8  ;;  %v1975_v6 = vrot.slane %v1974_v44, 2  ;;  %v1995_v16 = vmax.f32 %v1993_v43, %v1994_v49  ;;  %v1278_v18 = vrot.slane %v8209_v60, 6 }
 0x249   : > { %v1982_v35 = vrot.slane %v1981_v26, 2  ;;  %v1989_v1 = vrot.slane %v1988_v32, 2  ;;  %v3344_v13 = vmax.f32 %v3328_v2, 0.0  ;;  %v844_v31 = vmul.f32 %v8173_v23, %v784_v52 }
 0x24a   : > { %v1952_v56 = vrot.slane %v8233_v21, 4  ;;  %v1976_v12 = vmax.f32 %v1974_v44, %v1975_v6  ;;  %v8241_v41 = vmax.f32 %v8062_v62, %v1886_v46  ;;  %v1996_v45 = vrot.slane %v1995_v16, 2 }
 0x24b   : > { %v1983_v24 = vmax.f32 %v1981_v26, %v1982_v35  ;;  %v3376_v14 = vrot.slane %v3344_v13, 2  ;;  %v3377_v9 = vrot.slane %v3344_v13, 4  ;;  %v1947_v29 = vrot.slane %v1946_v7, 2 }
 0x24c   : > { %v1990_v10 = vmax.f32 %v1988_v32, %v1989_v1  ;;  %v3378_v8 = vrot.slane %v3344_v13, 6  ;;  %v3472_v55 = vsel %vm1411_vm2, %v3344_v13, -inf  ;;  %v8246_v20 = vadd.f32 %v7892_v22, %v844_v31 }
 0x24d   : > { %v3473_v11 = vrot.slane %v3472_v55, 4  ;;  %v3479_v28 = vsel %vm1411_vm2, %v3376_v14, -inf  ;;  %v9900_v54 = vrot.slane %v8007_v17, 1  ;;  %v1977_v43 = vrot.slane %v1976_v12, 1 }
 0x24e   : > { %v3480_v44 = vrot.slane %v3479_v28, 4  ;;  %v3486_v49 = vsel %vm1411_vm2, %v3377_v9, -inf  ;;  %v9901_v46 = vrot.slane %v7999_v63, 2  ;;  %v1984_v32 = vrot.slane %v1983_v24, 1 }
 0x24f   : > { %v8251_v62 = vmax.f32 %v8007_v17, %v9900_v54  ;;  %v8257_v2 = vmax.f32 %v1995_v16, %v1996_v45  ;;  %v3474_v52 = vmax.f32 %v3472_v55, %v3473_v11  ;;  %v3487_v6 = vrot.slane %v3486_v49, 4 }
 0x250   : > { %v1899_v26 = vmax.f32 %v7999_v63, %v9901_v46  ;;  %v1991_v22 = vrot.slane %v1990_v10, 1  ;;  %v3481_v35 = vmax.f32 %v3479_v28, %v3480_v44  ;;  %v3493_v1 = vsel %vm1411_vm2, %v3378_v8, -inf }
 0x251   : > { %v9902_v17 = vrot.slane %v7995_v37, 4  ;;  %v3475_v31 = vrot.slane %v3474_v52, 2  ;;  %v3488_v14 = vmax.f32 %v3486_v49, %v3487_v6  ;;  %v3494_v9 = vrot.slane %v3493_v1, 4 }
 0x252   : > { %v9903_v54 = vrot.slane %v8002_v4, 4  ;;  %v8266_v46 = vmax.f32 %v1976_v12, %v1977_v43  ;;  %v3482_v16 = vrot.slane %v3481_v35, 2  ;;  %v1900_v45 = vrot.slane %v1899_v26, 1 }
 0x253   : > { %v1904_v13 = vmax.f32 %v7995_v37, %v9902_v17  ;;  %v8268_v11 = vmax.f32 %v3474_v52, %v3475_v31  ;;  %v3489_v28 = vrot.slane %v3488_v14, 2  ;;  %v3495_v8 = vmax.f32 %v3493_v1, %v3494_v9 }
 0x254   : > { %v1911_v63 = vmax.f32 %v8002_v4, %v9903_v54  ;;  %9904 = vst [vmem:[#allocation29_spill] sm:$0xff] %v8266_v46  ;;  %v8270_v38 = vmax.f32 %v3481_v35, %v3482_v16  ;;  %v1942_v49 = vrot.slane %v8073_v33, 1  ;;  %v1948_v6 = vmax.f32 %v1946_v7, %v1947_v29 }
 0x255   : > { %v1905_v55 = vrot.slane %v1904_v13, 2  ;;  %v8274_v57 = vmax.f32 %v3488_v14, %v3489_v28  ;;  %v3496_v4 = vrot.slane %v3495_v8, 2  ;;  %v8276_v43 = vmax.f32 %v1983_v24, %v1984_v32 }
 0x256   : > { %v1912_v44 = vrot.slane %v1911_v63, 2  ;;  %v8278_v54 = vmax.f32 %v1990_v10, %v1991_v22  ;;  %v8280_v52 = vmax.f32 %v1899_v26, %v1900_v45  ;;  %v8286_v7 = vmax.f32 %v8071_v15, %v1935_v53 }
 0x257   : > { %v1906_v37 = vmax.f32 %v1904_v13, %v1905_v55  ;;  %v1949_v29 = vrot.slane %v1948_v6, 1  ;;  %v8291_v24 = vmax.f32 %v8073_v33, %v1942_v49  ;;  %v1953_v10 = vmax.f32 %v8233_v21, %v1952_v56 }
 0x258   : > { %v1913_v12 = vmax.f32 %v1911_v63, %v1912_v44  ;;  %9905 = vst [vmem:[#allocation34_spill] sm:$0xff] %v8278_v54  ;;  %v8294_v26 = vmax.f32 %v3495_v8, %v3496_v4  ;;  %v1958_v15 = vsel %vm1411_vm2, %v1277_v47, -inf  ;;  %v1965_v63 = vsel %vm1411_vm2, %v1278_v18, -inf }
 0x259   : > { %v1907_v1 = vrot.slane %v1906_v37, 1  ;;  %v1954_v53 = vrot.slane %v1953_v10, 2  ;;  %v1959_v9 = vrot.slane %v1958_v15, 4  ;;  %v2488_v33 = vsel %vm2429_vm3, %v8069_v58, %v8058_v50 }
 0x25a   : > { %v1914_v31 = vrot.slane %v1913_v12, 1  ;;  %v8309_v21 = vmax.f32 %v1948_v6, %v1949_v29  ;;  %v1966_v56 = vrot.slane %v1965_v63, 4  ;;  %v2489_v16 = vsel %vm2431_vm4, %v8229_v48, %v2488_v33 }
 0x25b   : > { %v8296_v32 = vmax.f32 %v1906_v37, %v1907_v1  ;;  %v1955_v45 = vmax.f32 %v1953_v10, %v1954_v53  ;;  %v1960_v55 = vmax.f32 %v1958_v15, %v1959_v9  ;;  %v2490_v60 = vsel %vm2433_vm5, %v8241_v41, %v2489_v16  ;;  %v3289_v1 = vpop.f32.mrf.mxu2 }
 0x25c   : > { %v8298_v22 = vmax.f32 %v1913_v12, %v1914_v31  ;;  %v1967_v28 = vmax.f32 %v1965_v63, %v1966_v56  ;;  %v2491_v8 = vsel %vm2435_vm6, %v8251_v62, %v2490_v60  ;;  %v2756_v37 = vsel %vm2441_vm9, %v8069_v58, %v8058_v50  ;;  %v1020_v60 = vpop.permute.xlu2 %1019 }
 0x25d   : > { %v1956_v49 = vrot.slane %v1955_v45, 1  ;;  %v1961_v6 = vrot.slane %v1960_v55, 2  ;;  %v2492_v4 = vsel %vm2437_vm7, %v8280_v52, %v2491_v8  ;;  %v2757_v15 = vsel %vm2429_vm3, %v8229_v48, %v2756_v37  ;;  %v8354_v8 = vpop.permute.xlu1 %779 }
 0x25e   : > { %v2494_v47 = vsel %vm2441_vm9, %v8158_v25, %v8298_v22  ;;  %v1968_v31 = vrot.slane %v1967_v28, 2  ;;  %v2493_v29 = vsel %vm2439_vm8, %v8296_v32, %v2492_v4  ;;  %v2758_v63 = vsel %vm2431_vm4, %v8241_v41, %v2757_v15 }
 0x25f   : > { %v2495_v18 = vsel %vm2429_vm3, %v8199_v27, %v2494_v47  ;;  %v8337_v50 = vmax.f32 %v1955_v45, %v1956_v49  ;;  %v1962_v53 = vmax.f32 %v1960_v55, %v1961_v6  ;;  %v2560_v9 = vsel %vm537_vm0, 0.0, %v2493_v29 }
 0x260   : > { %v2496_v44 = vsel %vm2431_vm4, %v8286_v7, %v2495_v18  ;;  %v1969_v33 = vmax.f32 %v1967_v28, %v1968_v31  ;;  %v2759_v56 = vsel %vm2433_vm5, %v8251_v62, %v2758_v63  ;;  %v2763_v16 = vsel %vm2441_vm9, %v8199_v27, %v8158_v25 }
 0x261   : > { %v2497_v12 = vsel %vm2433_vm5, %v8291_v24, %v2496_v44  ;;  %v3290_v47 = vadd.f32 %v3289_v1, %v8212_v3  ;;  %v1963_v18 = vrot.slane %v1962_v53, 1  ;;  %v2760_v55 = vsel %vm2435_vm6, %v8280_v52, %v2759_v56 }
 0x262   : > { %v2498_v10 = vsel %vm2435_vm6, %v8309_v21, %v2497_v12  ;;  %v2764_v28 = vsel %vm2429_vm3, %v8286_v7, %v2763_v16  ;;  %v1970_v44 = vrot.slane %v1969_v33, 1  ;;  %v2761_v37 = vsel %vm2437_vm7, %v8296_v32, %v2760_v55 }
 0x263   : > { %v2499_v45 = vsel %vm2437_vm7, %v8337_v50, %v2498_v10  ;;  %v2765_v3 = vsel %vm2431_vm4, %v8291_v24, %v2764_v28  ;;  %v3329_v49 = vadd.f32 %v8218_v19, %v3290_v47  ;;  %v8361_v6 = vmax.f32 %v1962_v53, %v1963_v18 }
 0x264   : > { %v2762_v4 = vsel %vm2439_vm8, %v8298_v22, %v2761_v37  ;;  %v2766_v12 = vsel %vm2433_vm5, %v8309_v21, %v2765_v3  ;;  %v1080_v1 = vmul.f32 %v8176_v40, %v1020_v60  ;;  %v8368_v31 = vmax.f32 %v1969_v33, %v1970_v44 }
 0x265   : > { %v2767_v29 = vsel %vm2435_vm6, %v8337_v50, %v2766_v12  ;;  %v2844_v10 = vpack.c.bf16 %v2762_v4, %v2560_v9  ;;  %v3345_v15 = vmax.f32 %v3329_v49, 0.0  ;;  %v2500_v63 = vsel %vm2439_vm8, %v8361_v6, %v2499_v45 }
 0x266   : > { %v2768_v53 = vsel %vm2437_vm7, %v8361_v6, %v2767_v29  ;;  %v1112_v56 = vadd.f32 %v1080_v1, %v8246_v20  ;;  %v9906_v16 = vrot.slane %v8203_v42, 1  ;;  %v9907_v47 = vrot.slane %v9892_v5, 1 }
 0x267   : > { %v2769_v60 = vsel %vm2439_vm8, %v8368_v31, %v2768_v53  ;;  %v2964_v18 = vunpack.c.l.b16 %v2844_v10  ;;  %v2965_v9 = vunpack.c.h.b16 %v2844_v10  ;;  %v3379_v55 = vrot.slane %v3345_v15, 2 }
 0x268   : > { %v666_v33 = vsel %vm610_vm1, %v9907_v47, %v9906_v16  ;;  %v2846_v28 = vpack.c.bf16 %v2769_v60, %v2500_v63  ;;  %v3380_v45 = vrot.slane %v3345_v15, 4  ;;  %v3381_v44 = vrot.slane %v3345_v15, 6  ;;  %v3243_v60 = vpop.f32.mrf.mxu1 }
 0x269   : > { %1048 = vperm.xlu2 %6401, %v666_v33   ;;  %v3500_v37 = vsel %vm1411_vm2, %v3345_v15, -inf  ;;  %v3507_v20 = vsel %vm1411_vm2, %v3379_v55, -inf  ;;  %v1146_v49 = vadd.f32 %v8187_v0, %v1112_v56  ;;  %v9908_v4 = vrot.slane %v8203_v42, 7  ;;  %v3194_v56 = vpop.f32.mrf.mxu0 }
 0x26a   : > { %v3501_v3 = vrot.slane %v3500_v37, 4  ;;  %v9909_v12 = vrot.slane %v9892_v5, 7  ;;  %v2967_v29 = vunpack.c.l.b16 %v2846_v28  ;;  %v2968_v10 = vunpack.c.h.b16 %v2846_v28 }
 0x26b   : > { %v3508_v53 = vrot.slane %v3507_v20, 4  ;;  %v3514_v63 = vsel %vm1411_vm2, %v3380_v45, -inf  ;;  %v3498_v16 = vrot.slane %v8294_v26, 1  ;;  %v3521_v47 = vsel %vm1411_vm2, %v3381_v44, -inf }
 0x26c   : > { %v593_v1 = vsel %vm537_vm0, %v9909_v12, %v9908_v4  ;;  %v3502_v15 = vmax.f32 %v3500_v37, %v3501_v3  ;;  %v8395_v33 = vmax.f32 %v1146_v49, 0.0  ;;  %v3000_v55 = vpack.c.b16 %v2967_v29, %v2964_v18  ;;  %v776_v4 = vpop.permute.xlu1 %775 }
 0x26d   : > { %817 = vperm.xlu1 %6402, %v593_v1   ;;  %v3001_v17 = vpack.c.b16 %v2968_v10, %v2965_v9  ;;  %v3509_v14 = vmax.f32 %v3507_v20, %v3508_v53  ;;  %v3515_v13 = vrot.slane %v3514_v63, 4  ;;  %v3522_v28 = vrot.slane %v3521_v47, 4  ;;  %v3292_v1 = vpop.f32.mrf.mxu2 }
 0x26e   : > { %v3503_v12 = vrot.slane %v3502_v15, 2  ;;  %v1288_v35 = vrot.slane %v8395_v33, 2  ;;  %v1289_v45 = vrot.slane %v8395_v33, 4  ;;  %v9910_v37 = vrot.slane %v8268_v11, 1  ;;  %3208 = vmatmul.bf16.gmra.mxu0 %v3000_v55  ;;  %v1015_v55 = vpop.permute.xlu0 %1014 }
 0x26f   : > { %v9911_v3 = vrot.slane %v8270_v38, 1  ;;  %v9913_v9 = vrot.slane %v8274_v57, 1  ;;  %3257 = vmatmul.bf16.gmra.mxu1 %v3001_v17  ;;  %v2056_v49 = vsel %vm1411_vm2, %v8395_v33, -inf  ;;  %v3510_v10 = vrot.slane %v3509_v14, 2 }
 0x270   : > { %v8402_v44 = vmax.f32 %v8268_v11, %v9910_v37  ;;  %v3504_v29 = vmax.f32 %v3502_v15, %v3503_v12  ;;  %v2057_v53 = vrot.slane %v2056_v49, 4  ;;  %v2063_v11 = vsel %vm1411_vm2, %v1288_v35, -inf }
 0x271   : > { %v8407_v18 = vmax.f32 %v8270_v38, %v9911_v3  ;;  %v8412_v20 = vmax.f32 %v8274_v57, %v9913_v9  ;;  %v8418_v37 = vmax.f32 %v8294_v26, %v3498_v16  ;;  %v8420_v38 = vmax.f32 %v3514_v63, %v3515_v13 }
 0x272   : > { %v2064_v3 = vrot.slane %v2063_v11, 4  ;;  %v9916_v59 = vrot.slane %v8203_v42, 1  ;;  %v8425_v17 = vmax.f32 %v3521_v47, %v3522_v28  ;;  %v8428_v9 = vsel %vm1411_vm2, %v1289_v45, -inf  ;;  %v3196_v28 = vpop.f32.mrf.mxu0  ;;  %v3245_v45 = vpop.f32.mrf.mxu1 }
 0x273   : > { %9912 = vst [vmem:[#allocation33_spill] sm:$0xff] %v8407_v18  ;;  %v2624_v35 = vsel %vm2441_vm9, %v8229_v48, %v8069_v58  ;;  %v2631_v13 = vsel %vm2441_vm9, %v8286_v7, %v8199_v27  ;;  %v3505_v26 = vrot.slane %v3504_v29, 1  ;;  %v8441_v16 = vmax.f32 %v3509_v14, %v3510_v10  ;;  %v6180_v48 = vld [vmem:[#allocation7 + $0xf8] sm:$0xff] }
 0x274   : > { %9914 = vst [vmem:[#allocation31_spill] sm:$0xff] %v8412_v20  ;;  %v682_v57 = vsel %vm610_vm1, %v9916_v59, 0.0  ;;  %v2625_v59 = vsel %vm2429_vm3, %v8241_v41, %v2624_v35  ;;  %v2632_v63 = vsel %vm2429_vm3, %v8291_v24, %v2631_v13  ;;  %v2058_v15 = vmax.f32 %v2056_v49, %v2057_v53  ;;  %4449 = vmatpush.bf16.msra.mxu3 %v6180_v48  ;;  %v6179_v49 = vld [vmem:[#allocation7 + $0xf0] sm:$0xff] }
 0x275   : > { %9915 = vst [vmem:[#allocation32_spill] sm:$0xff] %v8418_v37  ;;  %1053 = vperm.xlu0 %6399, %v682_v57   ;;  %v2626_v47 = vsel %vm2431_vm4, %v8251_v62, %v2625_v59  ;;  %v2633_v58 = vsel %vm2431_vm4, %v8309_v21, %v2632_v63  ;;  %v8447_v27 = vmax.f32 %v2063_v11, %v2064_v3  ;;  %v3294_v3 = vpop.f32.mrf.mxu2 }
 0x276   : > { %v2627_v41 = vsel %vm2433_vm5, %v8280_v52, %v2626_v47  ;;  %v2634_v24 = vsel %vm2433_vm5, %v8337_v50, %v2633_v58  ;;  %v3244_v12 = vadd.f32 %v3243_v60, %v3194_v56  ;;  %v843_v21 = vmul.f32 %v8173_v23, %v8354_v8  ;;  %v1011_v60 = vpop.permute.xlu1 %1010  ;;  %v789_v47 = vpop.permute.xlu0 %788 }
 0x277   : > { %v2628_v14 = vsel %vm2435_vm6, %v8296_v32, %v2627_v41  ;;  %v2635_v62 = vsel %vm2435_vm6, %v8361_v6, %v2634_v24  ;;  %v8460_v10 = vmax.f32 %v3504_v29, %v3505_v26  ;;  %v9918_v32 = vrot.slane %v9892_v5, 1 }
 0x278   : > { %v2629_v52 = vsel %vm2437_vm7, %v8298_v22, %v2628_v14  ;;  %v2636_v50 = vsel %vm2437_vm7, %v8368_v31, %v2635_v62  ;;  %v9919_v6 = vrot.slane %v7942_v61, 1  ;;  %v2059_v8 = vrot.slane %v2058_v15, 2  ;;  %4450 = vmatpush.bf16.msra.mxu3 %v6179_v49 }
 0x279   : > { %9917 = vst [vmem:[#allocation30_spill] sm:$0xff] %v8460_v10  ;;  %v2630_v53 = vsel %vm2439_vm8, %v8158_v25, %v2629_v52  ;;  %v2696_v29 = vsel %vm610_vm1, %v2636_v50, 0.0  ;;  %v3293_v11 = vadd.f32 %v3292_v1, %v3244_v12  ;;  %v3246_v35 = vadd.f32 %v3245_v45, %v3196_v28 }
 0x27a   : > { %v664_v56 = vsel %vm610_vm1, %v9919_v6, %v9918_v32  ;;  %v2845_v22 = vpack.c.bf16 %v2630_v53, %v2630_v53  ;;  %v2847_v57 = vpack.c.bf16 %v2696_v29, %v2696_v29  ;;  %v842_v31 = vmul.f32 %v8173_v23, %v776_v4  ;;  %v1024_v4 = vpop.permute.xlu2 %1023 }
 0x27b   : > { %1044 = vperm.xlu2 %6401, %v664_v56   ;;  %v909_v5 = vadd.f32 %v7371_v51, %v843_v21  ;;  %v3330_v61 = vadd.f32 %v8218_v19, %v3293_v11  ;;  %v1079_v13 = vmul.f32 %v8176_v40, %v1015_v55  ;;  %v1078_v26 = vmul.f32 %v8176_v40, %v1011_v60 }
 0x27c   : > { %v2966_v25 = vunpack.c.l.b16 %v2845_v22  ;;  %v2969_v59 = vunpack.c.l.b16 %v2847_v57  ;;  %v908_v63 = vadd.f32 %v7727_v30, %v842_v31  ;;  %v3295_v1 = vadd.f32 %v3294_v3, %v3246_v35 }
 0x27d   : > { %v8480_v58 = vmax.f32 %v2058_v15, %v2059_v8  ;;  %v3346_v41 = vmax.f32 %v3330_v61, 0.0  ;;  %v1111_v51 = vadd.f32 %v1079_v13, %v909_v5  ;;  %v845_v62 = vmul.f32 %v8173_v23, %v789_v47 }
 0x27e   : > { %v3002_v24 = vpack.c.b16 %v2969_v59, %v2966_v25  ;;  %v3331_v14 = vadd.f32 %v8218_v19, %v3295_v1  ;;  %v1110_v55 = vadd.f32 %v1078_v26, %v908_v63  ;;  %v8487_v15 = vmul.f32 %v8176_v40, %v1024_v4 }
 0x27f   : > { %v3382_v12 = vrot.slane %v3346_v41, 2  ;;  %v3383_v21 = vrot.slane %v3346_v41, 4  ;;  %v3384_v28 = vrot.slane %v3346_v41, 6  ;;  %v3528_v30 = vsel %vm1411_vm2, %v3346_v41, -inf }
 0x280   : > { %3306 = vmatmul.bf16.gmra.mxu2 %v3002_v24  ;;  %v3529_v45 = vrot.slane %v3528_v30, 4  ;;  %v1145_v49 = vadd.f32 %v8187_v0, %v1111_v51  ;;  %v3347_v52 = vmax.f32 %v3331_v14, 0.0  ;;  %v1144_v40 = vadd.f32 %v8187_v0, %v1110_v55 }
 0x281   : > { %v3535_v32 = vsel %vm1411_vm2, %v3382_v12, -inf  ;;  %v3542_v6 = vsel %vm1411_vm2, %v3383_v21, -inf  ;;  %v3549_v56 = vsel %vm1411_vm2, %v3384_v28, -inf  ;;  %v8496_v22 = vadd.f32 %v7884_v39, %v845_v62  ;;  %v6178_v12 = vld [vmem:[#allocation7 + $0xe8] sm:$0xff] }
 0x282   : > { %v3530_v60 = vmax.f32 %v3528_v30, %v3529_v45  ;;  %v3536_v8 = vrot.slane %v3535_v32, 4  ;;  %v3543_v53 = vrot.slane %v3542_v6, 4  ;;  %v3550_v29 = vrot.slane %v3549_v56, 4  ;;  %4451 = vmatpush.bf16.msra.mxu3 %v6178_v12 }
 0x283   : > { %v1177_v11 = vmax.f32 %v1145_v49, 0.0  ;;  %v3385_v3 = vrot.slane %v3347_v52, 2  ;;  %v3386_v25 = vrot.slane %v3347_v52, 4  ;;  %v3556_v45 = vsel %vm1411_vm2, %v3347_v52, -inf }
 0x284   : > { %v3531_v57 = vrot.slane %v3530_v60, 2  ;;  %v3537_v35 = vmax.f32 %v3535_v32, %v3536_v8  ;;  %v3544_v31 = vmax.f32 %v3542_v6, %v3543_v53  ;;  %v3551_v5 = vmax.f32 %v3549_v56, %v3550_v29  ;;  %v3248_v8 = vpop.f32.mrf.mxu1  ;;  %v6177_v53 = vld [vmem:[#allocation7 + $0xe0] sm:$0xff] }
 0x285   : > { %v1285_v61 = vrot.slane %v1177_v11, 2  ;;  %v1286_v13 = vrot.slane %v1177_v11, 4  ;;  %v1287_v26 = vrot.slane %v1177_v11, 6  ;;  %v8499_v4 = vsel %vm1411_vm2, %v1177_v11, -inf }
 0x286   : > { %v3532_v59 = vmax.f32 %v3530_v60, %v3531_v57  ;;  %v3538_v63 = vrot.slane %v3537_v35, 2  ;;  %v3545_v1 = vrot.slane %v3544_v31, 2  ;;  %v3552_v47 = vrot.slane %v3551_v5, 2  ;;  %v3199_v60 = vpop.f32.mrf.mxu0  ;;  %4452 = vmatpush.bf16.msra.mxu3 %v6177_v53 }
 0x287   : > { %v2035_v41 = vsel %vm1411_vm2, %v1285_v61, -inf  ;;  %v2042_v39 = vsel %vm1411_vm2, %v1286_v13, -inf  ;;  %v2049_v51 = vsel %vm1411_vm2, %v1287_v26, -inf  ;;  %v3387_v56 = vrot.slane %v3347_v52, 6  ;;  %v3297_v26 = vpop.f32.mrf.mxu2 }
 0x288   : > { %v3533_v24 = vrot.slane %v3532_v59, 1  ;;  %v3539_v14 = vmax.f32 %v3537_v35, %v3538_v63  ;;  %v3546_v55 = vmax.f32 %v3544_v31, %v3545_v1  ;;  %v3553_v62 = vmax.f32 %v3551_v5, %v3552_v47 }
 0x289   : > { %v2036_v21 = vrot.slane %v2035_v41, 4  ;;  %v2043_v28 = vrot.slane %v2042_v39, 4  ;;  %v2050_v30 = vrot.slane %v2049_v51, 4  ;;  %v3557_v35 = vrot.slane %v3556_v45, 4 }
 0x28a   : > { %v3540_v49 = vrot.slane %v3539_v14, 1  ;;  %v3547_v32 = vrot.slane %v3546_v55, 1  ;;  %v8506_v31 = vmax.f32 %v3532_v59, %v3533_v24  ;;  %v3554_v61 = vrot.slane %v3553_v62, 1 }
 0x28b   : > { %v2037_v29 = vmax.f32 %v2035_v41, %v2036_v21  ;;  %v2044_v11 = vmax.f32 %v2042_v39, %v2043_v28  ;;  %v2051_v57 = vmax.f32 %v2049_v51, %v2050_v30  ;;  %v3563_v13 = vsel %vm1411_vm2, %v3385_v3, -inf  ;;  %v6176_v51 = vld [vmem:[#allocation7 + $0xd8] sm:$0xff] }
 0x28c   : > { %v8508_v5 = vmax.f32 %v3539_v14, %v3540_v49  ;;  %v3558_v52 = vmax.f32 %v3556_v45, %v3557_v35  ;;  %v3564_v12 = vrot.slane %v3563_v13, 4  ;;  %v3570_v42 = vsel %vm1411_vm2, %v3386_v25, -inf  ;;  %4453 = vmatpush.bf16.msra.mxu3 %v6176_v51 }
 0x28d   : > { %v2038_v63 = vrot.slane %v2037_v29, 2  ;;  %v2045_v1 = vrot.slane %v2044_v11, 2  ;;  %v2052_v47 = vrot.slane %v2051_v57, 2  ;;  %v3577_v41 = vsel %vm1411_vm2, %v3387_v56, -inf }
 0x28e   : > { %9920 = vst [vmem:[#allocation20_spill] sm:$0xff] %v8508_v5  ;;  %v1176_v39 = vmax.f32 %v1144_v40, 0.0  ;;  %v8513_v59 = vmax.f32 %v3546_v55, %v3547_v32  ;;  %v3559_v3 = vrot.slane %v3558_v52, 2  ;;  %v8519_v21 = vmax.f32 %v3553_v62, %v3554_v61  ;;  %v6174_v55 = vld [vmem:[#allocation7 + $0xc8] sm:$0xff] }
 0x28f   : > { %v8515_v24 = vmax.f32 %v2044_v11, %v2045_v1  ;;  %v8517_v14 = vmax.f32 %v2051_v57, %v2052_v47  ;;  %v3565_v28 = vmax.f32 %v3563_v13, %v3564_v12  ;;  %v3571_v30 = vrot.slane %v3570_v42, 4  ;;  %v6175_v11 = vld [vmem:[#allocation7 + $0xd0] sm:$0xff]  ;;  %v3201_v12 = vpop.f32.mrf.mxu0 }
 0x290   : > { %9921 = vst [vmem:[#allocation17_spill] sm:$0xff] %v8513_v59  ;;  %v1282_v45 = vrot.slane %v1176_v39, 2  ;;  %v8521_v49 = vmax.f32 %v2037_v29, %v2038_v63  ;;  %v3560_v25 = vmax.f32 %v3558_v52, %v3559_v3  ;;  %v3578_v35 = vrot.slane %v3577_v41, 4  ;;  %v801_v29 = vpop.permute.xlu2 %800  ;;  %v3250_v3 = vpop.f32.mrf.mxu1  ;;  %4454 = vmatpush.bf16.msra.mxu3 %v6175_v11 }
 0x291   : > { %9922 = vst [vmem:[#allocation23_spill] sm:$0xff] %v8519_v21  ;;  %v1283_v56 = vrot.slane %v1176_v39, 4  ;;  %v3566_v32 = vrot.slane %v3565_v28, 2  ;;  %v1284_v53 = vrot.slane %v1176_v39, 6  ;;  %v2000_v62 = vsel %vm1411_vm2, %v1176_v39, -inf }
 0x292   : > { %v3561_v57 = vrot.slane %v3560_v25, 1  ;;  %v2007_v61 = vsel %vm1411_vm2, %v1282_v45, -inf  ;;  %v8528_v63 = vmax.f32 %v3570_v42, %v3571_v30  ;;  %v2001_v1 = vrot.slane %v2000_v62, 4  ;;  %v3299_v30 = vpop.f32.mrf.mxu2 }
 0x293   : > { %v2014_v13 = vsel %vm1411_vm2, %v1283_v56, -inf  ;;  %v2008_v47 = vrot.slane %v2007_v61, 4  ;;  %v8530_v7 = vmax.f32 %v3565_v28, %v3566_v32  ;;  %v8532_v48 = vmax.f32 %v3577_v41, %v3578_v35 }
 0x294   : > { %v2015_v52 = vrot.slane %v2014_v13, 4  ;;  %v1113_v51 = vadd.f32 %v8487_v15, %v8496_v22  ;;  %v3249_v39 = vadd.f32 %v3248_v8, %v3199_v60  ;;  %v8536_v50 = vmax.f32 %v3560_v25, %v3561_v57  ;;  %4455 = vmatpush.bf16.msra.mxu3 %v6174_v55 }
 0x295   : > { %v2002_v45 = vmax.f32 %v2000_v62, %v2001_v1  ;;  %v8538_v56 = vmax.f32 %v2007_v61, %v2008_v47  ;;  %v8541_v42 = vsel %vm1411_vm2, %v1284_v53, -inf  ;;  %v848_v41 = vmul.f32 %v8173_v23, %v801_v29 }
 0x296   : > { %9923 = vst [vmem:[#allocation24_spill] sm:$0xff] %v8536_v50  ;;  %v1147_v28 = vadd.f32 %v8187_v0, %v1113_v51  ;;  %v3298_v32 = vadd.f32 %v3297_v26, %v3249_v39  ;;  %v3251_v35 = vadd.f32 %v3250_v3, %v3201_v12  ;;  %v8545_v15 = vmax.f32 %v2014_v13, %v2015_v52  ;;  %v6173_v26 = vld [vmem:[#allocation7 + $0xc0] sm:$0xff] }
 0x297   : > { %v2003_v40 = vrot.slane %v2002_v45, 2  ;;  %v3512_v22 = vrot.slane %v8441_v16, 1  ;;  %v3517_v60 = vrot.slane %v8420_v38, 2  ;;  %v8555_v23 = vadd.f32 %v7901_v34, %v848_v41 }
 0x298   : > { %v1179_v25 = vmax.f32 %v1147_v28, 0.0  ;;  %v3332_v53 = vadd.f32 %v8218_v19, %v3298_v32  ;;  %v3300_v11 = vadd.f32 %v3299_v30, %v3251_v35  ;;  %4456 = vmatpush.bf16.msra.mxu3 %v6173_v26 }
 0x299   : > { %v8551_v57 = vmax.f32 %v2002_v45, %v2003_v40  ;;  %9924 = vst [vmem:[#allocation25_spill] sm:$0xff] %v8555_v23  ;;  %v8558_v62 = vmax.f32 %v8441_v16, %v3512_v22  ;;  %v8562_v40 = vmax.f32 %v8420_v38, %v3517_v60 }
 0x29a   : > { %v1291_v61 = vrot.slane %v1179_v25, 2  ;;  %v1292_v13 = vrot.slane %v1179_v25, 4  ;;  %v1293_v29 = vrot.slane %v1179_v25, 6  ;;  %v2084_v1 = vsel %vm1411_vm2, %v1179_v25, -inf }
 0x29b   : > { %9925 = vst [vmem:[#allocation19_spill] sm:$0xff] %v8558_v62  ;;  %v2085_v47 = vrot.slane %v2084_v1, 4  ;;  %v3348_v52 = vmax.f32 %v3332_v53, 0.0  ;;  %v3333_v16 = vadd.f32 %v8218_v19, %v3300_v11 }
 0x29c   : > { %v2091_v34 = vsel %vm1411_vm2, %v1291_v61, -inf  ;;  %v2098_v55 = vsel %vm1411_vm2, %v1292_v13, -inf  ;;  %v2105_v3 = vsel %vm1411_vm2, %v1293_v29, -inf }
 0x29d   : > { %v2086_v51 = vmax.f32 %v2084_v1, %v2085_v47  ;;  %v2092_v39 = vrot.slane %v2091_v34, 4  ;;  %v2099_v45 = vrot.slane %v2098_v55, 4  ;;  %v2106_v30 = vrot.slane %v2105_v3, 4 }
 0x29e   : > { %v3388_v28 = vrot.slane %v3348_v52, 2  ;;  %v3389_v32 = vrot.slane %v3348_v52, 4  ;;  %v3390_v41 = vrot.slane %v3348_v52, 6  ;;  %v3584_v38 = vsel %vm1411_vm2, %v3348_v52, -inf }
 0x29f   : > { %v2087_v35 = vrot.slane %v2086_v51, 2  ;;  %v2093_v22 = vmax.f32 %v2091_v34, %v2092_v39  ;;  %v2100_v60 = vmax.f32 %v2098_v55, %v2099_v45  ;;  %v2107_v25 = vmax.f32 %v2105_v3, %v2106_v30 }
 0x2a0   : > { %v3585_v53 = vrot.slane %v3584_v38, 4  ;;  %v3591_v61 = vsel %vm1411_vm2, %v3388_v28, -inf  ;;  %v3598_v13 = vsel %vm1411_vm2, %v3389_v32, -inf  ;;  %v3605_v19 = vsel %vm1411_vm2, %v3390_v41, -inf }
 0x2a1   : > { %v2088_v11 = vmax.f32 %v2086_v51, %v2087_v35  ;;  %v2094_v29 = vrot.slane %v2093_v22, 2  ;;  %v2101_v1 = vrot.slane %v2100_v60, 2  ;;  %v2108_v26 = vrot.slane %v2107_v25, 2 }
 0x2a2   : > { %v3586_v47 = vmax.f32 %v3584_v38, %v3585_v53  ;;  %v3592_v6 = vrot.slane %v3591_v61, 4  ;;  %v3599_v8 = vrot.slane %v3598_v13, 4  ;;  %v3606_v0 = vrot.slane %v3605_v19, 4 }
 0x2a3   : > { %v2089_v34 = vrot.slane %v2088_v11, 1  ;;  %v2095_v55 = vmax.f32 %v2093_v22, %v2094_v29  ;;  %v3519_v3 = vrot.slane %v8562_v40, 1  ;;  %v8577_v51 = vmax.f32 %v2100_v60, %v2101_v1 }
 0x2a4   : > { %v3587_v39 = vrot.slane %v3586_v47, 2  ;;  %v3593_v45 = vmax.f32 %v3591_v61, %v3592_v6  ;;  %v3600_v30 = vmax.f32 %v3598_v13, %v3599_v8  ;;  %v3607_v28 = vmax.f32 %v3605_v19, %v3606_v0  ;;  %v9948_v61 = vld [vmem:[#allocation29_spill] sm:$0xff] }
 0x2a5   : > { %v8575_v32 = vmax.f32 %v2088_v11, %v2089_v34  ;;  %v8579_v41 = vmax.f32 %v2107_v25, %v2108_v26  ;;  %v3349_v38 = vmax.f32 %v3333_v16, 0.0  ;;  %v2096_v52 = vrot.slane %v2095_v55, 1 }
 0x2a6   : > { %v3588_v35 = vmax.f32 %v3586_v47, %v3587_v39  ;;  %v3594_v53 = vrot.slane %v3593_v45, 2  ;;  %v3601_v12 = vrot.slane %v3600_v30, 2  ;;  %v3608_v36 = vrot.slane %v3607_v28, 2 }
 0x2a7   : > { %v3391_v23 = vrot.slane %v3349_v38, 2  ;;  %v3392_v22 = vrot.slane %v3349_v38, 4  ;;  %v3393_v29 = vrot.slane %v3349_v38, 6  ;;  %v3612_v0 = vsel %vm1411_vm2, %v3349_v38, -inf }
 0x2a8   : > { %v3589_v46 = vrot.slane %v3588_v35, 1  ;;  %v3595_v54 = vmax.f32 %v3593_v45, %v3594_v53  ;;  %v3602_v6 = vmax.f32 %v3600_v30, %v3601_v12  ;;  %v3609_v8 = vmax.f32 %v3607_v28, %v3608_v36 }
 0x2a9   : > { %v3619_v60 = vsel %vm1411_vm2, %v3391_v23, -inf  ;;  %v3626_v25 = vsel %vm1411_vm2, %v3392_v22, -inf  ;;  %v3633_v16 = vsel %vm1411_vm2, %v3393_v29, -inf  ;;  %v8586_v1 = vmax.f32 %v2095_v55, %v2096_v52 }
 0x2aa   : > { %v3596_v13 = vrot.slane %v3595_v54, 1  ;;  %v3603_v19 = vrot.slane %v3602_v6, 1  ;;  %v3610_v11 = vrot.slane %v3609_v8, 1  ;;  %v8588_v26 = vmax.f32 %v3588_v35, %v3589_v46 }
 0x2ab   : > { %v3613_v47 = vrot.slane %v3612_v0, 4  ;;  %v3620_v12 = vrot.slane %v3619_v60, 4  ;;  %v3627_v23 = vrot.slane %v3626_v25, 4  ;;  %v3634_v39 = vrot.slane %v3633_v16, 4 }
 0x2ac   : > { %v8590_v36 = vmax.f32 %v3595_v54, %v3596_v13  ;;  %v8592_v34 = vmax.f32 %v3602_v6, %v3603_v19  ;;  %v8594_v45 = vmax.f32 %v3609_v8, %v3610_v11  ;;  %v8597_v38 = vmax.f32 %v8562_v40, %v3519_v3 }
 0x2ad   : > { %v3614_v30 = vmax.f32 %v3612_v0, %v3613_v47  ;;  %v3621_v28 = vmax.f32 %v3619_v60, %v3620_v12  ;;  %v9928_v52 = vrot.slane %v8425_v17, 2  ;;  %v3568_v55 = vrot.slane %v8530_v7, 1 }
 0x2ae   : > { %9926 = vst [vmem:[#allocation18_spill] sm:$0xff] %v8594_v45  ;;  %v3573_v54 = vrot.slane %v8528_v63, 2  ;;  %v3580_v35 = vrot.slane %v8532_v48, 2  ;;  %v3977_v29 = vsel %vm2429_vm3, %v8407_v18, %v8402_v44  ;;  %v3983_v40 = vsel %vm2429_vm3, %v8508_v5, %v8506_v31 }
 0x2af   : > { %9927 = vst [vmem:[#allocation27_spill] sm:$0xff] %v8597_v38  ;;  %v3525_v46 = vmax.f32 %v8425_v17, %v9928_v52  ;;  %v3615_v53 = vrot.slane %v3614_v30, 2  ;;  %v3622_v22 = vrot.slane %v3621_v28, 2  ;;  %v8611_v3 = vmax.f32 %v3626_v25, %v3627_v23 }
 0x2b0   : > { %v3574_v17 = vmax.f32 %v8528_v63, %v3573_v54  ;;  %v3581_v8 = vmax.f32 %v8532_v48, %v3580_v35  ;;  %v8615_v0 = vmax.f32 %v3633_v16, %v3634_v39  ;;  %v8618_v60 = vmax.f32 %v8530_v7, %v3568_v55 }
 0x2b1   : > { %v3526_v6 = vrot.slane %v3525_v46, 1  ;;  %v3978_v13 = vsel %vm2431_vm4, %v8412_v20, %v3977_v29  ;;  %v3984_v19 = vsel %vm2431_vm4, %v8513_v59, %v3983_v40  ;;  %v8624_v11 = vmax.f32 %v3614_v30, %v3615_v53 }
 0x2b2   : > { %9929 = vst [vmem:[#allocation36_spill] sm:$0xff] %v8618_v60  ;;  %v3575_v25 = vrot.slane %v3574_v17, 1  ;;  %v3582_v47 = vrot.slane %v3581_v8, 1  ;;  %v3979_v63 = vsel %vm2433_vm5, %v8418_v37, %v3978_v13  ;;  %v8628_v12 = vmax.f32 %v3621_v28, %v3622_v22 }
 0x2b3   : > { %v3980_v48 = vsel %vm2435_vm6, %v8460_v10, %v3979_v63  ;;  %v3985_v7 = vsel %vm2433_vm5, %v8519_v21, %v3984_v19  ;;  %v4113_v16 = vsel %vm2441_vm9, %v8407_v18, %v8402_v44  ;;  %v8637_v23 = vmax.f32 %v3525_v46, %v3526_v6 }
 0x2b4   : > { %v8639_v39 = vmax.f32 %v3574_v17, %v3575_v25  ;;  %v3981_v30 = vsel %vm2437_vm7, %v8558_v62, %v3980_v48  ;;  %v3986_v28 = vsel %vm2435_vm6, %v8536_v50, %v3985_v7  ;;  %v8645_v52 = vmax.f32 %v3581_v8, %v3582_v47 }
 0x2b5   : > { %9930 = vst [vmem:[#allocation37_spill] sm:$0xff] %v8637_v23  ;;  %v3982_v55 = vsel %vm2439_vm8, %v8597_v38, %v3981_v30  ;;  %v3987_v54 = vsel %vm2437_vm7, %v8618_v60, %v3986_v28  ;;  %v4114_v44 = vsel %vm2429_vm3, %v8412_v20, %v4113_v16  ;;  %v4120_v22 = vsel %vm2441_vm9, %v8508_v5, %v8506_v31 }
 0x2b6   : > { %9931 = vst [vmem:[#allocation38_spill] sm:$0xff] %v8639_v39  ;;  %v3988_v46 = vsel %vm2439_vm8, %v8639_v39, %v3987_v54  ;;  %v4033_v35 = vsel %vm537_vm0, 0.0, %v3982_v55  ;;  %v4115_v53 = vsel %vm2431_vm4, %v8418_v37, %v4114_v44  ;;  %v4121_v6 = vsel %vm2429_vm3, %v8513_v59, %v4120_v22 }
 0x2b7   : > { %9932 = vst [vmem:[#allocation39_spill] sm:$0xff] %v8645_v52  ;;  %v4034_v29 = vsel %vm537_vm0, 0.0, %v3988_v46  ;;  %v4116_v40 = vsel %vm2433_vm5, %v8460_v10, %v4115_v53  ;;  %v9933_v17 = vrot.slane %v8257_v2, 1  ;;  %v4122_v19 = vsel %vm2431_vm4, %v8519_v21, %v4121_v6 }
 0x2b8   : > { %v4117_v13 = vsel %vm2435_vm6, %v8558_v62, %v4116_v40  ;;  %v9934_v31 = vrot.slane %v8551_v57, 1  ;;  %v9935_v47 = vrot.slane %v8538_v56, 2  ;;  %v2017_v7 = vrot.slane %v8545_v15, 2 }
 0x2b9   : > { %v8669_v8 = vmax.f32 %v8257_v2, %v9933_v17  ;;  %v4118_v48 = vsel %vm2437_vm7, %v8597_v38, %v4117_v13  ;;  %v4123_v2 = vsel %vm2433_vm5, %v8536_v50, %v4122_v19  ;;  %v9936_v16 = vrot.slane %v8541_v42, 4 }
 0x2ba   : > { %v8678_v25 = vmax.f32 %v8551_v57, %v9934_v31  ;;  %v2011_v63 = vmax.f32 %v8538_v56, %v9935_v47  ;;  %v4119_v57 = vsel %vm2439_vm8, %v8637_v23, %v4118_v48  ;;  %v4124_v28 = vsel %vm2435_vm6, %v8618_v60, %v4123_v2 }
 0x2bb   : > { %v2023_v30 = vmax.f32 %v8541_v42, %v9936_v16  ;;  %v9937_v56 = vrot.slane %v8499_v4, 4  ;;  %v4125_v44 = vsel %vm2437_vm7, %v8639_v39, %v4124_v28  ;;  %v8700_v46 = vpack.c.bf16 %v4119_v57, %v4033_v35 }
 0x2bc   : > { %v2012_v55 = vrot.slane %v2011_v63, 1  ;;  %v2018_v53 = vmax.f32 %v8545_v15, %v2017_v7  ;;  %v4126_v42 = vsel %vm2439_vm8, %v8645_v52, %v4125_v44  ;;  %v2040_v17 = vrot.slane %v8521_v49, 1  ;;  %v797_v44 = vpop.permute.xlu1 %796 }
 0x2bd   : > { %v2030_v54 = vmax.f32 %v8499_v4, %v9937_v56  ;;  %9938 = vst [vmem:[#allocation40_spill] sm:$0xff] %v8700_v46  ;;  %v2024_v22 = vrot.slane %v2023_v30, 2  ;;  %v8708_v13 = vpack.c.bf16 %v4126_v42, %v4034_v29  ;;  %v4257_v4 = vunpack.c.l.b16 %v8700_v46 }
 0x2be   : > { %v8705_v40 = vmax.f32 %v2011_v63, %v2012_v55  ;;  %v2019_v19 = vrot.slane %v2018_v53, 1  ;;  %v2041_v35 = vmax.f32 %v8521_v49, %v2040_v17  ;;  %v9940_v15 = vrot.slane %v8515_v24, 1 }
 0x2bf   : > { %v2031_v6 = vrot.slane %v2030_v54, 2  ;;  %9939 = vst [vmem:[#allocation41_spill] sm:$0xff] %v8708_v13  ;;  %v2025_v31 = vmax.f32 %v2023_v30, %v2024_v22  ;;  %v9941_v2 = vrot.slane %v8517_v14, 1  ;;  %v4260_v7 = vunpack.c.l.b16 %v8708_v13 }
 0x2c0   : > { %v2048_v48 = vmax.f32 %v8515_v24, %v9940_v15  ;;  %v8721_v29 = vmax.f32 %v2018_v53, %v2019_v19  ;;  %v9942_v57 = vrot.slane %v8480_v58, 1  ;;  %v9943_v28 = vrot.slane %v8447_v27, 2 }
 0x2c1   : > { %v2032_v47 = vmax.f32 %v2030_v54, %v2031_v6  ;;  %v8718_v63 = vmax.f32 %v8517_v14, %v9941_v2  ;;  %v2026_v16 = vrot.slane %v2025_v31, 1  ;;  %v9944_v55 = vrot.slane %v8428_v9, 4 }
 0x2c2   : > { %v8726_v30 = vmax.f32 %v8480_v58, %v9942_v57  ;;  %v2067_v24 = vmax.f32 %v8447_v27, %v9943_v28  ;;  %v9945_v56 = vrot.slane %v8395_v33, 6  ;;  %v4281_v53 = vpack.c.b16 %v4260_v7, %v4257_v4  ;;  %v9946_v58 = vld [vmem:[#allocation34_spill] sm:$0xff] }
 0x2c3   : > { %v2033_v49 = vrot.slane %v2032_v47, 1  ;;  %v2072_v14 = vmax.f32 %v8428_v9, %v9944_v55  ;;  %v8737_v22 = vmax.f32 %v2025_v31, %v2026_v16  ;;  %v2637_v6 = vsel %vm2441_vm9, %v9946_v58, %v8276_v43  ;;  %v8747_v31 = vld [vmem:[#allocation5] ss:$0 sm:$0xff] }
 0x2c4   : > { %v2077_v54 = vsel %vm1411_vm2, %v9945_v56, -inf  ;;  %v2068_v19 = vrot.slane %v2067_v24, 1  ;;  %v2638_v15 = vsel %vm2429_vm3, %v8669_v8, %v2637_v6  ;;  %4457 = vmatmul.bf16.vlgmr.msra.gmra.mxu3 %v4281_v53  ;;  %v2644_v4 = vsel %vm2441_vm9, %v2048_v48, %v2041_v35 }
 0x2c5   : > { %v2078_v42 = vrot.slane %v2077_v54, 4  ;;  %v2034_v17 = vmax.f32 %v2032_v47, %v2033_v49  ;;  %v2073_v27 = vrot.slane %v2072_v14, 2  ;;  %v2639_v33 = vsel %vm2431_vm4, %v8678_v25, %v2638_v15 }
 0x2c6   : > { %v847_v2 = vmul.f32 %v8747_v31, %v797_v44  ;;  %v8750_v7 = vmax.f32 %v2067_v24, %v2068_v19  ;;  %v2640_v57 = vsel %vm2433_vm5, %v8705_v40, %v2639_v33  ;;  %v2645_v56 = vsel %vm2429_vm3, %v8718_v63, %v2644_v4  ;;  %v9947_v4 = vld [vmem:[#allocation22_spill] sm:$0xff] }
 0x2c7   : > { %v2079_v9 = vmax.f32 %v2077_v54, %v2078_v42  ;;  %v2074_v16 = vmax.f32 %v2072_v14, %v2073_v27  ;;  %v2507_v47 = vsel %vm2441_vm9, %v2034_v17, %v8737_v22  ;;  %v2641_v55 = vsel %vm2435_vm6, %v8721_v29, %v2640_v57  ;;  %v1032_v54 = vpop.permute.xlu0 %1031  ;;  %v8773_v57 = vld [vmem:[#allocation5 + $0x2] ss:$0 sm:$0xff] }
 0x2c8   : > { %v2508_v28 = vsel %vm2429_vm3, %v2041_v35, %v2507_v47  ;;  %v2642_v24 = vsel %vm2437_vm7, %v8737_v22, %v2641_v55  ;;  %v2646_v14 = vsel %vm2431_vm4, %v8726_v30, %v2645_v56  ;;  %v2777_v53 = vsel %vm2441_vm9, %v2041_v35, %v2034_v17 }
 0x2c9   : > { %v2080_v49 = vrot.slane %v2079_v9, 2  ;;  %v2075_v44 = vrot.slane %v2074_v16, 1  ;;  %v2643_v6 = vsel %vm2439_vm8, %v2034_v17, %v2642_v24  ;;  %v2647_v19 = vsel %vm2433_vm5, %v8750_v7, %v2646_v14 }
 0x2ca   : > { %v2778_v27 = vsel %vm2429_vm3, %v2048_v48, %v2777_v53  ;;  %v2849_v33 = vpack.c.bf16 %v2643_v6, %v2643_v6  ;;  %v913_v47 = vadd.f32 %v9947_v4, %v847_v2  ;;  %v1083_v55 = vmul.f32 %v8773_v57, %v1032_v54 }
 0x2cb   : > { %v2081_v42 = vmax.f32 %v2079_v9, %v2080_v49  ;;  %v8770_v15 = vmax.f32 %v2074_v16, %v2075_v44  ;;  %v2501_v35 = vsel %vm2429_vm3, %v8276_v43, %v9948_v61  ;;  %v2509_v17 = vsel %vm2431_vm4, %v2048_v48, %v2508_v28  ;;  %v793_v28 = vpop.permute.xlu1 %792 }
 0x2cc   : > { %v2770_v9 = vsel %vm2441_vm9, %v8276_v43, %v9948_v61  ;;  %v2972_v49 = vunpack.c.l.b16 %v2849_v33  ;;  %v1115_v2 = vadd.f32 %v1083_v55, %v913_v47  ;;  %v2502_v44 = vsel %vm2431_vm4, %v9946_v58, %v2501_v35  ;;  %v8793_v43 = vld [vmem:[#allocation5 + $0x3] ss:$0 sm:$0xff] }
 0x2cd   : > { %v2082_v56 = vrot.slane %v2081_v42, 1  ;;  %v2648_v16 = vsel %vm2435_vm6, %v8770_v15, %v2647_v19  ;;  %v2503_v24 = vsel %vm2433_vm5, %v8669_v8, %v2502_v44  ;;  %v2510_v14 = vsel %vm2433_vm5, %v8718_v63, %v2509_v17 }
 0x2ce   : > { %v2771_v48 = vsel %vm2429_vm3, %v9946_v58, %v2770_v9  ;;  %v1149_v61 = vadd.f32 %v8793_v43, %v1115_v2  ;;  %v2504_v53 = vsel %vm2435_vm6, %v8678_v25, %v2503_v24 }
 0x2cf   : > { %v2083_v54 = vmax.f32 %v2081_v42, %v2082_v56  ;;  %v2511_v42 = vsel %vm2435_vm6, %v8726_v30, %v2510_v14  ;;  %v2772_v6 = vsel %vm2431_vm4, %v8669_v8, %v2771_v48  ;;  %v2505_v33 = vsel %vm2437_vm7, %v8705_v40, %v2504_v53  ;;  %v1028_v2 = vpop.permute.xlu0 %1027 }
 0x2d0   : > { %v2512_v58 = vsel %vm2437_vm7, %v8750_v7, %v2511_v42  ;;  %v2773_v4 = vsel %vm2433_vm5, %v8678_v25, %v2772_v6  ;;  %v1181_v55 = vmax.f32 %v1149_v61, 0.0  ;;  %v2506_v56 = vsel %vm2439_vm8, %v8721_v29, %v2505_v33  ;;  %v3204_v6 = vpop.f32.mrf.mxu0 }
 0x2d1   : > { %v2649_v19 = vsel %vm2437_vm7, %v2083_v54, %v2648_v16  ;;  %v2513_v8 = vsel %vm2439_vm8, %v8770_v15, %v2512_v58  ;;  %v2561_v17 = vsel %vm537_vm0, 0.0, %v2506_v56  ;;  %v2774_v9 = vsel %vm2435_vm6, %v8705_v40, %v2773_v4 }
 0x2d2   : > { %v2697_v47 = vsel %vm610_vm1, %v2649_v19, 0.0  ;;  %v2779_v16 = vsel %vm2431_vm4, %v8718_v63, %v2778_v27  ;;  %v1297_v25 = vrot.slane %v1181_v55, 2  ;;  %v1298_v44 = vrot.slane %v1181_v55, 4  ;;  %v3253_v19 = vpop.f32.mrf.mxu1 }
 0x2d3   : > { %v2851_v35 = vpack.c.bf16 %v2697_v47, %v2697_v47  ;;  %v1299_v24 = vrot.slane %v1181_v55, 6  ;;  %v2140_v14 = vsel %vm1411_vm2, %v1181_v55, -inf  ;;  %v2775_v53 = vsel %vm2437_vm7, %v8721_v29, %v2774_v9  ;;  %v806_v9 = vpop.permute.xlu2 %805 }
 0x2d4   : > { %v2141_v61 = vrot.slane %v2140_v14, 4  ;;  %v2780_v42 = vsel %vm2433_vm5, %v8726_v30, %v2779_v16  ;;  %v2147_v40 = vsel %vm1411_vm2, %v1297_v25, -inf  ;;  %v2154_v63 = vsel %vm1411_vm2, %v1298_v44, -inf }
 0x2d5   : > { %v2975_v48 = vunpack.c.l.b16 %v2851_v35  ;;  %v2161_v27 = vsel %vm1411_vm2, %v1299_v24, -inf  ;;  %v2776_v33 = vsel %vm2439_vm8, %v8737_v22, %v2775_v53  ;;  %v2148_v47 = vrot.slane %v2147_v40, 4  ;;  %v1037_v22 = vpop.permute.xlu1 %1036 }
 0x2d6   : > { %v2142_v4 = vmax.f32 %v2140_v14, %v2141_v61  ;;  %v2155_v55 = vrot.slane %v2154_v63, 4  ;;  %v2162_v56 = vrot.slane %v2161_v27, 4  ;;  %v2781_v29 = vsel %vm2435_vm6, %v8750_v7, %v2780_v42 }
 0x2d7   : > { %v3005_v58 = vpack.c.b16 %v2975_v48, %v2972_v49  ;;  %v2848_v30 = vpack.c.bf16 %v2776_v33, %v2561_v17  ;;  %v846_v35 = vmul.f32 %v8747_v31, %v793_v28  ;;  %v2149_v25 = vmax.f32 %v2147_v40, %v2148_v47  ;;  %v3302_v49 = vpop.f32.mrf.mxu2 }
 0x2d8   : > { %v2143_v16 = vrot.slane %v2142_v4, 2  ;;  %v2156_v44 = vmax.f32 %v2154_v63, %v2155_v55  ;;  %v2782_v24 = vsel %vm2437_vm7, %v8770_v15, %v2781_v29  ;;  %v3617_v14 = vrot.slane %v8624_v11, 1 }
 0x2d9   : > { %3311 = vmatmul.bf16.gmra.mxu2 %v3005_v58  ;;  %v2163_v48 = vmax.f32 %v2161_v27, %v2162_v56  ;;  %v2783_v61 = vsel %vm2439_vm8, %v2083_v54, %v2782_v24  ;;  %v2970_v53 = vunpack.c.l.b16 %v2848_v30  ;;  %v2150_v17 = vrot.slane %v2149_v25, 2  ;;  %v9949_v58 = vld [vmem:[#allocation21_spill] sm:$0xff]  ;;  %v814_v27 = vpop.permute.xlu0 %813 }
 0x2da   : > { %v2144_v7 = vmax.f32 %v2142_v4, %v2143_v16  ;;  %v2157_v42 = vrot.slane %v2156_v44, 2  ;;  %v2850_v28 = vpack.c.bf16 %v2783_v61, %v2513_v8  ;;  %v912_v46 = vadd.f32 %v9949_v58, %v846_v35  ;;  %v9950_v4 = vld [vmem:[#allocation25_spill] sm:$0xff]  ;;  %v3206_v58 = vpop.f32.mrf.mxu0 }
 0x2db   : > { %v2164_v33 = vrot.slane %v2163_v48, 2  ;;  %v1082_v40 = vmul.f32 %v8773_v57, %v1028_v2  ;;  %v1084_v63 = vmul.f32 %v8773_v57, %v1037_v22  ;;  %v2151_v47 = vmax.f32 %v2149_v25, %v2150_v17  ;;  %v3255_v22 = vpop.f32.mrf.mxu1  ;;  %v1049_v17 = vpop.permute.xlu2 %1048 }
 0x2dc   : > { %v2145_v15 = vrot.slane %v2144_v7, 1  ;;  %v8839_v55 = vmax.f32 %v2156_v44, %v2157_v42  ;;  %v2973_v29 = vunpack.c.l.b16 %v2850_v28  ;;  %v2971_v56 = vunpack.c.h.b16 %v2848_v30 }
 0x2dd   : > { %v2974_v54 = vunpack.c.h.b16 %v2850_v28  ;;  %v1114_v24 = vadd.f32 %v1082_v40, %v912_v46  ;;  %v1116_v16 = vadd.f32 %v1084_v63, %v9950_v4  ;;  %v8843_v8 = vmax.f32 %v8624_v11, %v3617_v14  ;;  %v9952_v40 = vld [vmem:[#allocation26_spill] sm:$0xff] }
 0x2de   : > { %v2152_v61 = vrot.slane %v2151_v47, 1  ;;  %v8845_v35 = vmax.f32 %v2163_v48, %v2164_v33  ;;  %v3003_v2 = vpack.c.b16 %v2973_v29, %v2970_v53  ;;  %v851_v30 = vmul.f32 %v8747_v31, %v814_v27  ;;  %v9953_v29 = vld [vmem:[#allocation35_spill] sm:$0xff] }
 0x2df   : > { %9951 = vst [vmem:[#allocation34_spill] sm:$0xff] %v8843_v8  ;;  %v3004_v13 = vpack.c.b16 %v2974_v54, %v2971_v56  ;;  %v1148_v25 = vadd.f32 %v8793_v43, %v1114_v24  ;;  %v1150_v44 = vadd.f32 %v8793_v43, %v1116_v16  ;;  %v8850_v46 = vmax.f32 %v2144_v7, %v2145_v15  ;;  %v3304_v15 = vpop.f32.mrf.mxu2 }
 0x2e0   : > { %3213 = vmatmul.bf16.gmra.mxu0 %v3003_v2  ;;  %v849_v11 = vmul.f32 %v8747_v31, %v806_v9  ;;  %v3254_v14 = vadd.f32 %v3253_v19, %v3204_v6  ;;  %v8854_v48 = vmax.f32 %v2151_v47, %v2152_v61  ;;  %v3256_v33 = vadd.f32 %v3255_v22, %v3206_v58 }
 0x2e1   : > { %3262 = vmatmul.bf16.gmra.mxu1 %v3004_v13  ;;  %v1180_v53 = vmax.f32 %v1148_v25, 0.0  ;;  %v1182_v28 = vmax.f32 %v1150_v44, 0.0  ;;  %v917_v63 = vadd.f32 %v9952_v40, %v851_v30  ;;  %v1087_v7 = vmul.f32 %v8773_v57, %v1049_v17 }
 0x2e2   : > { %v8858_v56 = vadd.f32 %v9953_v29, %v849_v11  ;;  %v3303_v27 = vadd.f32 %v3302_v49, %v3254_v14  ;;  %v3305_v49 = vadd.f32 %v3304_v15, %v3256_v33  ;;  %v9954_v44 = vrot.slane %v8577_v51, 1 }
 0x2e3   : > { %v1294_v54 = vrot.slane %v1180_v53, 2  ;;  %v1295_v24 = vrot.slane %v1180_v53, 4  ;;  %v1296_v4 = vrot.slane %v1180_v53, 6  ;;  %v2112_v6 = vsel %vm1411_vm2, %v1180_v53, -inf }
 0x2e4   : > { %v2113_v19 = vrot.slane %v2112_v6, 4  ;;  %v1300_v9 = vrot.slane %v1182_v28, 2  ;;  %v1301_v13 = vrot.slane %v1182_v28, 4  ;;  %v1302_v47 = vrot.slane %v1182_v28, 6 }
 0x2e5   : > { %v2119_v16 = vsel %vm1411_vm2, %v1294_v54, -inf  ;;  %v8864_v61 = vsel %vm1411_vm2, %v1295_v24, -inf  ;;  %v2168_v2 = vsel %vm1411_vm2, %v1182_v28, -inf  ;;  %v8868_v25 = vsel %vm1411_vm2, %v1296_v4, -inf }
 0x2e6   : > { %v2114_v58 = vmax.f32 %v2112_v6, %v2113_v19  ;;  %v2120_v22 = vrot.slane %v2119_v16, 4  ;;  %v8873_v30 = vmax.f32 %v8577_v51, %v9954_v44  ;;  %v2169_v17 = vrot.slane %v2168_v2, 4  ;;  %v8888_v51 = vld [vmem:[#allocation10] ss:$0 sm:$0xff]  ;;  %v1041_v6 = vpop.permute.xlu1 %1040 }
 0x2e7   : > { %v2175_v11 = vsel %vm1411_vm2, %v1300_v9, -inf  ;;  %v8877_v14 = vsel %vm1411_vm2, %v1301_v13, -inf  ;;  %v8880_v53 = vsel %vm1411_vm2, %v1302_v47, -inf  ;;  %9955 = vst [vmem:[#allocation22_spill] sm:$0xff] %v8888_v51  ;;  %v3334_v24 = vadd.f32 %v8888_v51, %v3303_v27 }
 0x2e8   : > { %v2115_v28 = vrot.slane %v2114_v58, 2  ;;  %v8882_v33 = vmax.f32 %v2119_v16, %v2120_v22  ;;  %v2176_v29 = vrot.slane %v2175_v11, 4  ;;  %v8886_v54 = vmax.f32 %v2168_v2, %v2169_v17 }
 0x2e9   : > { %v1119_v4 = vadd.f32 %v1087_v7, %v917_v63  ;;  %v3335_v47 = vadd.f32 %v8888_v51, %v3305_v49  ;;  %v3350_v2 = vmax.f32 %v3334_v24, 0.0  ;;  %v8905_v7 = vmul.f32 %v8773_v57, %v1041_v6 }
 0x2ea   : > { %v8891_v19 = vmax.f32 %v2114_v58, %v2115_v28  ;;  %v8897_v22 = vmax.f32 %v2175_v11, %v2176_v29  ;;  %v2171_v63 = vrot.slane %v8886_v54, 2 }
 0x2eb   : > { %v1153_v44 = vadd.f32 %v8793_v43, %v1119_v4  ;;  %v8902_v27 = vmax.f32 %v3335_v47, 0.0  ;;  %v3394_v58 = vrot.slane %v3350_v2, 2  ;;  %v3395_v28 = vrot.slane %v3350_v2, 4 }
 0x2ec   : > { %v3396_v13 = vrot.slane %v3350_v2, 6  ;;  %v3640_v11 = vsel %vm1411_vm2, %v3350_v2, -inf }
 0x2ed   : > { %v1185_v29 = vmax.f32 %v1153_v44, 0.0  ;;  %v3397_v24 = vrot.slane %v8902_v27, 2  ;;  %v3398_v4 = vrot.slane %v8902_v27, 4  ;;  %v3641_v9 = vrot.slane %v3640_v11, 4 }
 0x2ee   : > { %v3647_v42 = vsel %vm1411_vm2, %v3394_v58, -inf  ;;  %v3654_v47 = vsel %vm1411_vm2, %v3395_v28, -inf  ;;  %v3661_v6 = vsel %vm1411_vm2, %v3396_v13, -inf }
 0x2ef   : > { %v3648_v15 = vrot.slane %v3647_v42, 4  ;;  %v3655_v17 = vrot.slane %v3654_v47, 4  ;;  %v3662_v40 = vrot.slane %v3661_v6, 4  ;;  %v1309_v16 = vrot.slane %v1185_v29, 2 }
 0x2f0   : > { %v3642_v52 = vmax.f32 %v3640_v11, %v3641_v9  ;;  %v1310_v49 = vrot.slane %v1185_v29, 4  ;;  %v1311_v39 = vrot.slane %v1185_v29, 6  ;;  %v2252_v2 = vsel %vm1411_vm2, %v1185_v29, -inf }
 0x2f1   : > { %v3649_v44 = vmax.f32 %v3647_v42, %v3648_v15  ;;  %v3656_v60 = vmax.f32 %v3654_v47, %v3655_v17  ;;  %v3663_v50 = vmax.f32 %v3661_v6, %v3662_v40  ;;  %v2253_v21 = vrot.slane %v2252_v2, 4 }
 0x2f2   : > { %v3643_v23 = vrot.slane %v3642_v52, 2  ;;  %v2259_v58 = vsel %vm1411_vm2, %v1309_v16, -inf  ;;  %v2266_v28 = vsel %vm1411_vm2, %v1310_v49, -inf  ;;  %v2273_v13 = vsel %vm1411_vm2, %v1311_v39, -inf }
 0x2f3   : > { %v3650_v59 = vrot.slane %v3649_v44, 2  ;;  %v3657_v5 = vrot.slane %v3656_v60, 2  ;;  %v3664_v38 = vrot.slane %v3663_v50, 2  ;;  %v2254_v62 = vmax.f32 %v2252_v2, %v2253_v21 }
 0x2f4   : > { %v3644_v9 = vmax.f32 %v3642_v52, %v3643_v23  ;;  %v2260_v11 = vrot.slane %v2259_v58, 4  ;;  %v2267_v10 = vrot.slane %v2266_v28, 4  ;;  %v2274_v37 = vrot.slane %v2273_v13, 4 }
 0x2f5   : > { %v3651_v29 = vmax.f32 %v3649_v44, %v3650_v59  ;;  %v3658_v42 = vmax.f32 %v3656_v60, %v3657_v5  ;;  %v3665_v15 = vmax.f32 %v3663_v50, %v3664_v38  ;;  %v2255_v40 = vrot.slane %v2254_v62, 2 }
 0x2f6   : > { %v3645_v17 = vrot.slane %v3644_v9, 1  ;;  %v2261_v47 = vmax.f32 %v2259_v58, %v2260_v11  ;;  %v2268_v6 = vmax.f32 %v2266_v28, %v2267_v10  ;;  %v2275_v16 = vmax.f32 %v2273_v13, %v2274_v37  ;;  %v1045_v28 = vpop.permute.xlu2 %1044 }
 0x2f7   : > { %v3652_v20 = vrot.slane %v3651_v29, 1  ;;  %v3659_v49 = vrot.slane %v3658_v42, 1  ;;  %v3666_v18 = vrot.slane %v3665_v15, 1  ;;  %v2256_v39 = vmax.f32 %v2254_v62, %v2255_v40 }
 0x2f8   : > { %v2262_v51 = vrot.slane %v2261_v47, 2  ;;  %v2269_v8 = vrot.slane %v2268_v6, 2  ;;  %v2276_v45 = vrot.slane %v2275_v16, 2  ;;  %v8921_v21 = vsel %vm2429_vm3, %v8586_v1, %v8575_v32 }
 0x2f9   : > { %v8924_v5 = vmax.f32 %v8886_v54, %v2171_v63  ;;  %v8926_v50 = vmax.f32 %v3644_v9, %v3645_v17  ;;  %v8928_v59 = vmax.f32 %v3651_v29, %v3652_v20  ;;  %v2257_v37 = vrot.slane %v2256_v39, 1 }
 0x2fa   : > { %v8930_v10 = vmax.f32 %v3658_v42, %v3659_v49  ;;  %v2263_v38 = vmax.f32 %v2261_v47, %v2262_v51  ;;  %v8932_v62 = vmax.f32 %v2268_v6, %v2269_v8  ;;  %v3399_v60 = vrot.slane %v8902_v27, 6  ;;  %v810_v51 = vpop.permute.xlu0 %809 }
 0x2fb   : > { %v8935_v23 = vmax.f32 %v3665_v15, %v3666_v18  ;;  %v3668_v52 = vsel %vm1411_vm2, %v8902_v27, -inf  ;;  %v3675_v54 = vsel %vm1411_vm2, %v3397_v24, -inf  ;;  %v3682_v63 = vsel %vm1411_vm2, %v3398_v4, -inf }
 0x2fc   : > { %v2264_v2 = vrot.slane %v2263_v38, 1  ;;  %v8941_v20 = vmax.f32 %v2275_v16, %v2276_v45  ;;  %v3669_v44 = vrot.slane %v3668_v52, 4  ;;  %v3676_v58 = vrot.slane %v3675_v54, 4  ;;  %v9957_v16 = vld [vmem:[#allocation28_spill] sm:$0xff] }
 0x2fd   : > { %v8943_v8 = vmax.f32 %v2256_v39, %v2257_v37  ;;  %v3683_v13 = vrot.slane %v3682_v63, 4  ;;  %v3689_v18 = vsel %vm1411_vm2, %v3399_v60, -inf  ;;  %v1117_v9 = vadd.f32 %v8905_v7, %v8858_v56 }
 0x2fe   : > { %v3670_v24 = vmax.f32 %v3668_v52, %v3669_v44  ;;  %v3677_v11 = vmax.f32 %v3675_v54, %v3676_v58  ;;  %v3690_v4 = vrot.slane %v3689_v18, 4  ;;  %v8949_v29 = vmax.f32 %v2263_v38, %v2264_v2 }
 0x2ff   : > { %v1151_v45 = vadd.f32 %v8793_v43, %v1117_v9  ;;  %v1086_v42 = vmul.f32 %v8773_v57, %v1045_v28  ;;  %v850_v15 = vmul.f32 %v8747_v31, %v810_v51  ;;  %v8954_v47 = vmax.f32 %v3682_v63, %v3683_v13 }
 0x300   : > { %v3671_v40 = vrot.slane %v3670_v24, 2  ;;  %v3678_v17 = vrot.slane %v3677_v11, 2  ;;  %v9956_v6 = vrot.slane %v8579_v41, 1  ;;  %v9958_v39 = vrot.slane %v8882_v33, 2 }
 0x301   : > { %v1183_v7 = vmax.f32 %v1151_v45, 0.0  ;;  %v916_v49 = vadd.f32 %v9957_v16, %v850_v15  ;;  %v9959_v38 = vrot.slane %v8864_v61, 4  ;;  %v8968_v54 = vmax.f32 %v3689_v18, %v3690_v4 }
 0x302   : > { %v8959_v56 = vmax.f32 %v8579_v41, %v9956_v6  ;;  %v2123_v37 = vmax.f32 %v8882_v33, %v9958_v39  ;;  %v3672_v52 = vmax.f32 %v3670_v24, %v3671_v40  ;;  %v9960_v63 = vrot.slane %v8891_v19, 1 }
 0x303   : > { %v2128_v60 = vmax.f32 %v8864_v61, %v9959_v38  ;;  %v9961_v41 = vrot.slane %v8868_v25, 4  ;;  %v1303_v58 = vrot.slane %v1183_v7, 2  ;;  %v1304_v28 = vrot.slane %v1183_v7, 4 }
 0x304   : > { %v8973_v2 = vmax.f32 %v8891_v19, %v9960_v63  ;;  %v1305_v51 = vrot.slane %v1183_v7, 6  ;;  %v2196_v33 = vsel %vm1411_vm2, %v1183_v7, -inf  ;;  %v3673_v13 = vrot.slane %v3672_v52, 1 }
 0x305   : > { %v2135_v44 = vmax.f32 %v8868_v25, %v9961_v41  ;;  %v2197_v9 = vrot.slane %v2196_v33, 4  ;;  %v1118_v61 = vadd.f32 %v1086_v42, %v916_v49  ;;  %v2124_v24 = vrot.slane %v2123_v37, 1 }
 0x306   : > { %v2203_v18 = vsel %vm1411_vm2, %v1303_v58, -inf  ;;  %v2210_v4 = vsel %vm1411_vm2, %v1304_v28, -inf  ;;  %v2217_v19 = vsel %vm1411_vm2, %v1305_v51, -inf  ;;  %v2129_v45 = vrot.slane %v2128_v60, 2 }
 0x307   : > { %v8982_v15 = vmax.f32 %v3677_v11, %v3678_v17  ;;  %v2198_v40 = vmax.f32 %v2196_v33, %v2197_v9  ;;  %v2204_v25 = vrot.slane %v2203_v18, 4  ;;  %v2211_v6 = vrot.slane %v2210_v4, 4 }
 0x308   : > { %v2218_v16 = vrot.slane %v2217_v19, 4  ;;  %v1152_v39 = vadd.f32 %v8793_v43, %v1118_v61  ;;  %v2130_v7 = vmax.f32 %v2128_v60, %v2129_v45  ;;  %v9962_v38 = vrot.slane %v8839_v55, 1 }
 0x309   : > { %v2199_v49 = vrot.slane %v2198_v40, 2  ;;  %v2205_v63 = vmax.f32 %v2203_v18, %v2204_v25  ;;  %v2212_v41 = vmax.f32 %v2210_v4, %v2211_v6  ;;  %v2136_v58 = vrot.slane %v2135_v44, 2 }
 0x30a   : > { %v8988_v42 = vmax.f32 %v8839_v55, %v9962_v38  ;;  %v8990_v28 = vmax.f32 %v3672_v52, %v3673_v13  ;;  %v2219_v11 = vmax.f32 %v2217_v19, %v2218_v16  ;;  %v8992_v17 = vmax.f32 %v1152_v39, 0.0 }
 0x30b   : > { %v8994_v51 = vmax.f32 %v2123_v37, %v2124_v24  ;;  %v2200_v33 = vmax.f32 %v2198_v40, %v2199_v49  ;;  %v2206_v9 = vrot.slane %v2205_v63, 2  ;;  %v2213_v61 = vrot.slane %v2212_v41, 2 }
 0x30c   : > { %v2131_v60 = vrot.slane %v2130_v7, 1  ;;  %v2220_v45 = vrot.slane %v2219_v11, 2  ;;  %v1306_v27 = vrot.slane %v8992_v17, 2  ;;  %v2137_v55 = vmax.f32 %v2135_v44, %v2136_v58 }
 0x30d   : > { %v2166_v38 = vrot.slane %v8845_v35, 1  ;;  %v2201_v18 = vrot.slane %v2200_v33, 1  ;;  %v2207_v4 = vmax.f32 %v2205_v63, %v2206_v9  ;;  %v2214_v25 = vmax.f32 %v2212_v41, %v2213_v61 }
 0x30e   : > { %v2224_v52 = vsel %vm1411_vm2, %v8992_v17, -inf  ;;  %v9000_v13 = vmax.f32 %v2219_v11, %v2220_v45  ;;  %v1307_v37 = vrot.slane %v8992_v17, 4  ;;  %v2231_v19 = vsel %vm1411_vm2, %v1306_v27, -inf }
 0x30f   : > { %v2225_v24 = vrot.slane %v2224_v52, 4  ;;  %v2208_v40 = vrot.slane %v2207_v4, 1  ;;  %v2215_v6 = vrot.slane %v2214_v25, 1  ;;  %v2232_v44 = vrot.slane %v2231_v19, 4 }
 0x310   : > { %v9005_v39 = vmax.f32 %v2200_v33, %v2201_v18  ;;  %v2222_v49 = vrot.slane %v9000_v13, 1  ;;  %v9008_v63 = vmax.f32 %v2130_v7, %v2131_v60  ;;  %v2138_v41 = vrot.slane %v2137_v55, 1 }
 0x311   : > { %v9010_v58 = vmax.f32 %v2207_v4, %v2208_v40  ;;  %v9012_v11 = vmax.f32 %v2224_v52, %v2225_v24  ;;  %v2167_v9 = vmax.f32 %v8845_v35, %v2166_v38  ;;  %v2173_v27 = vrot.slane %v8924_v5, 1 }
 0x312   : > { %v9016_v61 = vmax.f32 %v2214_v25, %v2215_v6  ;;  %v2139_v45 = vmax.f32 %v2137_v55, %v2138_v41  ;;  %v2178_v16 = vrot.slane %v8897_v22, 2  ;;  %v9963_v33 = vrot.slane %v8877_v14, 4 }
 0x313   : > { %v9022_v7 = vmax.f32 %v2231_v19, %v2232_v44  ;;  %v9964_v60 = vrot.slane %v8880_v53, 4  ;;  %v2515_v35 = vsel %vm2431_vm4, %v8873_v30, %v8921_v21  ;;  %v2784_v55 = vsel %vm2441_vm9, %v8586_v1, %v8575_v32 }
 0x314   : > { %v2184_v18 = vmax.f32 %v8877_v14, %v9963_v33  ;;  %v2174_v38 = vmax.f32 %v8924_v5, %v2173_v27  ;;  %v2179_v25 = vmax.f32 %v8897_v22, %v2178_v16  ;;  %v2516_v14 = vsel %vm2433_vm5, %v8959_v56, %v2515_v35 }
 0x315   : > { %v2191_v4 = vmax.f32 %v8880_v53, %v9964_v60  ;;  %v2517_v53 = vsel %vm2435_vm6, %v8973_v2, %v2516_v14  ;;  %v2520_v19 = vsel %vm2441_vm9, %v8850_v46, %v2139_v45  ;;  %v2785_v21 = vsel %vm2429_vm3, %v8873_v30, %v2784_v55 }
 0x316   : > { %v2185_v52 = vrot.slane %v2184_v18, 2  ;;  %v2180_v40 = vrot.slane %v2179_v25, 1  ;;  %v2518_v5 = vsel %vm2437_vm7, %v8994_v51, %v2517_v53  ;;  %v2521_v22 = vsel %vm2429_vm3, %v8854_v48, %v2520_v19 }
 0x317   : > { %v2192_v24 = vrot.slane %v2191_v4, 2  ;;  %v2519_v16 = vsel %vm2439_vm8, %v9008_v63, %v2518_v5  ;;  %v2522_v44 = vsel %vm2431_vm4, %v8988_v42, %v2521_v22  ;;  %v2786_v41 = vsel %vm2431_vm4, %v8959_v56, %v2785_v21  ;;  %v818_v22 = vpop.permute.xlu1 %817 }
 0x318   : > { %v2186_v32 = vmax.f32 %v2184_v18, %v2185_v52  ;;  %v2181_v27 = vmax.f32 %v2179_v25, %v2180_v40  ;;  %v2523_v18 = vsel %vm2433_vm5, %v2167_v9, %v2522_v44  ;;  %v2562_v60 = vsel %vm537_vm0, 0.0, %v2519_v16 }
 0x319   : > { %v2193_v6 = vmax.f32 %v2191_v4, %v2192_v24  ;;  %v2524_v55 = vsel %vm2435_vm6, %v2174_v38, %v2523_v18  ;;  %v2787_v4 = vsel %vm2433_vm5, %v8973_v2, %v2786_v41  ;;  %v2791_v52 = vsel %vm2441_vm9, %v8854_v48, %v8850_v46 }
 0x31a   : > { %v2187_v33 = vrot.slane %v2186_v32, 1  ;;  %v2525_v24 = vsel %vm2437_vm7, %v2181_v27, %v2524_v55  ;;  %v2788_v25 = vsel %vm2435_vm6, %v8994_v51, %v2787_v4  ;;  %v2792_v53 = vsel %vm2429_vm3, %v8988_v42, %v2791_v52 }
 0x31b   : > { %v2194_v35 = vrot.slane %v2193_v6, 1  ;;  %v2789_v21 = vsel %vm2437_vm7, %v9008_v63, %v2788_v25  ;;  %v2793_v40 = vsel %vm2431_vm4, %v2167_v9, %v2792_v53  ;;  %v2650_v5 = vsel %vm2441_vm9, %v8873_v30, %v8586_v1  ;;  %v9965_v53 = vld [vmem:[#allocation16_spill] sm:$0xff] }
 0x31c   : > { %v2188_v14 = vmax.f32 %v2186_v32, %v2187_v33  ;;  %v2790_v16 = vsel %vm2439_vm8, %v2139_v45, %v2789_v21  ;;  %v2794_v44 = vsel %vm2433_vm5, %v2174_v38, %v2793_v40  ;;  %v2651_v41 = vsel %vm2429_vm3, %v8959_v56, %v2650_v5  ;;  %v1054_v56 = vpop.permute.xlu0 %1053 }
 0x31d   : > { %v2195_v19 = vmax.f32 %v2193_v6, %v2194_v35  ;;  %v2795_v6 = vsel %vm2435_vm6, %v2181_v27, %v2794_v44  ;;  %v2852_v33 = vpack.c.bf16 %v2790_v16, %v2562_v60  ;;  %v2652_v18 = vsel %vm2431_vm4, %v8973_v2, %v2651_v41  ;;  %v3258_v44 = vpop.f32.mrf.mxu1 }
 0x31e   : > { %v2526_v32 = vsel %vm2439_vm8, %v2188_v14, %v2525_v24  ;;  %v2657_v1 = vsel %vm2441_vm9, %v8988_v42, %v8854_v48  ;;  %v2227_v30 = vrot.slane %v9012_v11, 2  ;;  %v2796_v35 = vsel %vm2437_vm7, %v2188_v14, %v2795_v6 }
 0x31f   : > { %v2653_v55 = vsel %vm2433_vm5, %v8994_v51, %v2652_v18  ;;  %v852_v4 = vmul.f32 %v8747_v31, %v818_v22  ;;  %v2797_v52 = vsel %vm2439_vm8, %v2195_v19, %v2796_v35  ;;  %v2976_v60 = vunpack.c.l.b16 %v2852_v33 }
 0x320   : > { %v2654_v2 = vsel %vm2435_vm6, %v9008_v63, %v2653_v55  ;;  %v2658_v24 = vsel %vm2429_vm3, %v2167_v9, %v2657_v1  ;;  %v2854_v25 = vpack.c.bf16 %v2797_v52, %v2526_v32  ;;  %v2977_v40 = vunpack.c.h.b16 %v2852_v33  ;;  %v3209_v32 = vpop.f32.mrf.mxu0 }
 0x321   : > { %v2655_v48 = vsel %vm2437_vm7, %v2139_v45, %v2654_v2  ;;  %v2659_v42 = vsel %vm2431_vm4, %v2174_v38, %v2658_v24  ;;  %v918_v21 = vadd.f32 %v9965_v53, %v852_v4  ;;  %v1088_v5 = vmul.f32 %v8773_v57, %v1054_v56 }
 0x322   : > { %v2656_v31 = vsel %vm2439_vm8, %v8850_v46, %v2655_v48  ;;  %v2660_v51 = vsel %vm2433_vm5, %v2181_v27, %v2659_v42  ;;  %v2979_v22 = vunpack.c.l.b16 %v2854_v25  ;;  %v2980_v16 = vunpack.c.h.b16 %v2854_v25 }
 0x323   : > { %v2661_v63 = vsel %vm2435_vm6, %v2188_v14, %v2660_v51  ;;  %v2853_v9 = vpack.c.bf16 %v2656_v31, %v2656_v31  ;;  %v1120_v38 = vadd.f32 %v1088_v5, %v918_v21  ;;  %v3624_v41 = vrot.slane %v8628_v12, 1 }
 0x324   : > { %v2662_v45 = vsel %vm2437_vm7, %v2195_v19, %v2661_v63  ;;  %v3629_v6 = vrot.slane %v8611_v3, 2  ;;  %v9104_v46 = vmax.f32 %v9012_v11, %v2227_v30  ;;  %v3006_v27 = vpack.c.b16 %v2979_v22, %v2976_v60  ;;  %v6196_v60 = vld [vmem:[#allocation7 + $0x178] sm:$0xff] }
 0x325   : > { %v3007_v33 = vpack.c.b16 %v2980_v16, %v2977_v40  ;;  %v2698_v57 = vsel %vm610_vm1, %v2662_v45, 0.0  ;;  %v1154_v14 = vadd.f32 %v8793_v43, %v1120_v38  ;;  %v9108_v1 = vadd.f32 %v3258_v44, %v3209_v32  ;;  %v3307_v40 = vpop.f32.mrf.mxu2  ;;  %4507 = vmatpush.bf16.msrb.mxu0 %v6196_v60 }
 0x326   : > { %v2855_v18 = vpack.c.bf16 %v2698_v57, %v2698_v57  ;;  %v3630_v35 = vmax.f32 %v8611_v3, %v3629_v6  ;;  %3218 = vmatmul.bf16.gmra.mxu0 %v3006_v27  ;;  %v2978_v19 = vunpack.c.l.b16 %v2853_v9  ;;  %v3636_v55 = vrot.slane %v8615_v0, 2  ;;  %v6194_v27 = vld [vmem:[#allocation7 + $0x168] sm:$0xff] }
 0x327   : > { %3267 = vmatmul.bf16.gmra.mxu1 %v3007_v33  ;;  %v3685_v4 = vrot.slane %v8954_v47, 2  ;;  %v3692_v11 = vrot.slane %v8968_v54, 2  ;;  %v1186_v56 = vmax.f32 %v1154_v14, 0.0  ;;  %v9115_v52 = vmax.f32 %v8628_v12, %v3624_v41  ;;  %v6195_v12 = vld [vmem:[#allocation7 + $0x170] sm:$0xff]  ;;  %v9966_v57 = vld [vmem:[#allocation18_spill] sm:$0xff] }
 0x328   : > { %v2981_v30 = vunpack.c.l.b16 %v2855_v18  ;;  %v3680_v43 = vrot.slane %v8982_v15, 1  ;;  %v3631_v2 = vrot.slane %v3630_v35, 1  ;;  %v3637_v3 = vmax.f32 %v8615_v0, %v3636_v55  ;;  %v9967_v55 = vld [vmem:[#allocation34_spill] sm:$0xff] }
 0x329   : > { %v3686_v24 = vmax.f32 %v8954_v47, %v3685_v4  ;;  %v3989_v25 = vsel %vm2429_vm3, %v8590_v36, %v8588_v26  ;;  %v1312_v42 = vrot.slane %v1186_v56, 2  ;;  %v1313_v53 = vrot.slane %v1186_v56, 4  ;;  %4508 = vmatpush.bf16.msrb.mxu0 %v6195_v12 }
 0x32a   : > { %v3008_v48 = vpack.c.b16 %v2981_v30, %v2978_v19  ;;  %v1314_v21 = vrot.slane %v1186_v56, 6  ;;  %v2280_v31 = vsel %vm1411_vm2, %v1186_v56, -inf  ;;  %v3638_v51 = vrot.slane %v3637_v3, 1 }
 0x32b   : > { %v3687_v5 = vrot.slane %v3686_v24, 1  ;;  %v3693_v22 = vmax.f32 %v8968_v54, %v3692_v11  ;;  %v2281_v0 = vrot.slane %v2280_v31, 4  ;;  %v2287_v47 = vsel %vm1411_vm2, %v1312_v42, -inf  ;;  %v6193_v42 = vld [vmem:[#allocation7 + $0x160] sm:$0xff] }
 0x32c   : > { %3316 = vmatmul.bf16.gmra.mxu2 %v3008_v48  ;;  %v9127_v16 = vsel %vm1411_vm2, %v1313_v53, -inf  ;;  %v9130_v63 = vsel %vm1411_vm2, %v1314_v21, -inf  ;;  %v2288_v9 = vrot.slane %v2287_v47, 4  ;;  %v9133_v44 = vmax.f32 %v3630_v35, %v3631_v2  ;;  %v3260_v48 = vpop.f32.mrf.mxu1 }
 0x32d   : > { %v2295_v32 = vrot.slane %v9127_v16, 4  ;;  %v9136_v45 = vmax.f32 %v8982_v15, %v3680_v43  ;;  %v2282_v38 = vmax.f32 %v2280_v31, %v2281_v0  ;;  %v9139_v41 = vmax.f32 %v3637_v3, %v3638_v51  ;;  %4509 = vmatpush.bf16.msrb.mxu0 %v6194_v27 }
 0x32e   : > { %v3990_v6 = vsel %vm2431_vm4, %v8592_v34, %v3989_v25  ;;  %v9143_v33 = vmax.f32 %v3686_v24, %v3687_v5  ;;  %v3995_v15 = vsel %vm2429_vm3, %v8928_v59, %v8926_v50  ;;  %v4127_v14 = vsel %vm2441_vm9, %v8590_v36, %v8588_v26  ;;  %v3211_v25 = vpop.f32.mrf.mxu0 }
 0x32f   : > { %v3991_v18 = vsel %vm2433_vm5, %v9966_v57, %v3990_v6  ;;  %v9153_v35 = vmax.f32 %v2287_v47, %v2288_v9  ;;  %v3694_v19 = vrot.slane %v3693_v22, 1  ;;  %v3996_v11 = vsel %vm2431_vm4, %v8930_v10, %v3995_v15  ;;  %v3309_v47 = vpop.f32.mrf.mxu2 }
 0x330   : > { %v3992_v4 = vsel %vm2435_vm6, %v9967_v55, %v3991_v18  ;;  %v3997_v56 = vsel %vm2433_vm5, %v8935_v23, %v3996_v11  ;;  %v4128_v43 = vsel %vm2429_vm3, %v8592_v34, %v4127_v14  ;;  %v4134_v26 = vsel %vm2441_vm9, %v8928_v59, %v8926_v50  ;;  %v9968_v11 = vld [vmem:[#allocation22_spill] sm:$0xff] }
 0x331   : > { %v3993_v30 = vsel %vm2437_vm7, %v9115_v52, %v3992_v4  ;;  %v2283_v60 = vrot.slane %v2282_v38, 2  ;;  %v3998_v3 = vsel %vm2435_vm6, %v8990_v28, %v3997_v56  ;;  %v4129_v24 = vsel %vm2431_vm4, %v9966_v57, %v4128_v43  ;;  %4510 = vmatpush.bf16.msrb.mxu0 %v6193_v42 }
 0x332   : > { %v3994_v2 = vsel %vm2439_vm8, %v9133_v44, %v3993_v30  ;;  %v3999_v53 = vsel %vm2437_vm7, %v9136_v45, %v3998_v3  ;;  %v4130_v50 = vsel %vm2433_vm5, %v9967_v55, %v4129_v24  ;;  %v4135_v12 = vsel %vm2429_vm3, %v8930_v10, %v4134_v26 }
 0x333   : > { %v4035_v21 = vsel %vm537_vm0, 0.0, %v3994_v2  ;;  %v4000_v31 = vsel %vm2439_vm8, %v9143_v33, %v3999_v53  ;;  %v4131_v51 = vsel %vm2435_vm6, %v9115_v52, %v4130_v50  ;;  %v4136_v5 = vsel %vm2431_vm4, %v8935_v23, %v4135_v12 }
 0x334   : > { %v3308_v0 = vadd.f32 %v3307_v40, %v9108_v1  ;;  %v9188_v9 = vmax.f32 %v3693_v22, %v3694_v19  ;;  %v4132_v6 = vsel %vm2437_vm7, %v9133_v44, %v4131_v51  ;;  %v4137_v27 = vsel %vm2433_vm5, %v8990_v28, %v4136_v5 }
 0x335   : > { %v3261_v18 = vadd.f32 %v3260_v48, %v3211_v25  ;;  %v4036_v15 = vsel %vm537_vm0, 0.0, %v4000_v31  ;;  %v4133_v14 = vsel %vm2439_vm8, %v9139_v41, %v4132_v6  ;;  %v4138_v4 = vsel %vm2435_vm6, %v9136_v45, %v4137_v27 }
 0x336   : > { %v3336_v1 = vadd.f32 %v9968_v11, %v3308_v0  ;;  %v9200_v40 = vmax.f32 %v2282_v38, %v2283_v60  ;;  %v4139_v22 = vsel %vm2437_vm7, %v9143_v33, %v4138_v4  ;;  %v9204_v19 = vpack.c.bf16 %v4133_v14, %v4035_v21 }
 0x337   : > { %v3310_v30 = vadd.f32 %v3309_v47, %v3261_v18  ;;  %v4140_v56 = vsel %vm2439_vm8, %v9188_v9, %v4139_v22  ;;  %v2229_v26 = vrot.slane %v9104_v46, 1  ;;  %v2234_v2 = vrot.slane %v9022_v7, 2 }
 0x338   : > { %v3352_v43 = vmax.f32 %v3336_v1, 0.0  ;;  %v9210_v3 = vpack.c.bf16 %v4140_v56, %v4036_v15  ;;  %v4263_v24 = vunpack.c.l.b16 %v9204_v19  ;;  %v2238_v60 = vsel %vm1411_vm2, %v1307_v37, -inf }
 0x339   : > { %v3337_v38 = vadd.f32 %v9968_v11, %v3310_v30  ;;  %v2235_v31 = vmax.f32 %v9022_v7, %v2234_v2  ;;  %v2239_v47 = vrot.slane %v2238_v60, 4 }
 0x33a   : > { %v3400_v25 = vrot.slane %v3352_v43, 2  ;;  %v3401_v48 = vrot.slane %v3352_v43, 4  ;;  %v3402_v42 = vrot.slane %v3352_v43, 6  ;;  %v3696_v53 = vsel %vm1411_vm2, %v3352_v43, -inf }
 0x33b   : > { %v4266_v21 = vunpack.c.l.b16 %v9210_v3  ;;  %v3697_v50 = vrot.slane %v3696_v53, 4  ;;  %v3353_v12 = vmax.f32 %v3337_v38, 0.0 }
 0x33c   : > { %v3703_v51 = vsel %vm1411_vm2, %v3400_v25, -inf  ;;  %v3710_v5 = vsel %vm1411_vm2, %v3401_v48, -inf  ;;  %v3717_v0 = vsel %vm1411_vm2, %v3402_v42, -inf }
 0x33d   : > { %v4284_v6 = vpack.c.b16 %v4266_v21, %v4263_v24  ;;  %v3698_v37 = vmax.f32 %v3696_v53, %v3697_v50  ;;  %v3704_v27 = vrot.slane %v3703_v51, 4  ;;  %v3711_v18 = vrot.slane %v3710_v5, 4 }
 0x33e   : > { %v3718_v15 = vrot.slane %v3717_v0, 4  ;;  %v3403_v14 = vrot.slane %v3353_v12, 2  ;;  %v3404_v4 = vrot.slane %v3353_v12, 4  ;;  %v3405_v11 = vrot.slane %v3353_v12, 6 }
 0x33f   : > { %4462 = vmatmul.bf16.gmra.mxu3 %v4284_v6  ;;  %v3699_v1 = vrot.slane %v3698_v37, 2  ;;  %v3705_v22 = vmax.f32 %v3703_v51, %v3704_v27  ;;  %v3712_v30 = vmax.f32 %v3710_v5, %v3711_v18  ;;  %v3724_v7 = vsel %vm1411_vm2, %v3353_v12, -inf }
 0x340   : > { %v3719_v56 = vmax.f32 %v3717_v0, %v3718_v15  ;;  %v3725_v43 = vrot.slane %v3724_v7, 4  ;;  %v3731_v2 = vsel %vm1411_vm2, %v3403_v14, -inf  ;;  %v3738_v38 = vsel %vm1411_vm2, %v3404_v4, -inf }
 0x341   : > { %v3700_v24 = vmax.f32 %v3698_v37, %v3699_v1  ;;  %v3706_v25 = vrot.slane %v3705_v22, 2  ;;  %v3713_v48 = vrot.slane %v3712_v30, 2  ;;  %v3732_v42 = vrot.slane %v3731_v2, 4  ;;  %v6192_v37 = vld [vmem:[#allocation7 + $0x158] sm:$0xff] }
 0x342   : > { %v3720_v53 = vrot.slane %v3719_v56, 2  ;;  %v3726_v21 = vmax.f32 %v3724_v7, %v3725_v43  ;;  %v3739_v50 = vrot.slane %v3738_v38, 4  ;;  %v3745_v6 = vsel %vm1411_vm2, %v3405_v11, -inf  ;;  %4511 = vmatpush.bf16.msrb.mxu0 %v6192_v37  ;;  %v6191_v43 = vld [vmem:[#allocation7 + $0x150] sm:$0xff] }
 0x343   : > { %v3701_v54 = vrot.slane %v3700_v24, 1  ;;  %v3707_v51 = vmax.f32 %v3705_v22, %v3706_v25  ;;  %v3714_v5 = vmax.f32 %v3712_v30, %v3713_v48  ;;  %v3733_v27 = vmax.f32 %v3731_v2, %v3732_v42 }
 0x344   : > { %v3721_v12 = vmax.f32 %v3719_v56, %v3720_v53  ;;  %v3727_v0 = vrot.slane %v3726_v21, 2  ;;  %v3746_v18 = vrot.slane %v3745_v6, 4  ;;  %v9230_v15 = vmax.f32 %v9000_v13, %v2222_v49 }
 0x345   : > { %v3708_v14 = vrot.slane %v3707_v51, 1  ;;  %v3715_v4 = vrot.slane %v3714_v5, 1  ;;  %v3734_v1 = vrot.slane %v3733_v27, 2  ;;  %v9233_v7 = vmax.f32 %v9104_v46, %v2229_v26 }
 0x346   : > { %v9235_v11 = vmax.f32 %v3700_v24, %v3701_v54  ;;  %v3722_v22 = vrot.slane %v3721_v12, 1  ;;  %v9237_v30 = vmax.f32 %v3738_v38, %v3739_v50  ;;  %v2236_v56 = vrot.slane %v2235_v31, 1  ;;  %4512 = vmatpush.bf16.msrb.mxu0 %v6191_v43 }
 0x347   : > { %v9239_v2 = vmax.f32 %v3707_v51, %v3708_v14  ;;  %v9241_v25 = vmax.f32 %v3726_v21, %v3727_v0  ;;  %v9243_v13 = vmax.f32 %v3745_v6, %v3746_v18  ;;  %v2240_v49 = vmax.f32 %v2238_v60, %v2239_v47  ;;  %v6190_v51 = vld [vmem:[#allocation7 + $0x148] sm:$0xff] }
 0x348   : > { %v9245_v48 = vmax.f32 %v3714_v5, %v3715_v4  ;;  %v9247_v42 = vmax.f32 %v3721_v12, %v3722_v22  ;;  %v9249_v46 = vmax.f32 %v3733_v27, %v3734_v1  ;;  %v9969_v54 = vrot.slane %v8992_v17, 6 }
 0x349   : > { %v9254_v38 = vmax.f32 %v2235_v31, %v2236_v56  ;;  %v2241_v24 = vrot.slane %v2240_v49, 2  ;;  %v2278_v21 = vrot.slane %v8941_v20, 1  ;;  %v9970_v50 = vrot.slane %v8932_v62, 1 }
 0x34a   : > { %v2245_v26 = vsel %vm1411_vm2, %v9969_v54, -inf  ;;  %v2285_v47 = vrot.slane %v9200_v40, 1  ;;  %v2290_v6 = vrot.slane %v9153_v35, 2  ;;  %v2296_v17 = vmax.f32 %v9127_v16, %v2295_v32  ;;  %4513 = vmatpush.bf16.msrb.mxu0 %v6190_v51 }
 0x34b   : > { %v2246_v53 = vrot.slane %v2245_v26, 4  ;;  %v2272_v60 = vmax.f32 %v8932_v62, %v9970_v50  ;;  %v2242_v31 = vmax.f32 %v2240_v49, %v2241_v24  ;;  %v2279_v27 = vmax.f32 %v8941_v20, %v2278_v21 }
 0x34c   : > { %v9971_v12 = vrot.slane %v9130_v63, 4  ;;  %v2286_v62 = vmax.f32 %v9200_v40, %v2285_v47  ;;  %v2291_v18 = vmax.f32 %v9153_v35, %v2290_v6  ;;  %v2297_v37 = vrot.slane %v2296_v17, 2  ;;  %v6189_v40 = vld [vmem:[#allocation7 + $0x140] sm:$0xff] }
 0x34d   : > { %v2247_v5 = vmax.f32 %v2245_v26, %v2246_v53  ;;  %v2527_v14 = vsel %vm2429_vm3, %v9010_v58, %v9005_v39  ;;  %v2243_v16 = vrot.slane %v2242_v31, 1  ;;  %v2798_v35 = vsel %vm2441_vm9, %v9010_v58, %v9005_v39 }
 0x34e   : > { %v2303_v0 = vmax.f32 %v9130_v63, %v9971_v12  ;;  %v2528_v1 = vsel %vm2431_vm4, %v9016_v61, %v2527_v14  ;;  %v2292_v20 = vrot.slane %v2291_v18, 1  ;;  %v2298_v22 = vmax.f32 %v2296_v17, %v2297_v37  ;;  %4514 = vmatpush.bf16.msrb.mxu0 %v6189_v40 }
 0x34f   : > { %v2248_v32 = vrot.slane %v2247_v5, 2  ;;  %v2529_v63 = vsel %vm2433_vm5, %v9230_v15, %v2528_v1  ;;  %v2244_v56 = vmax.f32 %v2242_v31, %v2243_v16  ;;  %v2799_v21 = vsel %vm2429_vm3, %v9016_v61, %v2798_v35 }
 0x350   : > { %v2304_v4 = vrot.slane %v2303_v0, 2  ;;  %v2530_v54 = vsel %vm2435_vm6, %v9233_v7, %v2529_v63  ;;  %v2293_v26 = vmax.f32 %v2291_v18, %v2292_v20  ;;  %v2299_v24 = vrot.slane %v2298_v22, 1 }
 0x351   : > { %v2249_v43 = vmax.f32 %v2247_v5, %v2248_v32  ;;  %v2531_v53 = vsel %vm2437_vm7, %v9254_v38, %v2530_v54  ;;  %v2800_v6 = vsel %vm2431_vm4, %v9230_v15, %v2799_v21  ;;  %v2805_v5 = vsel %vm2441_vm9, %v8949_v29, %v8943_v8 }
 0x352   : > { %v2305_v49 = vmax.f32 %v2303_v0, %v2304_v4  ;;  %v2532_v39 = vsel %vm2439_vm8, %v2244_v56, %v2531_v53  ;;  %v2300_v17 = vmax.f32 %v2298_v22, %v2299_v24  ;;  %v2801_v31 = vsel %vm2433_vm5, %v9233_v7, %v2800_v6 }
 0x353   : > { %v2250_v50 = vrot.slane %v2249_v43, 1  ;;  %v2563_v51 = vsel %vm537_vm0, 0.0, %v2532_v39  ;;  %v2802_v18 = vsel %vm2435_vm6, %v9254_v38, %v2801_v31  ;;  %v2806_v37 = vsel %vm2429_vm3, %v2272_v60, %v2805_v5  ;;  %v9973_v39 = vld [vmem:[#allocation31_spill] sm:$0xff]  ;;  %v9974_v31 = vld [vmem:[#allocation32_spill] sm:$0xff] }
 0x354   : > { %v2306_v47 = vrot.slane %v2305_v49, 1  ;;  %v2803_v14 = vsel %vm2437_vm7, %v2244_v56, %v2802_v18  ;;  %v2807_v16 = vsel %vm2431_vm4, %v2279_v27, %v2806_v37  ;;  %v2663_v32 = vsel %vm2441_vm9, %v9016_v61, %v9010_v58  ;;  %v9975_v37 = vld [vmem:[#allocation30_spill] sm:$0xff] }
 0x355   : > { %v2251_v12 = vmax.f32 %v2249_v43, %v2250_v50  ;;  %v2670_v4 = vsel %vm2441_vm9, %v2272_v60, %v8949_v29  ;;  %v2808_v22 = vsel %vm2433_vm5, %v2286_v62, %v2807_v16  ;;  %v2664_v63 = vsel %vm2429_vm3, %v9230_v15, %v2663_v32 }
 0x356   : > { %v2307_v0 = vmax.f32 %v2305_v49, %v2306_v47  ;;  %v2809_v40 = vsel %vm2435_vm6, %v2293_v26, %v2808_v22  ;;  %v2665_v58 = vsel %vm2431_vm4, %v9233_v7, %v2664_v63  ;;  %v2671_v24 = vsel %vm2429_vm3, %v2279_v27, %v2670_v4  ;;  %v9978_v63 = vld [vmem:[#allocation20_spill] sm:$0xff] }
 0x357   : > { %v2533_v1 = vsel %vm2441_vm9, %v8943_v8, %v2251_v12  ;;  %v2804_v20 = vsel %vm2439_vm8, %v2251_v12, %v2803_v14  ;;  %v2810_v49 = vsel %vm2437_vm7, %v2300_v17, %v2809_v40  ;;  %v2666_v54 = vsel %vm2433_vm5, %v9254_v38, %v2665_v58 }
 0x358   : > { %v2534_v35 = vsel %vm2429_vm3, %v8949_v29, %v2533_v1  ;;  %v2856_v43 = vpack.c.bf16 %v2804_v20, %v2563_v51  ;;  %v2811_v53 = vsel %vm2439_vm8, %v2307_v0, %v2810_v49  ;;  %v2667_v47 = vsel %vm2435_vm6, %v2244_v56, %v2666_v54  ;;  %v9977_v20 = vld [vmem:[#allocation27_spill] sm:$0xff] }
 0x359   : > { %v2535_v61 = vsel %vm2431_vm4, %v2272_v60, %v2534_v35  ;;  %v2672_v7 = vsel %vm2431_vm4, %v2286_v62, %v2671_v24  ;;  %v9972_v60 = vld [vmem:[#allocation33_spill] sm:$0xff]  ;;  %v2668_v51 = vsel %vm2437_vm7, %v2251_v12, %v2667_v47  ;;  %v9976_v12 = vld [vmem:[#allocation19_spill] sm:$0xff] }
 0x35a   : > { %v2536_v15 = vsel %vm2433_vm5, %v2279_v27, %v2535_v61  ;;  %v2982_v29 = vunpack.c.l.b16 %v2856_v43  ;;  %v2983_v21 = vunpack.c.h.b16 %v2856_v43  ;;  %v4049_v6 = vsel %vm2441_vm9, %v9973_v39, %v9972_v60  ;;  %v9979_v35 = vld [vmem:[#allocation17_spill] sm:$0xff]  ;;  %v9981_v54 = vld [vmem:[#allocation23_spill] sm:$0xff]  ;;  %v9983_v60 = vld [vmem:[#allocation36_spill] sm:$0xff] }
 0x35b   : > { %v2537_v50 = vsel %vm2435_vm6, %v2286_v62, %v2536_v15  ;;  %v2673_v27 = vsel %vm2433_vm5, %v2293_v26, %v2672_v7  ;;  %v4050_v5 = vsel %vm2429_vm3, %v9974_v31, %v4049_v6  ;;  %v2669_v56 = vsel %vm2439_vm8, %v8943_v8, %v2668_v51  ;;  %v9980_v61 = vld [vmem:[#allocation37_spill] sm:$0xff] }
 0x35c   : > { %v2538_v38 = vsel %vm2437_vm7, %v2293_v26, %v2537_v50  ;;  %v2674_v62 = vsel %vm2435_vm6, %v2300_v17, %v2673_v27  ;;  %v4051_v14 = vsel %vm2431_vm4, %v9975_v37, %v4050_v5  ;;  %v2857_v4 = vpack.c.bf16 %v2669_v56, %v2669_v56  ;;  %v9985_v5 = vld [vmem:[#allocation39_spill] sm:$0xff] }
 0x35d   : > { %v2539_v18 = vsel %vm2439_vm8, %v2300_v17, %v2538_v38  ;;  %v2675_v32 = vsel %vm2437_vm7, %v2307_v0, %v2674_v62  ;;  %v4052_v26 = vsel %vm2433_vm5, %v9976_v12, %v4051_v14  ;;  %v4055_v8 = vsel %vm2441_vm9, %v9979_v35, %v9978_v63  ;;  %v3214_v27 = vpop.f32.mrf.mxu0  ;;  %v3312_v62 = vpop.f32.mrf.mxu2  ;;  %v9398_v35 = vld [vmem:[#allocation10] ss:$0 sm:$0xff] }
 0x35e   : > { %v2858_v16 = vpack.c.bf16 %v2811_v53, %v2539_v18  ;;  %v2699_v1 = vsel %vm610_vm1, %v2675_v32, 0.0  ;;  %v4053_v22 = vsel %vm2435_vm6, %v9977_v20, %v4052_v26  ;;  %v4061_v17 = vsel %vm2441_vm9, %v8592_v34, %v8590_v36  ;;  %v9982_v34 = vld [vmem:[#allocation24_spill] sm:$0xff]  ;;  %v3263_v31 = vpop.f32.mrf.mxu1 }
 0x35f   : > { %v2859_v0 = vpack.c.bf16 %v2699_v1, %v2699_v1  ;;  %v2984_v58 = vunpack.c.l.b16 %v2857_v4  ;;  %v4054_v49 = vsel %vm2437_vm7, %v9980_v61, %v4053_v22  ;;  %v4056_v24 = vsel %vm2429_vm3, %v9981_v54, %v4055_v8 }
 0x360   : > { %v2985_v40 = vunpack.c.l.b16 %v2858_v16  ;;  %v2986_v43 = vunpack.c.h.b16 %v2858_v16  ;;  %v4062_v15 = vsel %vm2429_vm3, %v9966_v57, %v4061_v17  ;;  %v4067_v53 = vsel %vm2441_vm9, %v8930_v10, %v8928_v59  ;;  %v9984_v10 = vld [vmem:[#allocation38_spill] sm:$0xff] }
 0x361   : > { %v2987_v36 = vunpack.c.l.b16 %v2859_v0  ;;  %v4057_v7 = vsel %vm2431_vm4, %v9982_v34, %v4056_v24  ;;  %v4105_v6 = vsel %vm610_vm1, %v4054_v49, 0.0  ;;  %v4063_v38 = vsel %vm2431_vm4, %v9967_v55, %v4062_v15 }
 0x362   : > { %v3009_v50 = vpack.c.b16 %v2985_v40, %v2982_v29  ;;  %v3010_v47 = vpack.c.b16 %v2986_v43, %v2983_v21  ;;  %v4058_v39 = vsel %vm2433_vm5, %v9983_v60, %v4057_v7  ;;  %v4068_v57 = vsel %vm2429_vm3, %v8935_v23, %v4067_v53 }
 0x363   : > { %v3729_v51 = vrot.slane %v9241_v25, 1  ;;  %v3011_v59 = vpack.c.b16 %v2987_v36, %v2984_v58  ;;  %v4059_v29 = vsel %vm2435_vm6, %v9984_v10, %v4058_v39  ;;  %v4178_v21 = vpack.c.bf16 %v4105_v6, %v4105_v6 }
 0x364   : > { %3223 = vmatmul.bf16.gmra.mxu0 %v3009_v50  ;;  %3272 = vmatmul.bf16.gmra.mxu1 %v3010_v47  ;;  %v4060_v18 = vsel %vm2437_vm7, %v9985_v5, %v4059_v29  ;;  %v4064_v55 = vsel %vm2433_vm5, %v9115_v52, %v4063_v38  ;;  %v4069_v23 = vsel %vm2431_vm4, %v8990_v28, %v4068_v57  ;;  %v3736_v32 = vrot.slane %v9249_v46, 1 }
 0x365   : > { %v3264_v56 = vadd.f32 %v3263_v31, %v3214_v27  ;;  %3321 = vmatmul.bf16.gmra.mxu2 %v3011_v59  ;;  %v4106_v37 = vsel %vm610_vm1, %v4060_v18, 0.0  ;;  %v4065_v14 = vsel %vm2435_vm6, %v9133_v44, %v4064_v55  ;;  %v4070_v16 = vsel %vm2433_vm5, %v9136_v45, %v4069_v23  ;;  %v3216_v49 = vpop.f32.mrf.mxu0  ;;  %v3314_v7 = vpop.f32.mrf.mxu2 }
 0x366   : > { %v4180_v4 = vpack.c.bf16 %v4106_v37, %v4106_v37  ;;  %v4066_v52 = vsel %vm2437_vm7, %v9139_v41, %v4065_v14  ;;  %v4071_v28 = vsel %vm2435_vm6, %v9143_v33, %v4070_v16  ;;  %v9391_v26 = vmax.f32 %v9241_v25, %v3729_v51 }
 0x367   : > { %v3313_v12 = vadd.f32 %v3312_v62, %v3264_v56  ;;  %v4072_v1 = vsel %vm2437_vm7, %v9188_v9, %v4071_v28  ;;  %v4107_v44 = vsel %vm610_vm1, %v4066_v52, 0.0  ;;  %v3741_v45 = vrot.slane %v9237_v30, 2 }
 0x368   : > { %v4259_v20 = vunpack.c.l.b16 %v4178_v21  ;;  %v4108_v22 = vsel %vm610_vm1, %v4072_v1, 0.0  ;;  %v4182_v63 = vpack.c.bf16 %v4107_v44, %v4107_v44  ;;  %v3748_v25 = vrot.slane %v9243_v13, 2 }
 0x369   : > { %v3338_v41 = vadd.f32 %v9398_v35, %v3313_v12  ;;  %v4184_v33 = vpack.c.bf16 %v4108_v22, %v4108_v22  ;;  %v3742_v8 = vmax.f32 %v9237_v30, %v3741_v45  ;;  %v4001_v9 = vsel %vm2429_vm3, %v9239_v2, %v9235_v11  ;;  %v3265_v30 = vpop.f32.mrf.mxu1 }
 0x36a   : > { %v4262_v17 = vunpack.c.l.b16 %v4180_v4  ;;  %v9407_v43 = vmax.f32 %v9249_v46, %v3736_v32  ;;  %v4002_v0 = vsel %vm2431_vm4, %v9245_v48, %v4001_v9  ;;  %v9411_v58 = vunpack.c.l.b16 %v4182_v63 }
 0x36b   : > { %v3354_v40 = vmax.f32 %v3338_v41, 0.0  ;;  %v9413_v61 = vunpack.c.l.b16 %v4184_v33  ;;  %v3743_v54 = vrot.slane %v3742_v8, 1  ;;  %v3749_v24 = vmax.f32 %v9243_v13, %v3748_v25 }
 0x36c   : > { %v3266_v34 = vadd.f32 %v3265_v30, %v3216_v49  ;;  %v4003_v60 = vsel %vm2433_vm5, %v9247_v42, %v4002_v0  ;;  %v4283_v29 = vpack.c.b16 %v4262_v17, %v4259_v20  ;;  %v4141_v31 = vsel %vm2441_vm9, %v9239_v2, %v9235_v11 }
 0x36d   : > { %v3406_v15 = vrot.slane %v3354_v40, 2  ;;  %v3407_v53 = vrot.slane %v3354_v40, 4  ;;  %v3408_v50 = vrot.slane %v3354_v40, 6  ;;  %v3752_v47 = vsel %vm1411_vm2, %v3354_v40, -inf }
 0x36e   : > { %v4286_v46 = vpack.c.b16 %v9413_v61, %v9411_v58  ;;  %v3753_v36 = vrot.slane %v3752_v47, 4  ;;  %v3750_v38 = vrot.slane %v3749_v24, 1  ;;  %v3315_v21 = vadd.f32 %v3314_v7, %v3266_v34 }
 0x36f   : > { %v3759_v39 = vsel %vm1411_vm2, %v3406_v15, -inf  ;;  %v3766_v6 = vsel %vm1411_vm2, %v3407_v53, -inf  ;;  %v3773_v13 = vsel %vm1411_vm2, %v3408_v50, -inf  ;;  %v4004_v27 = vsel %vm2435_vm6, %v9391_v26, %v4003_v60 }
 0x370   : > { %v3754_v57 = vmax.f32 %v3752_v47, %v3753_v36  ;;  %v3760_v51 = vrot.slane %v3759_v39, 4  ;;  %v3767_v59 = vrot.slane %v3766_v6, 4  ;;  %v3774_v10 = vrot.slane %v3773_v13, 4 }
 0x371   : > { %v3339_v56 = vadd.f32 %v9398_v35, %v3315_v21  ;;  %v9430_v62 = vmax.f32 %v3742_v8, %v3743_v54  ;;  %v9432_v37 = vmax.f32 %v3749_v24, %v3750_v38  ;;  %v4005_v28 = vsel %vm2437_vm7, %v9407_v43, %v4004_v27 }
 0x372   : > { %v3755_v5 = vrot.slane %v3754_v57, 2  ;;  %v3761_v18 = vmax.f32 %v3759_v39, %v3760_v51  ;;  %v3768_v55 = vmax.f32 %v3766_v6, %v3767_v59  ;;  %v3775_v23 = vmax.f32 %v3773_v13, %v3774_v10 }
 0x373   : > { %v3355_v52 = vmax.f32 %v3339_v56, 0.0  ;;  %v4142_v11 = vsel %vm2429_vm3, %v9245_v48, %v4141_v31  ;;  %v4073_v12 = vsel %vm2441_vm9, %v9245_v48, %v9239_v2  ;;  %v4006_v17 = vsel %vm2439_vm8, %v9430_v62, %v4005_v28 }
 0x374   : > { %4515 = vmatmul.bf16.vlgmr.msrb.gmra.mxu0 %v4283_v29  ;;  %v3756_v14 = vmax.f32 %v3754_v57, %v3755_v5  ;;  %v3762_v16 = vrot.slane %v3761_v18, 2  ;;  %v3769_v32 = vrot.slane %v3768_v55, 2  ;;  %v3776_v4 = vrot.slane %v3775_v23, 2 }
 0x375   : > { %v3409_v22 = vrot.slane %v3355_v52, 2  ;;  %v3410_v63 = vrot.slane %v3355_v52, 4  ;;  %v3411_v41 = vrot.slane %v3355_v52, 6  ;;  %v3780_v33 = vsel %vm1411_vm2, %v3355_v52, -inf }
 0x376   : > { %v3757_v1 = vrot.slane %v3756_v14, 1  ;;  %v3763_v44 = vmax.f32 %v3761_v18, %v3762_v16  ;;  %v3770_v45 = vmax.f32 %v3768_v55, %v3769_v32  ;;  %v3777_v20 = vmax.f32 %v3775_v23, %v3776_v4 }
 0x377   : > { %v3781_v40 = vrot.slane %v3780_v33, 4  ;;  %v3787_v0 = vsel %vm1411_vm2, %v3409_v22, -inf  ;;  %v3794_v2 = vsel %vm1411_vm2, %v3410_v63, -inf  ;;  %v3801_v48 = vsel %vm1411_vm2, %v3411_v41, -inf }
 0x378   : > { %v3758_v8 = vmax.f32 %v3756_v14, %v3757_v1  ;;  %v3764_v25 = vrot.slane %v3763_v44, 1  ;;  %v3771_v9 = vrot.slane %v3770_v45, 1  ;;  %v3778_v54 = vrot.slane %v3777_v20, 1 }
 0x379   : > { %v3788_v24 = vrot.slane %v3787_v0, 4  ;;  %v3782_v15 = vmax.f32 %v3780_v33, %v3781_v40  ;;  %v3795_v53 = vrot.slane %v3794_v2, 4  ;;  %v3802_v50 = vrot.slane %v3801_v48, 4 }
 0x37a   : > { %v3765_v49 = vmax.f32 %v3763_v44, %v3764_v25  ;;  %v3772_v30 = vmax.f32 %v3770_v45, %v3771_v9  ;;  %v4143_v47 = vsel %vm2431_vm4, %v9247_v42, %v4142_v11  ;;  %v4074_v60 = vsel %vm2429_vm3, %v9247_v42, %v4073_v12 }
 0x37b   : > { %v3789_v36 = vmax.f32 %v3787_v0, %v3788_v24  ;;  %v4144_v7 = vsel %vm2433_vm5, %v9391_v26, %v4143_v47  ;;  %v3783_v39 = vrot.slane %v3782_v15, 2  ;;  %v3796_v6 = vmax.f32 %v3794_v2, %v3795_v53 }
 0x37c   : > { %v4007_v34 = vsel %vm2429_vm3, %v3765_v49, %v3758_v8  ;;  %v3803_v13 = vmax.f32 %v3801_v48, %v3802_v50  ;;  %v4148_v38 = vsel %vm2441_vm9, %v3765_v49, %v3758_v8  ;;  %v3779_v57 = vmax.f32 %v3777_v20, %v3778_v54 }
 0x37d   : > { %v3790_v51 = vrot.slane %v3789_v36, 2  ;;  %v4008_v59 = vsel %vm2431_vm4, %v3772_v30, %v4007_v34  ;;  %v4145_v10 = vsel %vm2435_vm6, %v9407_v43, %v4144_v7  ;;  %v3784_v29 = vmax.f32 %v3782_v15, %v3783_v39  ;;  %v6188_v34 = vld [vmem:[#allocation7 + $0x138] sm:$0xff] }
 0x37e   : > { %v3797_v21 = vrot.slane %v3796_v6, 2  ;;  %v3804_v27 = vrot.slane %v3803_v13, 2  ;;  %v4146_v31 = vsel %vm2437_vm7, %v9430_v62, %v4145_v10  ;;  %v4037_v42 = vsel %vm537_vm0, 0.0, %v4006_v17  ;;  %4478 = vmatpush.bf16.msrb.mxu3 %v6188_v34 }
 0x37f   : > { %v3791_v5 = vmax.f32 %v3789_v36, %v3790_v51  ;;  %v4149_v18 = vsel %vm2429_vm3, %v3772_v30, %v4148_v38  ;;  %v4075_v55 = vsel %vm2431_vm4, %v9391_v26, %v4074_v60  ;;  %v3785_v23 = vrot.slane %v3784_v29, 1 }
 0x380   : > { %v3798_v56 = vmax.f32 %v3796_v6, %v3797_v21  ;;  %v3805_v14 = vmax.f32 %v3803_v13, %v3804_v27  ;;  %v4147_v16 = vsel %vm2439_vm8, %v9432_v37, %v4146_v31  ;;  %v4009_v4 = vsel %vm2433_vm5, %v3779_v57, %v4008_v59  ;;  %v6187_v59 = vld [vmem:[#allocation7 + $0x130] sm:$0xff] }
 0x381   : > { %v3792_v32 = vrot.slane %v3791_v5, 1  ;;  %v4076_v52 = vsel %vm2433_vm5, %v9407_v43, %v4075_v55  ;;  %v4079_v28 = vsel %vm2441_vm9, %v3772_v30, %v3765_v49  ;;  %v3786_v11 = vmax.f32 %v3784_v29, %v3785_v23 }
 0x382   : > { %v3799_v12 = vrot.slane %v3798_v56, 1  ;;  %v3806_v1 = vrot.slane %v3805_v14, 1  ;;  %v4150_v44 = vsel %vm2431_vm4, %v3779_v57, %v4149_v18  ;;  %v9474_v45 = vpack.c.bf16 %v4147_v16, %v4037_v42  ;;  %4479 = vmatpush.bf16.msrb.mxu3 %v6187_v59 }
 0x383   : > { %v3793_v26 = vmax.f32 %v3791_v5, %v3792_v32  ;;  %v4077_v20 = vsel %vm2435_vm6, %v9430_v62, %v4076_v52  ;;  %v4080_v22 = vsel %vm2429_vm3, %v3779_v57, %v4079_v28  ;;  %v4010_v41 = vsel %vm2435_vm6, %v3786_v11, %v4009_v4 }
 0x384   : > { %4520 = vmatmul.bf16.gmra.mxu0 %v4286_v46  ;;  %v3800_v43 = vmax.f32 %v3798_v56, %v3799_v12  ;;  %v3807_v63 = vmax.f32 %v3805_v14, %v3806_v1  ;;  %v4151_v33 = vsel %vm2433_vm5, %v3786_v11, %v4150_v44  ;;  %v4078_v58 = vsel %vm2437_vm7, %v9432_v37, %v4077_v20 }
 0x385   : > { %v4011_v8 = vsel %vm2437_vm7, %v3793_v26, %v4010_v41  ;;  %v4152_v25 = vsel %vm2435_vm6, %v3793_v26, %v4151_v33  ;;  %v4081_v61 = vsel %vm2431_vm4, %v3786_v11, %v4080_v22  ;;  %v4109_v17 = vsel %vm610_vm1, %v4078_v58, 0.0 }
 0x386   : > { %v4012_v46 = vsel %vm2439_vm8, %v3800_v43, %v4011_v8  ;;  %v4153_v62 = vsel %vm2437_vm7, %v3800_v43, %v4152_v25  ;;  %v4082_v9 = vsel %vm2433_vm5, %v3793_v26, %v4081_v61  ;;  %v4186_v30 = vpack.c.bf16 %v4109_v17, %v4109_v17 }
 0x387   : > { %v4038_v40 = vsel %vm537_vm0, 0.0, %v4012_v46  ;;  %v4154_v0 = vsel %vm2439_vm8, %v3807_v63, %v4153_v62  ;;  %v4083_v2 = vsel %vm2435_vm6, %v3800_v43, %v4082_v9  ;;  %v4269_v54 = vunpack.c.l.b16 %v9474_v45  ;;  %v6186_v62 = vld [vmem:[#allocation7 + $0x128] sm:$0xff] }
 0x388   : > { %v9493_v48 = vpack.c.bf16 %v4154_v0, %v4038_v40  ;;  %v4084_v37 = vsel %vm2437_vm7, %v3807_v63, %v4083_v2  ;;  %v4271_v47 = vunpack.c.l.b16 %v4186_v30  ;;  %4480 = vmatpush.bf16.msrb.mxu3 %v6186_v62 }
 0x389   : > { %v4110_v49 = vsel %vm610_vm1, %v4084_v37, 0.0 }
 0x38a   : > { %v4272_v24 = vunpack.c.l.b16 %v9493_v48  ;;  %v4188_v15 = vpack.c.bf16 %v4110_v49, %v4110_v49 }
 0x38c   : > { %v4287_v53 = vpack.c.b16 %v4272_v24, %v4269_v54  ;;  %v4274_v50 = vunpack.c.l.b16 %v4188_v15 }
 0x38e   : > { %4467 = vmatmul.bf16.gmra.mxu3 %v4287_v53  ;;  %v4289_v36 = vpack.c.b16 %v4274_v50, %v4271_v47 }
 0x394   : > { %4525 = vmatmul.bf16.gmra.mxu0 %v4289_v36 }
 0x3a3   : > { %v3219_v7 = vpop.f32.mrf.mxu0 }
 0x3a4   : > { %v3268_v60 = vpop.f32.mrf.mxu1 }
 0x3a5   : > { %v3269_v6 = vadd.f32 %v3268_v60, %v3219_v7  ;;  %v6185_v7 = vld [vmem:[#allocation7 + $0x120] sm:$0xff] }
 0x3a6   : > { %4481 = vmatpush.bf16.msrb.mxu3 %v6185_v7 }
 0x3ab   : > { %v3221_v57 = vpop.f32.mrf.mxu0 }
 0x3ac   : > { %v3270_v51 = vpop.f32.mrf.mxu1 }
 0x3ad   : > { %v3271_v29 = vadd.f32 %v3270_v51, %v3221_v57  ;;  %v6184_v57 = vld [vmem:[#allocation7 + $0x118] sm:$0xff] }
 0x3ae   : > { %4482 = vmatpush.bf16.msrb.mxu3 %v6184_v57 }
 0x3af   : > { %v3317_v39 = vpop.f32.mrf.mxu2 }
 0x3b0   : > { %v3318_v13 = vadd.f32 %v3317_v39, %v3269_v6 }
 0x3b2   : > { %v3340_v38 = vadd.f32 %v9398_v35, %v3318_v13 }
 0x3b4   : > { %v3356_v21 = vmax.f32 %v3340_v38, 0.0 }
 0x3b6   : > { %v3412_v31 = vrot.slane %v3356_v21, 2  ;;  %v3413_v42 = vrot.slane %v3356_v21, 4  ;;  %v3808_v23 = vsel %vm1411_vm2, %v3356_v21, -inf  ;;  %v3414_v56 = vrot.slane %v3356_v21, 6 }
 0x3b7   : > { %v3319_v10 = vpop.f32.mrf.mxu2  ;;  %v3809_v32 = vrot.slane %v3808_v23, 4 }
 0x3b8   : > { %v3320_v27 = vadd.f32 %v3319_v10, %v3271_v29  ;;  %v3815_v18 = vsel %vm1411_vm2, %v3412_v31, -inf  ;;  %v3822_v16 = vsel %vm1411_vm2, %v3413_v42, -inf  ;;  %v3829_v11 = vsel %vm1411_vm2, %v3414_v56, -inf }
 0x3b9   : > { %v3816_v14 = vrot.slane %v3815_v18, 4  ;;  %v3823_v52 = vrot.slane %v3822_v16, 4  ;;  %v3810_v1 = vmax.f32 %v3808_v23, %v3809_v32  ;;  %v3830_v20 = vrot.slane %v3829_v11, 4 }
 0x3ba   : > { %v3341_v5 = vadd.f32 %v9398_v35, %v3320_v27 }
 0x3bb   : > { %v3817_v28 = vmax.f32 %v3815_v18, %v3816_v14  ;;  %v3824_v26 = vmax.f32 %v3822_v16, %v3823_v52  ;;  %v3811_v8 = vrot.slane %v3810_v1, 2  ;;  %v3831_v58 = vmax.f32 %v3829_v11, %v3830_v20 }
 0x3bc   : > { %v3357_v55 = vmax.f32 %v3341_v5, 0.0 }
 0x3bd   : > { %v3818_v22 = vrot.slane %v3817_v28, 2  ;;  %v3825_v25 = vrot.slane %v3824_v26, 2  ;;  %v3812_v0 = vmax.f32 %v3810_v1, %v3811_v8  ;;  %v3832_v37 = vrot.slane %v3831_v58, 2 }
 0x3be   : > { %v3415_v4 = vrot.slane %v3357_v55, 2  ;;  %v3836_v12 = vsel %vm1411_vm2, %v3357_v55, -inf  ;;  %v3416_v63 = vrot.slane %v3357_v55, 4  ;;  %v3417_v41 = vrot.slane %v3357_v55, 6  ;;  %v6183_v55 = vld [vmem:[#allocation7 + $0x110] sm:$0xff] }
 0x3bf   : > { %v3837_v43 = vrot.slane %v3836_v12, 4  ;;  %v3819_v61 = vmax.f32 %v3817_v28, %v3818_v22  ;;  %v3826_v2 = vmax.f32 %v3824_v26, %v3825_v25  ;;  %v3813_v47 = vrot.slane %v3812_v0, 1  ;;  %4483 = vmatpush.bf16.msrb.mxu3 %v6183_v55 }
 0x3c0   : > { %v3843_v44 = vsel %vm1411_vm2, %v3415_v4, -inf  ;;  %v3850_v17 = vsel %vm1411_vm2, %v3416_v63, -inf  ;;  %v3857_v40 = vsel %vm1411_vm2, %v3417_v41, -inf  ;;  %v3833_v34 = vmax.f32 %v3831_v58, %v3832_v37 }
 0x3c1   : > { %v3844_v33 = vrot.slane %v3843_v44, 4  ;;  %v3838_v46 = vmax.f32 %v3836_v12, %v3837_v43  ;;  %v3820_v49 = vrot.slane %v3819_v61, 1  ;;  %v3851_v54 = vrot.slane %v3850_v17, 4 }
 0x3c2   : > { %v3858_v24 = vrot.slane %v3857_v40, 4  ;;  %v3827_v36 = vrot.slane %v3826_v2, 1  ;;  %v3814_v51 = vmax.f32 %v3812_v0, %v3813_v47  ;;  %v3834_v10 = vrot.slane %v3833_v34, 1 }
 0x3c3   : > { %v3845_v9 = vmax.f32 %v3843_v44, %v3844_v33  ;;  %v3839_v30 = vrot.slane %v3838_v46, 2  ;;  %v3821_v60 = vmax.f32 %v3819_v61, %v3820_v49  ;;  %v3852_v6 = vmax.f32 %v3850_v17, %v3851_v54  ;;  %v6182_v17 = vld [vmem:[#allocation7 + $0x108] sm:$0xff] }
 0x3c4   : > { %v3859_v13 = vmax.f32 %v3857_v40, %v3858_v24  ;;  %v3828_v59 = vmax.f32 %v3826_v2, %v3827_v36  ;;  %v3835_v12 = vmax.f32 %v3833_v34, %v3834_v10  ;;  %4484 = vmatpush.bf16.msrb.mxu3 %v6182_v17 }
 0x3c5   : > { %v3846_v50 = vrot.slane %v3845_v9, 2  ;;  %v3840_v39 = vmax.f32 %v3838_v46, %v3839_v30  ;;  %v3853_v31 = vrot.slane %v3852_v6, 2  ;;  %v4013_v42 = vsel %vm2429_vm3, %v3821_v60, %v3814_v51 }
 0x3c6   : > { %v3860_v5 = vrot.slane %v3859_v13, 2  ;;  %v4155_v56 = vsel %vm2441_vm9, %v3821_v60, %v3814_v51  ;;  %v4014_v28 = vsel %vm2431_vm4, %v3828_v59, %v4013_v42  ;;  %v4085_v40 = vsel %vm2441_vm9, %v3828_v59, %v3821_v60 }
 0x3c7   : > { %v3847_v38 = vmax.f32 %v3845_v9, %v3846_v50  ;;  %v3841_v21 = vrot.slane %v3840_v39, 1  ;;  %v3854_v32 = vmax.f32 %v3852_v6, %v3853_v31  ;;  %v4156_v11 = vsel %vm2429_vm3, %v3828_v59, %v4155_v56 }
 0x3c8   : > { %v3861_v4 = vmax.f32 %v3859_v13, %v3860_v5  ;;  %v4015_v63 = vsel %vm2433_vm5, %v3835_v12, %v4014_v28  ;;  %v4157_v41 = vsel %vm2431_vm4, %v3835_v12, %v4156_v11  ;;  %v4086_v57 = vsel %vm2429_vm3, %v3835_v12, %v4085_v40 }
 0x3c9   : > { %v3848_v23 = vrot.slane %v3847_v38, 1  ;;  %v3842_v1 = vmax.f32 %v3840_v39, %v3841_v21  ;;  %v3855_v22 = vrot.slane %v3854_v32, 1 }
 0x3ca   : > { %v3862_v43 = vrot.slane %v3861_v4, 1 }
 0x3cb   : > { %v9514_v20 = vmax.f32 %v3847_v38, %v3848_v23  ;;  %v4016_v62 = vsel %vm2435_vm6, %v3842_v1, %v4015_v63  ;;  %v4158_v9 = vsel %vm2433_vm5, %v3842_v1, %v4157_v41  ;;  %v3856_v47 = vmax.f32 %v3854_v32, %v3855_v22 }
 0x3cc   : > { %v3863_v13 = vmax.f32 %v3861_v4, %v3862_v43  ;;  %v4087_v28 = vsel %vm2431_vm4, %v3842_v1, %v4086_v57 }
 0x3cd   : > { %v4017_v36 = vsel %vm2437_vm7, %v9514_v20, %v4016_v62  ;;  %v4159_v38 = vsel %vm2435_vm6, %v9514_v20, %v4158_v9  ;;  %v4088_v1 = vsel %vm2433_vm5, %v9514_v20, %v4087_v28 }
 0x3e1   : > { %v3224_v15 = vpop.f32.mrf.mxu0  ;;  %v3273_v53 = vpop.f32.mrf.mxu1 }
 0x3e2   : > { %v3274_v29 = vadd.f32 %v3273_v53, %v3224_v15  ;;  %v6181_v53 = vld [vmem:[#allocation7 + $0x100] sm:$0xff] }
 0x3e3   : > { %4485 = vmatpush.bf16.msrb.mxu3 %v6181_v53 }
 0x3e8   : > { %v3322_v27 = vpop.f32.mrf.mxu2 }
 0x3e9   : > { %v3323_v18 = vadd.f32 %v3322_v27, %v3274_v29  ;;  %v3226_v14 = vpop.f32.mrf.mxu0  ;;  %v3275_v16 = vpop.f32.mrf.mxu1 }
 0x3ea   : > { %v3276_v26 = vadd.f32 %v3275_v16, %v3226_v14 }
 0x3eb   : > { %v3342_v52 = vadd.f32 %v9398_v35, %v3323_v18 }
 0x3ed   : > { %v3358_v44 = vmax.f32 %v3342_v52, 0.0  ;;  %v4018_v52 = vsel %vm2439_vm8, %v3856_v47, %v4017_v36 }
 0x3ef   : > { %v3418_v33 = vrot.slane %v3358_v44, 2  ;;  %v3419_v8 = vrot.slane %v3358_v44, 4  ;;  %v3420_v25 = vrot.slane %v3358_v44, 6  ;;  %v3864_v58 = vsel %vm1411_vm2, %v3358_v44, -inf }
 0x3f0   : > { %v3865_v61 = vrot.slane %v3864_v58, 4  ;;  %v3324_v46 = vpop.f32.mrf.mxu2 }
 0x3f1   : > { %v3871_v0 = vsel %vm1411_vm2, %v3418_v33, -inf  ;;  %v3878_v2 = vsel %vm1411_vm2, %v3419_v8, -inf  ;;  %v3885_v37 = vsel %vm1411_vm2, %v3420_v25, -inf  ;;  %v3325_v49 = vadd.f32 %v3324_v46, %v3276_v26 }
 0x3f2   : > { %v3866_v30 = vmax.f32 %v3864_v58, %v3865_v61  ;;  %v3872_v54 = vrot.slane %v3871_v0, 4  ;;  %v3879_v24 = vrot.slane %v3878_v2, 4  ;;  %v3886_v15 = vrot.slane %v3885_v37, 4 }
 0x3f3   : > { %v3343_v50 = vadd.f32 %v9398_v35, %v3325_v49  ;;  %v4160_v46 = vsel %vm2437_vm7, %v3856_v47, %v4159_v38  ;;  %v4089_v49 = vsel %vm2435_vm6, %v3856_v47, %v4088_v1  ;;  %v4264_v1 = vunpack.c.h.b16 %v9204_v19  ;;  %v4458_v19 = vpop.f32.mrf.mxu3 }
 0x3f4   : > { %v3867_v34 = vrot.slane %v3866_v30, 2  ;;  %v3873_v7 = vmax.f32 %v3871_v0, %v3872_v54  ;;  %v3880_v60 = vmax.f32 %v3878_v2, %v3879_v24  ;;  %v3887_v39 = vmax.f32 %v3885_v37, %v3886_v15 }
 0x3f5   : > { %v3359_v6 = vmax.f32 %v3343_v50, 0.0  ;;  %v4090_v36 = vsel %vm2437_vm7, %v3863_v13, %v4089_v49  ;;  %v4161_v47 = vsel %vm2439_vm8, %v3863_v13, %v4160_v46  ;;  %v4273_v49 = vunpack.c.h.b16 %v9493_v48 }
 0x3f6   : > { %v3868_v51 = vmax.f32 %v3866_v30, %v3867_v34  ;;  %v3874_v59 = vrot.slane %v3873_v7, 2  ;;  %v3881_v10 = vrot.slane %v3880_v60, 2  ;;  %v3888_v29 = vrot.slane %v3887_v39, 2 }
 0x3f7   : > { %v3421_v35 = vrot.slane %v3359_v6, 2  ;;  %v3422_v21 = vrot.slane %v3359_v6, 4  ;;  %v3423_v27 = vrot.slane %v3359_v6, 6  ;;  %v3892_v31 = vsel %vm1411_vm2, %v3359_v6, -inf }
 0x3f8   : > { %v3869_v5 = vrot.slane %v3868_v51, 1  ;;  %v3875_v42 = vmax.f32 %v3873_v7, %v3874_v59  ;;  %v3882_v18 = vmax.f32 %v3880_v60, %v3881_v10  ;;  %v3889_v55 = vmax.f32 %v3887_v39, %v3888_v29 }
 0x3f9   : > { %v3893_v23 = vrot.slane %v3892_v31, 4  ;;  %v3899_v56 = vsel %vm1411_vm2, %v3421_v35, -inf  ;;  %v3906_v14 = vsel %vm1411_vm2, %v3422_v21, -inf  ;;  %v3913_v16 = vsel %vm1411_vm2, %v3423_v27, -inf }
 0x3fa   : > { %v3876_v32 = vrot.slane %v3875_v42, 1  ;;  %v3883_v4 = vrot.slane %v3882_v18, 1  ;;  %v3900_v12 = vrot.slane %v3899_v56, 4  ;;  %v3907_v44 = vrot.slane %v3906_v14, 4 }
 0x3fb   : > { %v3894_v11 = vmax.f32 %v3892_v31, %v3893_v23  ;;  %v3914_v26 = vrot.slane %v3913_v16, 4  ;;  %v3870_v22 = vmax.f32 %v3868_v51, %v3869_v5  ;;  %v3890_v41 = vrot.slane %v3889_v55, 1 }
 0x3fc   : > { %v3877_v43 = vmax.f32 %v3875_v42, %v3876_v32  ;;  %v3884_v63 = vmax.f32 %v3882_v18, %v3883_v4  ;;  %v3901_v8 = vmax.f32 %v3899_v56, %v3900_v12  ;;  %v3908_v25 = vmax.f32 %v3906_v14, %v3907_v44 }
 0x3fd   : > { %v3895_v33 = vrot.slane %v3894_v11, 2  ;;  %v3915_v58 = vmax.f32 %v3913_v16, %v3914_v26  ;;  %v3891_v2 = vmax.f32 %v3889_v55, %v3890_v41  ;;  %v4039_v6 = vsel %vm537_vm0, 0.0, %v4018_v52 }
 0x3fe   : > { %v4019_v61 = vsel %vm2429_vm3, %v3877_v43, %v3870_v22  ;;  %v4162_v62 = vsel %vm2441_vm9, %v3877_v43, %v3870_v22  ;;  %v3902_v17 = vrot.slane %v3901_v8, 2  ;;  %v3909_v40 = vrot.slane %v3908_v25, 2 }
 0x3ff   : > { %v3896_v9 = vmax.f32 %v3894_v11, %v3895_v33  ;;  %v3916_v0 = vrot.slane %v3915_v58, 2  ;;  %v4020_v37 = vsel %vm2431_vm4, %v3884_v63, %v4019_v61  ;;  %v4091_v30 = vsel %vm2441_vm9, %v3884_v63, %v3877_v43  ;;  %v9987_v33 = vld [vmem:[#allocation40_spill] sm:$0xff] }
 0x400   : > { %v3903_v24 = vmax.f32 %v3901_v8, %v3902_v17  ;;  %v3910_v15 = vmax.f32 %v3908_v25, %v3909_v40  ;;  %v4163_v50 = vsel %vm2429_vm3, %v3884_v63, %v4162_v62  ;;  %v4021_v39 = vsel %vm2433_vm5, %v3891_v2, %v4020_v37  ;;  %v9986_v63 = vld [vmem:[#allocation41_spill] sm:$0xff]  ;;  %v6212_v17 = vld [vmem:[#allocation8 + $0x78] sm:$0xff]  ;;  %v6210_v37 = vld [vmem:[#allocation8 + $0x68] sm:$0xff] }
 0x401   : > { %v3897_v54 = vrot.slane %v3896_v9, 1  ;;  %v3917_v53 = vmax.f32 %v3915_v58, %v3916_v0  ;;  %v4092_v38 = vsel %vm2429_vm3, %v3891_v2, %v4091_v30  ;;  %v4164_v10 = vsel %vm2431_vm4, %v3891_v2, %v4163_v50  ;;  %v6204_v40 = vld [vmem:[#allocation8 + $0x38] sm:$0xff]  ;;  %4673 = vmatpush.bf16.msrb.mxu1 %v6212_v17  ;;  %v6211_v0 = vld [vmem:[#allocation8 + $0x70] sm:$0xff]  ;;  %v6209_v50 = vld [vmem:[#allocation8 + $0x60] sm:$0xff] }
 0x402   : > { %v3904_v34 = vrot.slane %v3903_v24, 1  ;;  %v3911_v7 = vrot.slane %v3910_v15, 1  ;;  %v4111_v21 = vsel %vm610_vm1, %v4090_v36, 0.0  ;;  %v4189_v55 = vpack.c.bf16 %v4161_v47, %v4039_v6  ;;  %4750 = vmatpush.bf16.msrb.mxu2 %v6204_v40  ;;  %v6203_v2 = vld [vmem:[#allocation8 + $0x30] sm:$0xff]  ;;  %v6201_v36 = vld [vmem:[#allocation8 + $0x20] sm:$0xff]  ;;  %v6220_v6 = vld [vmem:[#allocation8 + $0xb8] sm:$0xff] }
 0x403   : > { %v3898_v20 = vmax.f32 %v3896_v9, %v3897_v54  ;;  %v3918_v60 = vrot.slane %v3917_v53, 1  ;;  %v4190_v32 = vpack.c.bf16 %v4111_v21, %v4111_v21  ;;  %v4261_v41 = vunpack.c.h.b16 %v9986_v63  ;;  %4843 = vmatpush.bf16.msra.mxu3 %v6220_v6  ;;  %v6215_v63 = vld [vmem:[#allocation8 + $0x90] sm:$0xff]  ;;  %v6226_v17 = vld [vmem:[#allocation8 + $0xe8] sm:$0xff] }
 0x404   : > { %v3905_v57 = vmax.f32 %v3903_v24, %v3904_v34  ;;  %v3912_v51 = vmax.f32 %v3910_v15, %v3911_v7  ;;  %v4275_v11 = vunpack.c.l.b16 %v4189_v55  ;;  %v4258_v8 = vunpack.c.h.b16 %v9987_v33  ;;  %v6202_v24 = vld [vmem:[#allocation8 + $0x28] sm:$0xff]  ;;  %v6200_v7 = vld [vmem:[#allocation8 + $0x18] sm:$0xff]  ;;  %v6235_v6 = vld [vmem:[#allocation8 + $0x130] sm:$0xff] }
 0x405   : > { %v4022_v59 = vsel %vm2435_vm6, %v3898_v20, %v4021_v39  ;;  %v4165_v29 = vsel %vm2433_vm5, %v3898_v20, %v4164_v10  ;;  %v4093_v35 = vsel %vm2431_vm4, %v3898_v20, %v4092_v38  ;;  %v3919_v27 = vmax.f32 %v3917_v53, %v3918_v60  ;;  %4674 = vmatpush.bf16.msrb.mxu1 %v6211_v0  ;;  %v4516_v60 = vpop.f32.mrf.mxu0  ;;  %v6250_v33 = vld [vmem:[#allocation8 + $0x1a8] sm:$0xff] }
 0x406   : > { %v4023_v31 = vsel %vm2437_vm7, %v3905_v57, %v4022_v59  ;;  %v4166_v5 = vsel %vm2435_vm6, %v3905_v57, %v4165_v29  ;;  %v4094_v13 = vsel %vm2433_vm5, %v3905_v57, %v4093_v35  ;;  %v4277_v44 = vunpack.c.l.b16 %v4190_v32  ;;  %4751 = vmatpush.bf16.msrb.mxu2 %v6203_v2  ;;  %v6219_v57 = vld [vmem:[#allocation8 + $0xb0] sm:$0xff]  ;;  %v6218_v29 = vld [vmem:[#allocation8 + $0xa8] sm:$0xff] }
 0x407   : > { %v4024_v42 = vsel %vm2439_vm8, %v3912_v51, %v4023_v31  ;;  %v4167_v18 = vsel %vm2437_vm7, %v3912_v51, %v4166_v5  ;;  %v4095_v23 = vsel %vm2435_vm6, %v3912_v51, %v4094_v13  ;;  %v4282_v25 = vpack.c.b16 %v4261_v41, %v4258_v8  ;;  %v6207_v51 = vld [vmem:[#allocation8 + $0x50] sm:$0xff]  ;;  %4844 = vmatpush.bf16.msra.mxu3 %v6219_v57  ;;  %v6217_v5 = vld [vmem:[#allocation8 + $0xa0] sm:$0xff]  ;;  %v6252_v13 = vld [vmem:[#allocation8 + $0x1b8] sm:$0xff] }
 0x408   : > { %v4040_v56 = vsel %vm537_vm0, 0.0, %v4024_v42  ;;  %v4168_v14 = vsel %vm2439_vm8, %v3919_v27, %v4167_v18  ;;  %v4096_v16 = vsel %vm2437_vm7, %v3919_v27, %v4095_v23  ;;  %v4276_v58 = vunpack.c.h.b16 %v4189_v55  ;;  %v6199_v59 = vld [vmem:[#allocation8 + $0x10] sm:$0xff]  ;;  %v6206_v42 = vld [vmem:[#allocation8 + $0x48] sm:$0xff]  ;;  %5219 = vmatpush.bf16.msra.mxu0 %v6252_v13  ;;  %v6224_v57 = vld [vmem:[#allocation8 + $0xd8] sm:$0xff] }
 0x409   : > { %v4191_v4 = vpack.c.bf16 %v4168_v14, %v4040_v56  ;;  %v4112_v52 = vsel %vm610_vm1, %v4096_v16, 0.0  ;;  %v4267_v62 = vunpack.c.h.b16 %v9210_v3  ;;  %4675 = vmatpush.bf16.msrb.mxu1 %v6210_v37  ;;  %v4270_v30 = vunpack.c.h.b16 %v9474_v45  ;;  %v4460_v3 = vpop.f32.mrf.mxu3  ;;  %v6208_v45 = vld [vmem:[#allocation8 + $0x58] sm:$0xff]  ;;  %v6198_v55 = vld [vmem:[#allocation8 + $0x8] sm:$0xff]  ;;  %v6251_v14 = vld [vmem:[#allocation8 + $0x1b0] sm:$0xff] }
 0x40a   : > { %v4192_v28 = vpack.c.bf16 %v4112_v52, %v4112_v52  ;;  %4752 = vmatpush.bf16.msrb.mxu2 %v6202_v24  ;;  %v6216_v56 = vld [vmem:[#allocation8 + $0x98] sm:$0xff]  ;;  %v6205_v52 = vld [vmem:[#allocation8 + $0x40] sm:$0xff]  ;;  %v6227_v41 = vld [vmem:[#allocation8 + $0xf0] sm:$0xff] }
 0x40b   : > { %v4278_v12 = vunpack.c.l.b16 %v4191_v4  ;;  %v4279_v61 = vunpack.c.h.b16 %v4191_v4  ;;  %v4285_v9 = vpack.c.b16 %v4267_v62, %v4264_v1  ;;  %v4288_v54 = vpack.c.b16 %v4273_v49, %v4270_v30  ;;  %4845 = vmatpush.bf16.msra.mxu3 %v6218_v29  ;;  %v9580_v4 = vld [vmem:[#allocation10 + $0x1] ss:$0 sm:$0xff] }
 0x40c   : > { %v4280_v26 = vunpack.c.l.b16 %v4192_v28  ;;  %v6228_v28 = vld [vmem:[#allocation8 + $0xf8] sm:$0xff]  ;;  %5220 = vmatpush.bf16.msra.mxu0 %v6251_v14  ;;  %v6225_v24 = vld [vmem:[#allocation8 + $0xe0] sm:$0xff] }
 0x40d   : > { %v4290_v22 = vpack.c.b16 %v4278_v12, %v4275_v11  ;;  %v4291_v46 = vpack.c.b16 %v4279_v61, %v4276_v58  ;;  %4676 = vmatpush.bf16.msrb.mxu1 %v6209_v50  ;;  %v4518_v38 = vpop.f32.mrf.mxu0  ;;  %v6214_v61 = vld [vmem:[#allocation8 + $0x88] sm:$0xff]  ;;  %v6244_v50 = vld [vmem:[#allocation8 + $0x178] sm:$0xff] }
 0x40e   : > { %v4292_v43 = vpack.c.b16 %v4280_v26, %v4277_v44  ;;  %4753 = vmatpush.bf16.msrb.mxu2 %v6201_v36  ;;  %v6248_v36 = vld [vmem:[#allocation8 + $0x198] sm:$0xff] }
 0x40f   : > { %4472 = vmatmul.bf16.gmra.mxu3 %v4290_v22 }
 0x410   : > { %4530 = vmatmul.bf16.gmra.mxu0 %v4292_v43  ;;  %4846 = vmatpush.bf16.msra.mxu3 %v6217_v5  ;;  %v6242_v5 = vld [vmem:[#allocation8 + $0x168] sm:$0xff] }
 0x411   : > { %v4463_v15 = vpop.f32.mrf.mxu3  ;;  %4677 = vmatpush.bf16.msrb.mxu1 %v6208_v45  ;;  %5221 = vmatpush.bf16.msra.mxu0 %v6250_v33 }
 0x412   : > { %4754 = vmatpush.bf16.msrb.mxu2 %v6200_v7 }
 0x414   : > { %4847 = vmatpush.bf16.msra.mxu3 %v6216_v56 }
 0x415   : > { %4678 = vmatpush.bf16.msrb.mxu1 %v6207_v51  ;;  %v4521_v35 = vpop.f32.mrf.mxu0  ;;  %v6247_v51 = vld [vmem:[#allocation8 + $0x190] sm:$0xff] }
 0x416   : > { %4755 = vmatpush.bf16.msrb.mxu2 %v6199_v59 }
 0x418   : > { %4848 = vmatpush.bf16.msra.mxu3 %v6215_v63  ;;  %v6222_v63 = vld [vmem:[#allocation8 + $0xc8] sm:$0xff] }
 0x419   : > { %v4465_v53 = vpop.f32.mrf.mxu3  ;;  %4679 = vmatpush.bf16.msrb.mxu1 %v6206_v42 }
 0x41a   : > { %4756 = vmatpush.bf16.msrb.mxu2 %v6198_v55  ;;  %v6223_v55 = vld [vmem:[#allocation8 + $0xd0] sm:$0xff] }
 0x41c   : > { %4849 = vmatpush.bf16.msra.mxu3 %v6214_v61 }
 0x41d   : > { %v4523_v16 = vpop.f32.mrf.mxu0  ;;  %4680 = vmatpush.bf16.msrb.mxu1 %v6205_v52 }
 0x41f   : > { %4486 = vmatmul.bf16.vlgmr.msrb.gmra.mxu3 %v4282_v25 }
 0x421   : > { %v9572_v20 = vpop.f32.mrf.mxu3  ;;  %4937 = vmatpush.bf16.msra.mxu1 %v6228_v28  ;;  %v6233_v28 = vld [vmem:[#allocation8 + $0x120] sm:$0xff] }
 0x425   : > { %v4526_v62 = vpop.f32.mrf.mxu0  ;;  %4938 = vmatpush.bf16.msra.mxu1 %v6227_v41  ;;  %v6245_v41 = vld [vmem:[#allocation8 + $0x180] sm:$0xff] }
 0x429   : > { %v9574_v34 = vpop.f32.mrf.mxu3  ;;  %4939 = vmatpush.bf16.msra.mxu1 %v6226_v17 }
 0x42d   : > { %4940 = vmatpush.bf16.msra.mxu1 %v6225_v24  ;;  %v4528_v59 = vpop.f32.mrf.mxu0 }
 0x42f   : > { %4491 = vmatmul.bf16.gmra.mxu3 %v4285_v9 }
 0x431   : > { %4941 = vmatpush.bf16.msra.mxu1 %v6224_v57 }
 0x435   : > { %4942 = vmatpush.bf16.msra.mxu1 %v6223_v55 }
 0x439   : > { %4943 = vmatpush.bf16.msra.mxu1 %v6222_v63 }
 0x43f   : > { %4496 = vmatmul.bf16.gmra.mxu3 %v4288_v54 }
 0x44f   : > { %4501 = vmatmul.bf16.gmra.mxu3 %v4291_v46  ;;  %v6249_v46 = vld [vmem:[#allocation8 + $0x1a0] sm:$0xff] }
 0x450   : > { %5222 = vmatpush.bf16.msra.mxu0 %v6249_v46 }
 0x454   : > { %5223 = vmatpush.bf16.msra.mxu0 %v6248_v36 }
 0x458   : > { %5224 = vmatpush.bf16.msra.mxu0 %v6247_v51 }
 0x492   : > { %v9576_v48 = vpop.f32.mrf.mxu3 }
 0x49a   : > { %v9578_v39 = vpop.f32.mrf.mxu3 }
 0x4a2   : > { %v4487_v47 = vpop.f32.mrf.mxu3 }
 0x4a3   : > { %v4488_v31 = vadd.f32 %v4487_v47, %v4458_v19  ;;  %v6197_v19 = vld [vmem:[#allocation8] sm:$0xff]  ;;  %v6243_v47 = vld [vmem:[#allocation8 + $0x170] sm:$0xff] }
 0x4a4   : > { %4757 = vmatpush.bf16.msrb.mxu2 %v6197_v19  ;;  %v6232_v19 = vld [vmem:[#allocation8 + $0x118] sm:$0xff] }
 0x4a5   : > { %v4517_v32 = vadd.f32 %v4516_v60, %v4488_v31  ;;  %v6234_v31 = vld [vmem:[#allocation8 + $0x128] sm:$0xff] }
 0x4a7   : > { %v4537_v22 = vadd.f32 %v9580_v4, %v4517_v32 }
 0x4a9   : > { %v4545_v1 = vmax.f32 %v4537_v22, 0.0 }
 0x4aa   : > { %v4489_v10 = vpop.f32.mrf.mxu3 }
 0x4ab   : > { %v4490_v18 = vadd.f32 %v4489_v10, %v4460_v3  ;;  %v4553_v49 = vpack.c.bf16 %v4545_v1, %v4545_v1  ;;  %v6213_v3 = vld [vmem:[#allocation8 + $0x80] sm:$0xff] }
 0x4ac   : > { %4850 = vmatpush.bf16.msra.mxu3 %v6213_v3  ;;  %v6240_v3 = vld [vmem:[#allocation8 + $0x158] sm:$0xff] }
 0x4ad   : > { %v4519_v11 = vadd.f32 %v4518_v38, %v4490_v18 }
 0x4af   : > { %v4538_v8 = vadd.f32 %v9580_v4, %v4519_v11  ;;  %v6241_v11 = vld [vmem:[#allocation8 + $0x160] sm:$0xff] }
 0x4b0   : > { %5125 = vmatpush.bf16.msrb.mxu3 %v6244_v50 }
 0x4b1   : > { %v4546_v40 = vmax.f32 %v4538_v8, 0.0 }
 0x4b2   : > { %v4492_v21 = vpop.f32.mrf.mxu3 }
 0x4b3   : > { %v4493_v27 = vadd.f32 %v4492_v21, %v4463_v15  ;;  %v4554_v15 = vpack.c.bf16 %v4546_v40, %v4546_v40 }
 0x4b4   : > { %5126 = vmatpush.bf16.msrb.mxu3 %v6243_v47 }
 0x4b5   : > { %v4522_v23 = vadd.f32 %v4521_v35, %v4493_v27  ;;  %v9594_v10 = vunpack.c.l.b16 %v4554_v15 }
 0x4b7   : > { %v4539_v44 = vadd.f32 %v9580_v4, %v4522_v23  ;;  %v6246_v23 = vld [vmem:[#allocation8 + $0x188] sm:$0xff]  ;;  %v4686_v14 = vrot.slane %v9594_v10, 7  ;;  %v5156_v22 = vrot.slane %v9594_v10, 5 }
 0x4b8   : > { %5127 = vmatpush.bf16.msrb.mxu3 %v6242_v5  ;;  %5225 = vmatpush.bf16.msra.mxu0 %v6246_v23  ;;  %v6239_v5 = vld [vmem:[#allocation8 + $0x150] sm:$0xff] }
 0x4b9   : > { %v4547_v25 = vmax.f32 %v4539_v44, 0.0 }
 0x4ba   : > { %v4494_v12 = vpop.f32.mrf.mxu3 }
 0x4bb   : > { %v4495_v26 = vadd.f32 %v4494_v12, %v4465_v53  ;;  %v4555_v2 = vpack.c.bf16 %v4547_v25, %v4547_v25  ;;  %v6236_v53 = vld [vmem:[#allocation8 + $0x138] sm:$0xff] }
 0x4bc   : > { %5031 = vmatpush.bf16.msra.mxu2 %v6236_v53  ;;  %5128 = vmatpush.bf16.msrb.mxu3 %v6241_v11  ;;  %v6221_v53 = vld [vmem:[#allocation8 + $0xc0] sm:$0xff] }
 0x4bd   : > { %v4524_v43 = vadd.f32 %v4523_v16, %v4495_v26  ;;  %v9587_v45 = vunpack.c.l.b16 %v4555_v2  ;;  %v4780_v26 = vrot.slane %v9594_v10, 1  ;;  %5226 = vmatpush.bf16.msra.mxu0 %v6245_v41  ;;  %4944 = vmatpush.bf16.msra.mxu1 %v6221_v53  ;;  %v4968_v41 = vrot.slane %v9594_v10, 3 }
 0x4bf   : > { %v4540_v58 = vadd.f32 %v9580_v4, %v4524_v43  ;;  %v4611_v27 = vrot.slane %v9587_v45, 7  ;;  %v4688_v52 = vrot.slane %v9587_v45, 6  ;;  %v5158_v25 = vrot.slane %v9587_v45, 4 }
 0x4c0   : > { %5032 = vmatpush.bf16.msra.mxu2 %v6235_v6  ;;  %5129 = vmatpush.bf16.msrb.mxu3 %v6240_v3 }
 0x4c1   : > { %v4548_v9 = vmax.f32 %v4540_v58, 0.0  ;;  %v4531_v58 = vpop.f32.mrf.mxu0 }
 0x4c2   : > { %v4497_v0 = vpop.f32.mrf.mxu3 }
 0x4c3   : > { %v4498_v37 = vadd.f32 %v4497_v0, %v9572_v20  ;;  %v4556_v30 = vpack.c.bf16 %v4548_v9, %v4548_v9  ;;  %v9590_v20 = vunpack.c.l.b16 %v4553_v49 }
 0x4c4   : > { %5033 = vmatpush.bf16.msra.mxu2 %v6234_v31  ;;  %v6231_v31 = vld [vmem:[#allocation8 + $0x110] sm:$0xff]  ;;  %5130 = vmatpush.bf16.msrb.mxu3 %v6239_v5 }
 0x4c5   : > { %v4527_v54 = vadd.f32 %v4526_v62, %v4498_v37  ;;  %v9592_v60 = vunpack.c.l.b16 %v4556_v30  ;;  %v4609_v13 = vrot.slane %v9590_v20, 1  ;;  %v4779_v33 = vrot.slane %v9590_v20, 2 }
 0x4c6   : > { %v4687_v62 = vsel %vm2441_vm9, %v4686_v14, %v9590_v20  ;;  %v5155_v1 = vrot.slane %v9590_v20, 6  ;;  %v4873_v14 = vrot.slane %v9590_v20, 3  ;;  %v4967_v63 = vrot.slane %v9590_v20, 4 }
 0x4c7   : > { %v4541_v7 = vadd.f32 %v9580_v4, %v4527_v54  ;;  %v4613_v42 = vrot.slane %v9592_v60, 6  ;;  %v4690_v44 = vrot.slane %v9592_v60, 5  ;;  %v4783_v8 = vrot.slane %v9592_v60, 7 }
 0x4c8   : > { %v5160_v9 = vrot.slane %v9592_v60, 3  ;;  %v4689_v0 = vsel %vm2429_vm3, %v4688_v52, %v4687_v62  ;;  %5034 = vmatpush.bf16.msra.mxu2 %v6233_v28  ;;  %v4781_v37 = vsel %vm2441_vm9, %v4780_v26, %v4779_v33  ;;  %v5157_v30 = vsel %vm2441_vm9, %v5156_v22, %v5155_v1  ;;  %v6230_v26 = vld [vmem:[#allocation8 + $0x108] sm:$0xff] }
 0x4c9   : > { %v4549_v38 = vmax.f32 %v4541_v7, 0.0  ;;  %v5159_v50 = vsel %vm2429_vm3, %v5158_v25, %v5157_v30  ;;  %v4691_v7 = vsel %vm2431_vm4, %v4690_v44, %v4689_v0  ;;  %v4533_v44 = vpop.f32.mrf.mxu0  ;;  %v6238_v22 = vld [vmem:[#allocation8 + $0x148] sm:$0xff]  ;;  %v4970_v33 = vrot.slane %v9587_v45, 2 }
 0x4ca   : > { %v4499_v29 = vpop.f32.mrf.mxu3  ;;  %v5161_v47 = vsel %vm2431_vm4, %v5160_v9, %v5159_v50  ;;  %v5061_v1 = vrot.slane %v9590_v20, 5  ;;  %5131 = vmatpush.bf16.msrb.mxu3 %v6238_v22 }
 0x4cb   : > { %v4557_v35 = vpack.c.bf16 %v4549_v38, %v4549_v38  ;;  %v4500_v21 = vadd.f32 %v4499_v29, %v9574_v34  ;;  %v4610_v34 = vsel %vm2441_vm9, %v9594_v10, %v4609_v13 }
 0x4cc   : > { %v4612_v32 = vsel %vm2429_vm3, %v4611_v27, %v4610_v34  ;;  %5035 = vmatpush.bf16.msra.mxu2 %v6232_v19 }
 0x4cd   : > { %v4529_v18 = vadd.f32 %v4528_v59, %v4500_v21  ;;  %v9600_v56 = vunpack.c.l.b16 %v4557_v35  ;;  %v4614_v12 = vsel %vm2431_vm4, %v4613_v42, %v4612_v32  ;;  %v4876_v32 = vrot.slane %v9587_v45, 1 }
 0x4cf   : > { %v4542_v16 = vadd.f32 %v9580_v4, %v4529_v18  ;;  %v4615_v46 = vrot.slane %v9600_v56, 5  ;;  %v4692_v2 = vrot.slane %v9600_v56, 4  ;;  %v4785_v49 = vrot.slane %v9600_v56, 6 }
 0x4d0   : > { %v5162_v54 = vrot.slane %v9600_v56, 2  ;;  %v4879_v11 = vrot.slane %v9600_v56, 7  ;;  %5036 = vmatpush.bf16.msra.mxu2 %v6231_v31 }
 0x4d1   : > { %v4550_v43 = vmax.f32 %v4542_v16, 0.0  ;;  %v4616_v36 = vsel %vm2433_vm5, %v4615_v46, %v4614_v12  ;;  %v4693_v29 = vsel %vm2433_vm5, %v4692_v2, %v4691_v7  ;;  %v4874_v16 = vrot.slane %v9594_v10, 2 }
 0x4d2   : > { %v4502_v61 = vpop.f32.mrf.mxu3  ;;  %v5163_v21 = vsel %vm2433_vm5, %v5162_v54, %v5161_v47  ;;  %v4969_v46 = vsel %vm2441_vm9, %v4968_v41, %v4967_v63  ;;  %v5062_v7 = vrot.slane %v9594_v10, 4  ;;  %v6260_v63 = vld [vmem:[#allocation8 + $0x1f8] sm:$0xff] }
 0x4d3   : > { %v4558_v17 = vpack.c.bf16 %v4550_v43, %v4550_v43  ;;  %v4503_v40 = vadd.f32 %v4502_v61, %v9576_v48  ;;  %v4782_v48 = vsel %vm2429_vm3, %v9587_v45, %v4781_v37  ;;  %v4875_v43 = vsel %vm2441_vm9, %v4874_v16, %v4873_v14  ;;  %v6229_v37 = vld [vmem:[#allocation8 + $0x100] sm:$0xff] }
 0x4d4   : > { %v4784_v6 = vsel %vm2431_vm4, %v4783_v8, %v4782_v48  ;;  %v4877_v25 = vsel %vm2429_vm3, %v4876_v32, %v4875_v43  ;;  %5037 = vmatpush.bf16.msra.mxu2 %v6230_v26  ;;  %v4971_v19 = vsel %vm2429_vm3, %v4970_v33, %v4969_v46 }
 0x4d5   : > { %v9627_v24 = vunpack.c.l.b16 %v4558_v17  ;;  %v4532_v15 = vadd.f32 %v4531_v58, %v4503_v40  ;;  %v4786_v35 = vsel %vm2433_vm5, %v4785_v49, %v4784_v6  ;;  %v4972_v58 = vrot.slane %v9592_v60, 1  ;;  %v6237_v49 = vld [vmem:[#allocation8 + $0x140] sm:$0xff] }
 0x4d6   : > { %v4878_v61 = vsel %vm2431_vm4, %v9592_v60, %v4877_v25  ;;  %5132 = vmatpush.bf16.msrb.mxu3 %v6237_v49 }
 0x4d7   : > { %v4543_v38 = vadd.f32 %v9580_v4, %v4532_v15  ;;  %v4617_v57 = vrot.slane %v9627_v24, 4  ;;  %v4694_v51 = vrot.slane %v9627_v24, 3  ;;  %v4787_v59 = vrot.slane %v9627_v24, 5 }
 0x4d8   : > { %v5164_v27 = vrot.slane %v9627_v24, 1  ;;  %v4881_v12 = vrot.slane %v9627_v24, 6  ;;  %v4975_v62 = vrot.slane %v9627_v24, 7  ;;  %v4880_v30 = vsel %vm2433_vm5, %v4879_v11, %v4878_v61  ;;  %5038 = vmatpush.bf16.msra.mxu2 %v6229_v37 }
 0x4d9   : > { %v4551_v13 = vmax.f32 %v4543_v38, 0.0  ;;  %v4618_v42 = vsel %vm2435_vm6, %v4617_v57, %v4616_v36  ;;  %v4695_v18 = vsel %vm2435_vm6, %v4694_v51, %v4693_v29  ;;  %v4788_v55 = vsel %vm2435_vm6, %v4787_v59, %v4786_v35 }
 0x4da   : > { %v4504_v23 = vpop.f32.mrf.mxu3  ;;  %v5165_v34 = vsel %vm2435_vm6, %v5164_v27, %v5163_v21  ;;  %v4882_v53 = vsel %vm2435_vm6, %v4881_v12, %v4880_v30  ;;  %v4973_v50 = vsel %vm2431_vm4, %v4972_v58, %v4971_v19  ;;  %v5064_v57 = vrot.slane %v9587_v45, 3  ;;  %v6257_v30 = vld [vmem:[#allocation8 + $0x1e0] sm:$0xff]  ;;  %v6256_v19 = vld [vmem:[#allocation8 + $0x1d8] sm:$0xff] }
 0x4db   : > { %v4559_v52 = vpack.c.bf16 %v4551_v13, %v4551_v13  ;;  %v4505_v28 = vadd.f32 %v4504_v23, %v9578_v39  ;;  %v4974_v38 = vsel %vm2433_vm5, %v9600_v56, %v4973_v50  ;;  %v5063_v59 = vsel %vm2441_vm9, %v5062_v7, %v5061_v1  ;;  %v6267_v50 = vld [vmem:[#allocation8 + $0x230] sm:$0xff]  ;;  %v6265_v7 = vld [vmem:[#allocation8 + $0x220] sm:$0xff] }
 0x4dc   : > { %v4976_v51 = vsel %vm2435_vm6, %v4975_v62, %v4974_v38  ;;  %v5066_v29 = vrot.slane %v9592_v60, 2  ;;  %v5068_v35 = vrot.slane %v9600_v56, 1  ;;  %v5065_v31 = vsel %vm2429_vm3, %v5064_v57, %v5063_v59 }
 0x4dd   : > { %v9658_v8 = vunpack.c.l.b16 %v4559_v52  ;;  %v4534_v39 = vadd.f32 %v4533_v44, %v4505_v28  ;;  %v5249_v58 = vrot.slane %v9590_v20, 7  ;;  %v5250_v61 = vrot.slane %v9594_v10, 6 }
 0x4de   : > { %v5067_v5 = vsel %vm2431_vm4, %v5066_v29, %v5065_v31  ;;  %v5252_v62 = vrot.slane %v9587_v45, 5  ;;  %v5254_v1 = vrot.slane %v9592_v60, 4  ;;  %v6258_v45 = vld [vmem:[#allocation8 + $0x1e8] sm:$0xff]  ;;  %v6276_v31 = vld [vmem:[#allocation8 + $0x278] sm:$0xff] }
 0x4df   : > { %v4544_v9 = vadd.f32 %v9580_v4, %v4534_v39  ;;  %v4619_v17 = vrot.slane %v9658_v8, 3  ;;  %v4696_v40 = vrot.slane %v9658_v8, 2  ;;  %v4789_v0 = vrot.slane %v9658_v8, 4 }
 0x4e0   : > { %v5166_v2 = vsel %vm2437_vm7, %v9658_v8, %v5165_v34  ;;  %v4883_v54 = vrot.slane %v9658_v8, 5  ;;  %v4977_v36 = vrot.slane %v9658_v8, 6  ;;  %v5071_v13 = vrot.slane %v9658_v8, 7 }
 0x4e1   : > { %v4552_v4 = vmax.f32 %v4544_v9, 0.0  ;;  %v4620_v3 = vsel %vm2437_vm7, %v4619_v17, %v4618_v42  ;;  %v4697_v15 = vsel %vm2437_vm7, %v4696_v40, %v4695_v18  ;;  %v4790_v48 = vsel %vm2437_vm7, %v4789_v0, %v4788_v55  ;;  %v6259_v17 = vld [vmem:[#allocation8 + $0x1f0] sm:$0xff] }
 0x4e2   : > { %v4884_v47 = vsel %vm2437_vm7, %v4883_v54, %v4882_v53  ;;  %v4978_v27 = vsel %vm2437_vm7, %v4977_v36, %v4976_v51  ;;  %v5069_v16 = vsel %vm2433_vm5, %v5068_v35, %v5067_v5  ;;  %v5256_v9 = vrot.slane %v9600_v56, 3  ;;  %v6268_v53 = vld [vmem:[#allocation8 + $0x238] sm:$0xff]  ;;  %v6266_v36 = vld [vmem:[#allocation8 + $0x228] sm:$0xff]  ;;  %v6275_v5 = vld [vmem:[#allocation8 + $0x270] sm:$0xff] }
 0x4e3   : > { %v4560_v6 = vpack.c.bf16 %v4552_v4, %v4552_v4  ;;  %v5070_v39 = vsel %vm2435_vm6, %v9627_v24, %v5069_v16  ;;  %v5251_v40 = vsel %vm2441_vm9, %v5250_v61, %v5249_v58  ;;  %v5258_v0 = vrot.slane %v9627_v24, 2  ;;  %v6262_v35 = vld [vmem:[#allocation8 + $0x208] sm:$0xff] }
 0x4e4   : > { %v5072_v25 = vsel %vm2437_vm7, %v5071_v13, %v5070_v39  ;;  %v5253_v20 = vsel %vm2429_vm3, %v5252_v62, %v5251_v40  ;;  %v5260_v10 = vrot.slane %v9658_v8, 1  ;;  %v6255_v8 = vld [vmem:[#allocation8 + $0x1d0] sm:$0xff]  ;;  %v6270_v62 = vld [vmem:[#allocation8 + $0x248] sm:$0xff] }
 0x4e5   : > { %v4608_v21 = vunpack.c.l.b16 %v4560_v6  ;;  %v6264_v6 = vld [vmem:[#allocation8 + $0x218] sm:$0xff] }
 0x4e7   : > { %v4621_v42 = vrot.slane %v4608_v21, 2  ;;  %v4698_v18 = vrot.slane %v4608_v21, 1  ;;  %v4791_v55 = vrot.slane %v4608_v21, 3  ;;  %v5167_v23 = vrot.slane %v4608_v21, 7 }
 0x4e8   : > { %v4885_v34 = vrot.slane %v4608_v21, 4  ;;  %v4979_v14 = vrot.slane %v4608_v21, 5  ;;  %v5073_v32 = vrot.slane %v4608_v21, 6 }
 0x4e9   : > { %v4622_v52 = vsel %vm2439_vm8, %v4621_v42, %v4620_v3  ;;  %v4699_v28 = vsel %vm2439_vm8, %v4698_v18, %v4697_v15  ;;  %v4792_v11 = vsel %vm2439_vm8, %v4791_v55, %v4790_v48  ;;  %v5168_v12 = vsel %vm2439_vm8, %v5167_v23, %v5166_v2  ;;  %v6254_v3 = vld [vmem:[#allocation8 + $0x1c8] sm:$0xff]  ;;  %v6253_v15 = vld [vmem:[#allocation8 + $0x1c0] sm:$0xff] }
 0x4ea   : > { %v4623_v44 = vpack.c.b16 %v4622_v52, %v4622_v52  ;;  %v4700_v26 = vpack.c.b16 %v4699_v28, %v4699_v28  ;;  %v4793_v22 = vpack.c.b16 %v4792_v11, %v4792_v11  ;;  %v5169_v43 = vpack.c.b16 %v5168_v12, %v5168_v12  ;;  %v6274_v23 = vld [vmem:[#allocation8 + $0x268] sm:$0xff]  ;;  %v6272_v12 = vld [vmem:[#allocation8 + $0x258] sm:$0xff] }
 0x4eb   : > { %v4886_v41 = vsel %vm2439_vm8, %v4885_v34, %v4884_v47  ;;  %v4980_v33 = vsel %vm2439_vm8, %v4979_v14, %v4978_v27  ;;  %v5074_v46 = vsel %vm2439_vm8, %v5073_v32, %v5072_v25  ;;  %v5255_v2 = vsel %vm2431_vm4, %v5254_v1, %v5253_v20  ;;  %v6263_v47 = vld [vmem:[#allocation8 + $0x210] sm:$0xff]  ;;  %v6261_v27 = vld [vmem:[#allocation8 + $0x200] sm:$0xff] }
 0x4ec   : > { %4681 = vmatmul.bf16.vlgmr.msrb.gmra.mxu1 %v4623_v44  ;;  %4758 = vmatmul.bf16.vlgmr.msrb.gmra.mxu2 %v4700_v26  ;;  %v5257_v37 = vsel %vm2433_vm5, %v5256_v9, %v5255_v2  ;;  %v4887_v24 = vpack.c.b16 %v4886_v41, %v4886_v41  ;;  %v4981_v54 = vpack.c.b16 %v4980_v33, %v4980_v33  ;;  %v6273_v14 = vld [vmem:[#allocation8 + $0x260] sm:$0xff]  ;;  %v6271_v26 = vld [vmem:[#allocation8 + $0x250] sm:$0xff] }
 0x4ed   : > { %4851 = vmatmul.bf16.vlgmr.msra.gmra.mxu3 %v4793_v22  ;;  %5227 = vmatmul.bf16.vlgmr.msra.gmra.mxu0 %v5169_v43  ;;  %v5259_v60 = vsel %vm2435_vm6, %v5258_v0, %v5257_v37  ;;  %v5075_v4 = vpack.c.b16 %v5074_v46, %v5074_v46  ;;  %v6409_v41 = vld [vmem:[#allocation10 + $0x2] ss:$0 sm:$0xff]  ;;  %v6410_v9 = vld [vmem:[#allocation10 + $0x3] ss:$0 sm:$0xff]  ;;  %v6411_v2 = vld [vmem:[#allocation10 + $0x4] ss:$0 sm:$0xff] }
 0x4ee   : > { %5313 = vmatpush.bf16.msrb.mxu1 %v6260_v63  ;;  %v5261_v56 = vsel %vm2437_vm7, %v5260_v10, %v5259_v60  ;;  %5398 = vmatpush.bf16.msrb.mxu2 %v6268_v53  ;;  %v6269_v1 = vld [vmem:[#allocation8 + $0x240] sm:$0xff] }
 0x4ef   : > { %v5262_v49 = vsel %vm2439_vm8, %v4608_v21, %v5261_v56  ;;  %5479 = vmatpush.bf16.msra.mxu3 %v6276_v31 }
 0x4f0   : > { %v5263_v48 = vpack.c.b16 %v5262_v49, %v5262_v49 }
 0x4f2   : > { %5314 = vmatpush.bf16.msrb.mxu1 %v6259_v17  ;;  %5399 = vmatpush.bf16.msrb.mxu2 %v6267_v50 }
 0x4f3   : > { %5480 = vmatpush.bf16.msra.mxu3 %v6275_v5 }
 0x4f6   : > { %5315 = vmatpush.bf16.msrb.mxu1 %v6258_v45  ;;  %5400 = vmatpush.bf16.msrb.mxu2 %v6266_v36 }
 0x4f7   : > { %5481 = vmatpush.bf16.msra.mxu3 %v6274_v23 }
 0x4fa   : > { %5316 = vmatpush.bf16.msrb.mxu1 %v6257_v30  ;;  %5401 = vmatpush.bf16.msrb.mxu2 %v6265_v7 }
 0x4fb   : > { %5482 = vmatpush.bf16.msra.mxu3 %v6273_v14 }
 0x4fc   : > { %4945 = vmatmul.bf16.vlgmr.msra.gmra.mxu1 %v4887_v24  ;;  %5039 = vmatmul.bf16.vlgmr.msra.gmra.mxu2 %v4981_v54 }
 0x4fd   : > { %5133 = vmatmul.bf16.vlgmr.msrb.gmra.mxu3 %v5075_v4 }
 0x4fe   : > { %5317 = vmatpush.bf16.msrb.mxu1 %v6256_v19  ;;  %5402 = vmatpush.bf16.msrb.mxu2 %v6264_v6 }
 0x4ff   : > { %5483 = vmatpush.bf16.msra.mxu3 %v6272_v12 }
 0x502   : > { %5318 = vmatpush.bf16.msrb.mxu1 %v6255_v8  ;;  %5403 = vmatpush.bf16.msrb.mxu2 %v6263_v47 }
 0x503   : > { %5484 = vmatpush.bf16.msra.mxu3 %v6271_v26 }
 0x506   : > { %5319 = vmatpush.bf16.msrb.mxu1 %v6254_v3  ;;  %5404 = vmatpush.bf16.msrb.mxu2 %v6262_v35 }
 0x507   : > { %5485 = vmatpush.bf16.msra.mxu3 %v6270_v62 }
 0x50a   : > { %5320 = vmatpush.bf16.msrb.mxu1 %v6253_v15  ;;  %5405 = vmatpush.bf16.msrb.mxu2 %v6261_v27 }
 0x50b   : > { %5486 = vmatpush.bf16.msra.mxu3 %v6269_v1 }
 0x50d   : > { %5321 = vmatmul.bf16.vlgmr.msrb.gmra.mxu1 %v5263_v48 }
 0x569   : > { %v4682_v38 = vpop.f32.mrf.mxu1 }
 0x56a   : > { %v5228_v57 = vpop.f32.mrf.mxu0 }
 0x56f   : > { %v4759_v51 = vpop.f32.mrf.mxu2 }
 0x570   : > { %v4852_v59 = vpop.f32.mrf.mxu3  ;;  %v4760_v18 = vadd.f32 %v4759_v51, %v4682_v38 }
 0x571   : > { %v4684_v29 = vpop.f32.mrf.mxu1 }
 0x572   : > { %v5230_v21 = vpop.f32.mrf.mxu0  ;;  %v4856_v34 = vadd.f32 %v4852_v59, %v4760_v18 }
 0x577   : > { %v4761_v13 = vpop.f32.mrf.mxu2 }
 0x578   : > { %v4854_v42 = vpop.f32.mrf.mxu3 }
 0x579   : > { %v4946_v55 = vpop.f32.mrf.mxu1 }
 0x57a   : > { %v4950_v16 = vadd.f32 %v4946_v55, %v4856_v34 }
 0x57f   : > { %v5040_v32 = vpop.f32.mrf.mxu2 }
 0x580   : > { %v5134_v52 = vpop.f32.mrf.mxu3  ;;  %v5044_v28 = vadd.f32 %v5040_v32, %v4950_v16 }
 0x581   : > { %v4948_v11 = vpop.f32.mrf.mxu1 }
 0x582   : > { %v5138_v44 = vadd.f32 %v5134_v52, %v5044_v28 }
 0x584   : > { %v5232_v63 = vadd.f32 %v5228_v57, %v5138_v44 }
 0x587   : > { %v5042_v22 = vpop.f32.mrf.mxu2 }
 0x588   : > { %v5136_v43 = vpop.f32.mrf.mxu3 }
 0x58a   : > { %v5322_v33 = vpop.f32.mrf.mxu1 }
 0x58b   : > { %v5326_v39 = vadd.f32 %v5322_v33, %v5232_v63 }
 0x58d   : > { %v5329_v25 = vadd.f32 %v6409_v41, %v5326_v39 }
 0x58f   : > { %v5330_v58 = vmax.f32 %v5329_v25, 0.0 }
 0x591   : > { %v5331_v61 = vpack.c.bf16 %v5330_v58, %v5330_v58 }
 0x592   : > { %v5324_v46 = vpop.f32.mrf.mxu1 }
 0x593   : > { %5406 = vmatmul.bf16.vlgmr.msrb.gmra.mxu2 %v5331_v61 }
 0x616   : > { %v5407_v17 = vpop.f32.mrf.mxu2 }
 0x617   : > { %v5408_v40 = vadd.f32 %v6410_v9, %v5407_v17 }
 0x619   : > { %v5411_v0 = vmax.f32 %v5408_v40, 0.0 }
 0x61b   : > { %v5412_v20 = vpack.c.bf16 %v5411_v0, %v5411_v0 }
 0x61d   : > { %5487 = vmatmul.bf16.vlgmr.msra.gmra.mxu3 %v5412_v20 }
 0x61e   : > { %v5409_v10 = vpop.f32.mrf.mxu2 }
 0x6a0   : > { %v5488_v37 = vpop.f32.mrf.mxu3 }
 0x6a1   : > { %v5489_v45 = vadd.f32 %v6411_v2, %v5488_v37 }
 0x6a3   : > { %5492 = vst [vmem:[%s303_s27] sm:$0xff] %v5489_v45 }
 0x6a4   : > { %6601 = shalt.err (!%p6598_p9)
}
 0x6a5   : > { %6295 = dma.vmem_to_hbm [thread:$0]  (%p6774_p5), %s5507_s28, 128, %s5509_s6, %s5494_s13  }
 0x6a8   : > { %v5490_v60 = vpop.f32.mrf.mxu3 }
 0x6a9 PF: > { %s5520_s10 = sand.u32 1, %s6636_s18   ;;  %p9988_p10 = scmp.ge.s32.totalorder %s6648_s21, 2 }
 0x6aa   : > { %s5521_s30 = scalar_lea.sflag [#allocation4], %s5520_s10 }
 0x6ab   : > { %p6315_p13 = pnand %p9988_p10, %p6778_p6 }
 0x6ad   : > { %p6316_p11 = pneg %p6315_p13 }
 0x6af   : > { %6631 = dma.done.wait (%p6316_p11), %s5521_s30, 128  }
 0x6b0   : > { %6633 = vsyncadd (%p6316_p11), %s5521_s30, 4294967168  ;;  %p20_p0 = scmp.ge.s32.totalorder %s6748_s29, 4   ;;  %s9989_s18 = smov %s6640_s19 }
 0x6b1   : > { %s9990_s19 = smov %s6644_s20  ;;  %s9991_s20 = smov %s6759_s8 }
 0x6b2   : > { %s9992_s21 = smov %s6748_s29  ;;  %22 = sbr.rel (!%p20_p0) target bundleno = 7 (0x7), region = 101 }
 0x6b7   :  { %5527 = vsyncpa [#allocation3], 1 }
 0x6b8   :  { %5529 = vsyncpa [#allocation3 + $0x1], 1 }
 0x6b9   :  { %5530 = vsyncpa [#allocation6], 1 }
 0x6ba   :  { %5531 = vsyncpa [#allocation9], 1 }
 0x6bb   :  { %5532 = vsyncpa [#allocation4], 1 }
 0x6bc   :  { %5534 = vsyncpa [#allocation4 + $0x1], 1 }

</bundles_post_ra>
